<compile_context>
chip_gen: v5e
topology: v5e:2x2
jax: 0.10.0
libtpu: 0.0.40
codegen_flags: <defaults>
</compile_context>

<pallas_src>
import jax
import jax.numpy as jnp
import numpy as np
from jax.experimental import pallas as pl
from jax.experimental.pallas import tpu as pltpu

_VMEM_LIMIT = 32 * 1024 * 1024  # <= physical VMEM on every generation (incl. v7x)


def _round_up(x, m):
    return ((x + m - 1) // m) * m


# ----------------------------------------------------------------------------
# Pallas kernel: one conv layer as   Y = relu(patches @ W + b)
# (bf16 MXU operands, f32 accumulate).  Batch is flattened into M.
# ----------------------------------------------------------------------------
def _conv_mm_kernel(p_ref, w_ref, b_ref, o_ref):
    y = jnp.dot(p_ref[...], w_ref[...], preferred_element_type=jnp.float32)
    o_ref[...] = jnp.maximum(y + b_ref[...], 0.0).astype(o_ref.dtype)


def _im2col_nhwc(x, kh, kw, stride, k_pad=0):
    """NHWC -> (B*oh*ow, kh*kw*C [+ k_pad zeros]) patches, feature order (kh,kw,c)."""
    B, H, W, C = x.shape
    oh = (H - kh) // stride + 1
    ow = (W - kw) // stride + 1
    taps = []
    for i in range(kh):
        for j in range(kw):
            taps.append(x[:, i:i + stride * oh:stride, j:j + stride * ow:stride, :])
    p = jnp.stack(taps, axis=3).reshape(B * oh * ow, kh * kw * C)
    if k_pad:
        p = jnp.pad(p, ((0, 0), (0, k_pad)))
    return p, oh, ow


def conv2d_relu_pallas(x_nhwc, w_kio, b_1o, *, kh, kw, stride, m_split=1):
    """x_nhwc: (B,H,W,C) bf16; w_kio: (>=kh*kw*C, O) bf16 (K zero-padded); b_1o: (1,O) f32."""
    B, H, W, C = x_nhwc.shape
    k_pad = w_kio.shape[0] - kh * kw * C            # contraction-dim zero padding
    patches, oh, ow = _im2col_nhwc(x_nhwc, kh, kw, stride, k_pad)  # (B*P, K) bf16
    M, K = patches.shape
    O = w_kio.shape[1]
    if M % m_split != 0 or (M // m_split) % 8 != 0:
        m_split = 1                                  # fall back to a single block
    mblk = M // m_split

    y = pl.pallas_call(
        _conv_mm_kernel,
        out_shape=jax.ShapeDtypeStruct((M, O), jnp.bfloat16),
        grid=(m_split,),
        in_specs=[
            pl.BlockSpec((mblk, K), lambda i: (i, 0)),
            pl.BlockSpec((K, O), lambda i: (0, 0)),
            pl.BlockSpec((1, O), lambda i: (0, 0)),
        ],
        out_specs=pl.BlockSpec((mblk, O), lambda i: (i, 0)),
        compiler_params=pltpu.CompilerParams(
            dimension_semantics=("parallel",),
            vmem_limit_bytes=_VMEM_LIMIT,
            allow_input_fusion=[True, False, False]),
    )(patches, w_kio, b_1o)
    return y.reshape(B, oh, ow, O)                   # NHWC bf16


# ----------------------------------------------------------------------------
# Pallas kernel: fused FC head, gridded over fc1's contraction axis so the
# fc1 weight streams in chunks (double-buffered) while earlier chunks multiply.
#   logits = (relu(relu(x@W1+b1)@W2+b2))@W3p + b3p
# ----------------------------------------------------------------------------
def _fc_head_kernel(x_ref, w1_ref, b1_ref, w2_ref, b2_ref, w3_ref, b3_ref,
                    o_ref, acc_ref):
    k = pl.program_id(0)

    @pl.when(k == 0)
    def _():
        acc_ref[...] = jnp.zeros_like(acc_ref)

    acc_ref[...] += jnp.dot(x_ref[...], w1_ref[...],
                            preferred_element_type=jnp.float32)

    @pl.when(k == pl.num_programs(0) - 1)
    def _():
        h = jnp.maximum(acc_ref[...] + b1_ref[...], 0.0).astype(jnp.bfloat16)
        h = jnp.dot(h, w2_ref[...], preferred_element_type=jnp.float32)
        h = jnp.maximum(h + b2_ref[...], 0.0).astype(jnp.bfloat16)
        o_ref[...] = (jnp.dot(h, w3_ref[...], preferred_element_type=jnp.float32)
                      + b3_ref[...])


def fc_head_pallas(x, w1, b1, w2, b2, w3, b3):
    M, Kp = x.shape          # Kp is zero-padded to a multiple of 640 (5 x 128)
    H = w2.shape[0]
    N = w3.shape[1]
    kblk = 640 if Kp % 640 == 0 else Kp
    k_blocks = Kp // kblk

    return pl.pallas_call(
        _fc_head_kernel,
        out_shape=jax.ShapeDtypeStruct((M, N), jnp.float32),
        grid=(k_blocks,),
        in_specs=[
            pl.BlockSpec((M, kblk), lambda k: (0, k)),   # x   : streamed over K
            pl.BlockSpec((kblk, H), lambda k: (k, 0)),   # W1  : streamed over K
            pl.BlockSpec((1, H), lambda k: (0, 0)),
            pl.BlockSpec((H, H), lambda k: (0, 0)),
            pl.BlockSpec((1, H), lambda k: (0, 0)),
            pl.BlockSpec((H, N), lambda k: (0, 0)),
            pl.BlockSpec((1, N), lambda k: (0, 0)),
        ],
        out_specs=pl.BlockSpec((M, N), lambda k: (0, 0)),
        scratch_shapes=[pltpu.VMEM((M, H), jnp.float32)],
        compiler_params=pltpu.CompilerParams(
            dimension_semantics=("arbitrary",),
            vmem_limit_bytes=_VMEM_LIMIT,
            allow_input_fusion=[True, False, False, False, False, False, False]),
    )(x, w1, b1, w2, b2, w3, b3)


# ----------------------------------------------------------------------------
# Parameter construction (deterministic, synthetic, PyTorch-compatible layout).
# ----------------------------------------------------------------------------
def init_params(key, in_channels, action_size, hidden_size):
    def dense(k, shape, fan_in):
        return jax.random.normal(k, shape, jnp.float32) / np.sqrt(fan_in)

    ks = jax.random.split(key, 12)
    return {
        # conv weights in PyTorch (out, in, kh, kw) layout
        "c1_w": dense(ks[0], (32, in_channels, 8, 8), in_channels * 8 * 8),
        "c1_b": 0.1 * jax.random.normal(ks[1], (32,), jnp.float32),
        "c2_w": dense(ks[2], (64, 32, 4, 4), 32 * 4 * 4),
        "c2_b": 0.1 * jax.random.normal(ks[3], (64,), jnp.float32),
        "c3_w": dense(ks[4], (64, 64, 3, 3), 64 * 3 * 3),
        "c3_b": 0.1 * jax.random.normal(ks[5], (64,), jnp.float32),
        # fc weights stored as (in, out); fc1's `in` axis uses PyTorch's
        # flatten order (c, h, w).
        "fc1_w": dense(ks[6], (64 * 7 * 7, hidden_size), 64 * 7 * 7),
        "fc1_b": 0.1 * jax.random.normal(ks[7], (hidden_size,), jnp.float32),
        "fc2_w": dense(ks[8], (hidden_size, hidden_size), hidden_size),
        "fc2_b": 0.1 * jax.random.normal(ks[9], (hidden_size,), jnp.float32),
        "fc3_w": dense(ks[10], (hidden_size, action_size), hidden_size),
        "fc3_b": 0.1 * jax.random.normal(ks[11], (action_size,), jnp.float32),
    }


def prepare_params(params):
    """One-time conversion of PyTorch-layout f32 params into kernel layout."""
    def conv_w(w_oihw):
        o, i, kh, kw = w_oihw.shape
        # (O,I,KH,KW) -> (KH,KW,I,O) -> (KH*KW*I, O): matches im2col's
        # (kh, kw, c) patch-feature order.  bf16 for the MXU.
        return (jnp.transpose(w_oihw, (2, 3, 1, 0))
                .reshape(kh * kw * i, o).astype(jnp.bfloat16))

    hidden = params["fc1_w"].shape[1]
    c3 = params["c3_w"].shape[0]                                # 64
    side = int(round((params["fc1_w"].shape[0] // c3) ** 0.5))  # 7

    # conv3 contraction dim padded 576 -> 640 (multiple of 128 lanes).
    c3_w = conv_w(params["c3_w"])
    c3_w = jnp.pad(c3_w, ((0, _round_up(c3_w.shape[0], 128) - c3_w.shape[0]), (0, 0)))

    # Permute fc1 rows from PyTorch (c,h,w) flatten order to NHWC (h,w,c),
    # then zero-pad the contraction axis to a multiple of 640 (5 x 128) so the
    # FC head can stream it in 128-aligned chunks.
    fc1_w = params["fc1_w"].reshape(c3, side, side, hidden)      # (c,h,w,out)
    fc1_w = jnp.transpose(fc1_w, (1, 2, 0, 3)).reshape(c3 * side * side, hidden)
    k_in = fc1_w.shape[0]
    k_padded = _round_up(k_in, 640)
    fc1_w = jnp.zeros((k_padded, hidden), jnp.float32).at[:k_in, :].set(fc1_w)

    # Pad fc3 to 128 output lanes (lane-dense final store).
    action_size = params["fc3_w"].shape[1]
    n_pad = 128
    assert action_size <= n_pad
    fc3_w = jnp.zeros((hidden, n_pad), jnp.float32).at[:, :action_size].set(params["fc3_w"])
    fc3_b = jnp.zeros((n_pad,), jnp.float32).at[:action_size].set(params["fc3_b"])

    bf = jnp.bfloat16
    return {
        "c1_w": conv_w(params["c1_w"]), "c1_b": params["c1_b"].reshape(1, -1),
        "c2_w": conv_w(params["c2_w"]), "c2_b": params["c2_b"].reshape(1, -1),
        "c3_w": c3_w, "c3_b": params["c3_b"].reshape(1, -1),
        "fc1_w": fc1_w.astype(bf), "fc1_b": params["fc1_b"].reshape(1, -1),
        "fc2_w": params["fc2_w"].astype(bf), "fc2_b": params["fc2_b"].reshape(1, -1),
        "fc3_w": fc3_w.astype(bf), "fc3_b": fc3_b.reshape(1, -1),
    }


# ----------------------------------------------------------------------------
# Actor forward pass (Pallas).
# ----------------------------------------------------------------------------
def actor_forward(kp, state_nchw, action_size):
    # state_nchw: (B, C, 84, 84) f32, PyTorch NCHW convention.
    x = jnp.transpose(state_nchw, (0, 2, 3, 1)).astype(jnp.bfloat16)          # NHWC bf16
    x = conv2d_relu_pallas(x, kp["c1_w"], kp["c1_b"], kh=8, kw=8, stride=4,
                           m_split=2)                                          # (B,20,20,32)
    x = conv2d_relu_pallas(x, kp["c2_w"], kp["c2_b"], kh=4, kw=4, stride=2)    # (B, 9, 9,64)
    x = conv2d_relu_pallas(x, kp["c3_w"], kp["c3_b"], kh=3, kw=3, stride=1)    # (B, 7, 7,64)
    B = x.shape[0]
    x = x.reshape(B, -1)                 # NHWC flatten; fc1 rows permuted to match
    k_pad = kp["fc1_w"].shape[0] - x.shape[1]
    x = jnp.pad(x, ((0, 0), (0, k_pad)))                                       # (B, 3200)
    logits_pad = fc_head_pallas(x, kp["fc1_w"], kp["fc1_b"],
                                kp["fc2_w"], kp["fc2_b"],
                                kp["fc3_w"], kp["fc3_b"])
    return logits_pad[:, :action_size]


# ----------------------------------------------------------------------------
# Pure-JAX reference (f32, PyTorch-layout params) for the correctness check.
# ----------------------------------------------------------------------------
def actor_forward_ref(params, state_nchw):
    def conv(x, w, b, stride):
        y = jax.lax.conv_general_dilated(
            x, w, window_strides=(stride, stride), padding="VALID",
            dimension_numbers=("NCHW", "OIHW", "NCHW"))
        return jax.nn.relu(y + b[None, :, None, None])

    x = conv(state_nchw, params["c1_w"], params["c1_b"], 4)
    x = conv(x, params["c2_w"], params["c2_b"], 2)
    x = conv(x, params["c3_w"], params["c3_b"], 1)
    x = x.reshape(x.shape[0], -1)                     # PyTorch (c, h, w) flatten
    x = jax.nn.relu(x @ params["fc1_w"] + params["fc1_b"])
    x = jax.nn.relu(x @ params["fc2_w"] + params["fc2_b"])
    return x @ params["fc3_w"] + params["fc3_b"]


if __name__ == "__main__":
    B, C, H, W = 2, 4, 84, 84        # 84x84 is required by fc1 = Linear(64*7*7, ...)
    action_size = 6
    hidden_size = 512

    key = jax.random.PRNGKey(0)
    k_params, k_state = jax.random.split(key)
    params = init_params(k_params, C, action_size, hidden_size)
    kparams = prepare_params(params)             # one-time bf16 + layout permutation
    state = jax.random.normal(k_state, (B, C, H, W), jnp.float32)

    fwd = jax.jit(actor_forward, static_argnums=2)
    logits = jax.block_until_ready(fwd(kparams, state, action_size))
    assert logits.shape == (B, action_size), logits.shape
    assert logits.dtype == jnp.float32

    ref = jax.block_until_ready(actor_forward_ref(params, state))
    # Kernel uses bf16 MXU inputs with f32 accumulation -> slightly looser tol.
    np.testing.assert_allclose(np.asarray(logits), np.asarray(ref),
                               rtol=2e-2, atol=2e-2)

    print("KERNEL_OK")
</pallas_src>

<mosaic_0001>
module attributes {stable_mosaic.version = 11 : i64} {
  func.func @_conv_mm_kernel(%arg0: i32, %arg1: memref<400x256xbf16, #tpu.memory_space<vmem>>, %arg2: memref<256x32xbf16, #tpu.memory_space<vmem>>, %arg3: memref<1x32xf32, #tpu.memory_space<vmem>>, %arg4: memref<400x32xbf16, #tpu.memory_space<vmem>>) attributes {dimension_semantics = [#tpu.dimension_semantics<parallel>], iteration_bounds = array<i64: 2>, scalar_prefetch = 0 : i64, scratch_operands = 0 : i64, tpu.core_type = #tpu.core_type<tc>, window_params = [{transform_indices = @transform_0, window_bounds = array<i64: 400, 256>}, {pipeline_mode = #tpu.pipeline_mode<synchronous>, transform_indices = @transform_1, window_bounds = array<i64: 256, 32>}, {pipeline_mode = #tpu.pipeline_mode<synchronous>, transform_indices = @transform_2, window_bounds = array<i64: 1, 32>}, {transform_indices = @transform_3, window_bounds = array<i64: 400, 32>}]} {
    %c0 = arith.constant 0 : index
    %c0_0 = arith.constant 0 : index
    %0 = vector.load %arg1[%c0, %c0_0] : memref<400x256xbf16, #tpu.memory_space<vmem>>, vector<400x256xbf16>
    %c0_1 = arith.constant 0 : index
    %c0_2 = arith.constant 0 : index
    %1 = vector.load %arg2[%c0_1, %c0_2] : memref<256x32xbf16, #tpu.memory_space<vmem>>, vector<256x32xbf16>
    %cst = arith.constant dense<0.000000e+00> : vector<400x32xf32>
    %2 = tpu.matmul %0, %1, %cst {dimension_numbers = #tpu.dot_dimension_numbers<[1], [0], [0], [1], [0, 0, 1, 1], [], []>} : vector<400x256xbf16>, vector<256x32xbf16>, vector<400x32xf32> -> vector<400x32xf32>
    %c0_3 = arith.constant 0 : index
    %c0_4 = arith.constant 0 : index
    %3 = vector.load %arg3[%c0_3, %c0_4] : memref<1x32xf32, #tpu.memory_space<vmem>>, vector<1x32xf32>
    %4 = vector.broadcast %3 : vector<1x32xf32> to vector<400x32xf32>
    %5 = arith.addf %2, %4 : vector<400x32xf32>
    %cst_5 = arith.constant 0.000000e+00 : f32
    %6 = vector.broadcast %cst_5 : f32 to vector<400x32xf32>
    %7 = arith.maximumf %5, %6 : vector<400x32xf32>
    %8 = arith.truncf %7 : vector<400x32xf32> to vector<400x32xbf16>
    %c0_6 = arith.constant 0 : index
    %c0_7 = arith.constant 0 : index
    %9 = vector.load %arg4[%c0_6, %c0_7] : memref<400x32xbf16, #tpu.memory_space<vmem>>, vector<400x32xbf16>
    tpu.vector_store %arg4[%c0_6, %c0_7], %8 {strides = array<i32>} : memref<400x32xbf16, #tpu.memory_space<vmem>>, vector<400x32xbf16>,
    return
  }
  func.func @transform_0(%arg0: i32) -> (i32, i32) {
    %c0_i32 = arith.constant 0 : i32
    %c0_i32_0 = arith.constant 0 : i32
    return %arg0, %c0_i32 : i32, i32
  }
  func.func @transform_1(%arg0: i32) -> (i32, i32) {
    %c0_i32 = arith.constant 0 : i32
    %c0_i32_0 = arith.constant 0 : i32
    %c0_i32_1 = arith.constant 0 : i32
    return %c0_i32, %c0_i32_0 : i32, i32
  }
  func.func @transform_2(%arg0: i32) -> (i32, i32) {
    %c0_i32 = arith.constant 0 : i32
    %c0_i32_0 = arith.constant 0 : i32
    %c0_i32_1 = arith.constant 0 : i32
    return %c0_i32, %c0_i32_0 : i32, i32
  }
  func.func @transform_3(%arg0: i32) -> (i32, i32) {
    %c0_i32 = arith.constant 0 : i32
    %c0_i32_0 = arith.constant 0 : i32
    return %arg0, %c0_i32 : i32, i32
  }
}

module attributes {stable_mosaic.version = 11 : i64} {
  func.func @_conv_mm_kernel(%arg0: i32, %arg1: memref<162x512xbf16, #tpu.memory_space<vmem>>, %arg2: memref<512x64xbf16, #tpu.memory_space<vmem>>, %arg3: memref<1x64xf32, #tpu.memory_space<vmem>>, %arg4: memref<162x64xbf16, #tpu.memory_space<vmem>>) attributes {dimension_semantics = [#tpu.dimension_semantics<parallel>], iteration_bounds = array<i64: 1>, scalar_prefetch = 0 : i64, scratch_operands = 0 : i64, tpu.core_type = #tpu.core_type<tc>, window_params = [{transform_indices = @transform_0, window_bounds = array<i64: 162, 512>}, {pipeline_mode = #tpu.pipeline_mode<synchronous>, transform_indices = @transform_1, window_bounds = array<i64: 512, 64>}, {pipeline_mode = #tpu.pipeline_mode<synchronous>, transform_indices = @transform_2, window_bounds = array<i64: 1, 64>}, {transform_indices = @transform_3, window_bounds = array<i64: 162, 64>}]} {
    %c0 = arith.constant 0 : index
    %c0_0 = arith.constant 0 : index
    %0 = vector.load %arg1[%c0, %c0_0] : memref<162x512xbf16, #tpu.memory_space<vmem>>, vector<162x512xbf16>
    %c0_1 = arith.constant 0 : index
    %c0_2 = arith.constant 0 : index
    %1 = vector.load %arg2[%c0_1, %c0_2] : memref<512x64xbf16, #tpu.memory_space<vmem>>, vector<512x64xbf16>
    %cst = arith.constant dense<0.000000e+00> : vector<162x64xf32>
    %2 = tpu.matmul %0, %1, %cst {dimension_numbers = #tpu.dot_dimension_numbers<[1], [0], [0], [1], [0, 0, 1, 1], [], []>} : vector<162x512xbf16>, vector<512x64xbf16>, vector<162x64xf32> -> vector<162x64xf32>
    %c0_3 = arith.constant 0 : index
    %c0_4 = arith.constant 0 : index
    %3 = vector.load %arg3[%c0_3, %c0_4] : memref<1x64xf32, #tpu.memory_space<vmem>>, vector<1x64xf32>
    %4 = vector.broadcast %3 : vector<1x64xf32> to vector<162x64xf32>
    %5 = arith.addf %2, %4 : vector<162x64xf32>
    %cst_5 = arith.constant 0.000000e+00 : f32
    %6 = vector.broadcast %cst_5 : f32 to vector<162x64xf32>
    %7 = arith.maximumf %5, %6 : vector<162x64xf32>
    %8 = arith.truncf %7 : vector<162x64xf32> to vector<162x64xbf16>
    %c0_6 = arith.constant 0 : index
    %c0_7 = arith.constant 0 : index
    %9 = vector.load %arg4[%c0_6, %c0_7] : memref<162x64xbf16, #tpu.memory_space<vmem>>, vector<162x64xbf16>
    tpu.vector_store %arg4[%c0_6, %c0_7], %8 {strides = array<i32>} : memref<162x64xbf16, #tpu.memory_space<vmem>>, vector<162x64xbf16>,
    return
  }
  func.func @transform_0(%arg0: i32) -> (i32, i32) {
    %c0_i32 = arith.constant 0 : i32
    %c0_i32_0 = arith.constant 0 : i32
    return %arg0, %c0_i32 : i32, i32
  }
  func.func @transform_1(%arg0: i32) -> (i32, i32) {
    %c0_i32 = arith.constant 0 : i32
    %c0_i32_0 = arith.constant 0 : i32
    %c0_i32_1 = arith.constant 0 : i32
    return %c0_i32, %c0_i32_0 : i32, i32
  }
  func.func @transform_2(%arg0: i32) -> (i32, i32) {
    %c0_i32 = arith.constant 0 : i32
    %c0_i32_0 = arith.constant 0 : i32
    %c0_i32_1 = arith.constant 0 : i32
    return %c0_i32, %c0_i32_0 : i32, i32
  }
  func.func @transform_3(%arg0: i32) -> (i32, i32) {
    %c0_i32 = arith.constant 0 : i32
    %c0_i32_0 = arith.constant 0 : i32
    return %arg0, %c0_i32 : i32, i32
  }
}

module attributes {stable_mosaic.version = 11 : i64} {
  func.func @_conv_mm_kernel(%arg0: i32, %arg1: memref<98x640xbf16, #tpu.memory_space<vmem>>, %arg2: memref<640x64xbf16, #tpu.memory_space<vmem>>, %arg3: memref<1x64xf32, #tpu.memory_space<vmem>>, %arg4: memref<98x64xbf16, #tpu.memory_space<vmem>>) attributes {dimension_semantics = [#tpu.dimension_semantics<parallel>], iteration_bounds = array<i64: 1>, scalar_prefetch = 0 : i64, scratch_operands = 0 : i64, tpu.core_type = #tpu.core_type<tc>, window_params = [{transform_indices = @transform_0, window_bounds = array<i64: 98, 640>}, {pipeline_mode = #tpu.pipeline_mode<synchronous>, transform_indices = @transform_1, window_bounds = array<i64: 640, 64>}, {pipeline_mode = #tpu.pipeline_mode<synchronous>, transform_indices = @transform_2, window_bounds = array<i64: 1, 64>}, {transform_indices = @transform_3, window_bounds = array<i64: 98, 64>}]} {
    %c0 = arith.constant 0 : index
    %c0_0 = arith.constant 0 : index
    %0 = vector.load %arg1[%c0, %c0_0] : memref<98x640xbf16, #tpu.memory_space<vmem>>, vector<98x640xbf16>
    %c0_1 = arith.constant 0 : index
    %c0_2 = arith.constant 0 : index
    %1 = vector.load %arg2[%c0_1, %c0_2] : memref<640x64xbf16, #tpu.memory_space<vmem>>, vector<640x64xbf16>
    %cst = arith.constant dense<0.000000e+00> : vector<98x64xf32>
    %2 = tpu.matmul %0, %1, %cst {dimension_numbers = #tpu.dot_dimension_numbers<[1], [0], [0], [1], [0, 0, 1, 1], [], []>} : vector<98x640xbf16>, vector<640x64xbf16>, vector<98x64xf32> -> vector<98x64xf32>
    %c0_3 = arith.constant 0 : index
    %c0_4 = arith.constant 0 : index
    %3 = vector.load %arg3[%c0_3, %c0_4] : memref<1x64xf32, #tpu.memory_space<vmem>>, vector<1x64xf32>
    %4 = vector.broadcast %3 : vector<1x64xf32> to vector<98x64xf32>
    %5 = arith.addf %2, %4 : vector<98x64xf32>
    %cst_5 = arith.constant 0.000000e+00 : f32
    %6 = vector.broadcast %cst_5 : f32 to vector<98x64xf32>
    %7 = arith.maximumf %5, %6 : vector<98x64xf32>
    %8 = arith.truncf %7 : vector<98x64xf32> to vector<98x64xbf16>
    %c0_6 = arith.constant 0 : index
    %c0_7 = arith.constant 0 : index
    %9 = vector.load %arg4[%c0_6, %c0_7] : memref<98x64xbf16, #tpu.memory_space<vmem>>, vector<98x64xbf16>
    tpu.vector_store %arg4[%c0_6, %c0_7], %8 {strides = array<i32>} : memref<98x64xbf16, #tpu.memory_space<vmem>>, vector<98x64xbf16>,
    return
  }
  func.func @transform_0(%arg0: i32) -> (i32, i32) {
    %c0_i32 = arith.constant 0 : i32
    %c0_i32_0 = arith.constant 0 : i32
    return %arg0, %c0_i32 : i32, i32
  }
  func.func @transform_1(%arg0: i32) -> (i32, i32) {
    %c0_i32 = arith.constant 0 : i32
    %c0_i32_0 = arith.constant 0 : i32
    %c0_i32_1 = arith.constant 0 : i32
    return %c0_i32, %c0_i32_0 : i32, i32
  }
  func.func @transform_2(%arg0: i32) -> (i32, i32) {
    %c0_i32 = arith.constant 0 : i32
    %c0_i32_0 = arith.constant 0 : i32
    %c0_i32_1 = arith.constant 0 : i32
    return %c0_i32, %c0_i32_0 : i32, i32
  }
  func.func @transform_3(%arg0: i32) -> (i32, i32) {
    %c0_i32 = arith.constant 0 : i32
    %c0_i32_0 = arith.constant 0 : i32
    return %arg0, %c0_i32 : i32, i32
  }
}

module attributes {stable_mosaic.version = 11 : i64} {
  func.func @_fc_head_kernel(%arg0: i32, %arg1: memref<2x640xbf16, #tpu.memory_space<vmem>>, %arg2: memref<640x512xbf16, #tpu.memory_space<vmem>>, %arg3: memref<1x512xf32, #tpu.memory_space<vmem>>, %arg4: memref<512x512xbf16, #tpu.memory_space<vmem>>, %arg5: memref<1x512xf32, #tpu.memory_space<vmem>>, %arg6: memref<512x128xbf16, #tpu.memory_space<vmem>>, %arg7: memref<1x128xf32, #tpu.memory_space<vmem>>, %arg8: memref<2x128xf32, #tpu.memory_space<vmem>>, %arg9: memref<2x512xf32, #tpu.memory_space<vmem>>) attributes {dimension_semantics = [#tpu.dimension_semantics<arbitrary>], iteration_bounds = array<i64: 5>, scalar_prefetch = 0 : i64, scratch_operands = 1 : i64, tpu.core_type = #tpu.core_type<tc>, window_params = [{transform_indices = @transform_0, window_bounds = array<i64: 2, 640>}, {transform_indices = @transform_1, window_bounds = array<i64: 640, 512>}, {pipeline_mode = #tpu.pipeline_mode<synchronous>, transform_indices = @transform_2, window_bounds = array<i64: 1, 512>}, {pipeline_mode = #tpu.pipeline_mode<synchronous>, transform_indices = @transform_3, window_bounds = array<i64: 512, 512>}, {pipeline_mode = #tpu.pipeline_mode<synchronous>, transform_indices = @transform_4, window_bounds = array<i64: 1, 512>}, {pipeline_mode = #tpu.pipeline_mode<synchronous>, transform_indices = @transform_5, window_bounds = array<i64: 512, 128>}, {pipeline_mode = #tpu.pipeline_mode<synchronous>, transform_indices = @transform_6, window_bounds = array<i64: 1, 128>}, {pipeline_mode = #tpu.pipeline_mode<synchronous>, transform_indices = @transform_7, window_bounds = array<i64: 2, 128>}]} {
    %c0_i32 = arith.constant 0 : i32
    %0 = arith.cmpi eq, %arg0, %c0_i32 : i32
    %1 = arith.extui %0 : i1 to i32
    %c0_i32_0 = arith.constant 0 : i32
    %2 = arith.cmpi ne, %1, %c0_i32_0 : i32
    scf.if %2 {
      %cst_9 = arith.constant 0.000000e+00 : f32
      %12 = vector.broadcast %cst_9 : f32 to vector<2x512xf32>
      %c0_10 = arith.constant 0 : index
      %c0_11 = arith.constant 0 : index
      %13 = vector.load %arg9[%c0_10, %c0_11] : memref<2x512xf32, #tpu.memory_space<vmem>>, vector<2x512xf32>
      tpu.vector_store %arg9[%c0_10, %c0_11], %12 {strides = array<i32>} : memref<2x512xf32, #tpu.memory_space<vmem>>, vector<2x512xf32>,
    } else {
    }
    %c0 = arith.constant 0 : index
    %c0_1 = arith.constant 0 : index
    %3 = vector.load %arg9[%c0, %c0_1] : memref<2x512xf32, #tpu.memory_space<vmem>>, vector<2x512xf32>
    %c0_2 = arith.constant 0 : index
    %c0_3 = arith.constant 0 : index
    %4 = vector.load %arg1[%c0_2, %c0_3] : memref<2x640xbf16, #tpu.memory_space<vmem>>, vector<2x640xbf16>
    %c0_4 = arith.constant 0 : index
    %c0_5 = arith.constant 0 : index
    %5 = vector.load %arg2[%c0_4, %c0_5] : memref<640x512xbf16, #tpu.memory_space<vmem>>, vector<640x512xbf16>
    %cst = arith.constant dense<0.000000e+00> : vector<2x512xf32>
    %6 = tpu.matmul %4, %5, %cst {dimension_numbers = #tpu.dot_dimension_numbers<[1], [0], [0], [1], [0, 0, 1, 1], [], []>} : vector<2x640xbf16>, vector<640x512xbf16>, vector<2x512xf32> -> vector<2x512xf32>
    %7 = arith.addf %3, %6 : vector<2x512xf32>
    %c0_6 = arith.constant 0 : index
    %c0_7 = arith.constant 0 : index
    %8 = vector.load %arg9[%c0_6, %c0_7] : memref<2x512xf32, #tpu.memory_space<vmem>>, vector<2x512xf32>
    tpu.vector_store %arg9[%c0_6, %c0_7], %7 {strides = array<i32>} : memref<2x512xf32, #tpu.memory_space<vmem>>, vector<2x512xf32>,
    %c4_i32 = arith.constant 4 : i32
    %9 = arith.cmpi eq, %arg0, %c4_i32 : i32
    %10 = arith.extui %9 : i1 to i32
    %c0_i32_8 = arith.constant 0 : i32
    %11 = arith.cmpi ne, %10, %c0_i32_8 : i32
    scf.if %11 {
      %c0_9 = arith.constant 0 : index
      %c0_10 = arith.constant 0 : index
      %12 = vector.load %arg9[%c0_9, %c0_10] : memref<2x512xf32, #tpu.memory_space<vmem>>, vector<2x512xf32>
      %c0_11 = arith.constant 0 : index
      %c0_12 = arith.constant 0 : index
      %13 = vector.load %arg3[%c0_11, %c0_12] : memref<1x512xf32, #tpu.memory_space<vmem>>, vector<1x512xf32>
      %14 = vector.broadcast %13 : vector<1x512xf32> to vector<2x512xf32>
      %15 = arith.addf %12, %14 : vector<2x512xf32>
      %cst_13 = arith.constant 0.000000e+00 : f32
      %16 = vector.broadcast %cst_13 : f32 to vector<2x512xf32>
      %17 = arith.maximumf %15, %16 : vector<2x512xf32>
      %18 = arith.truncf %17 : vector<2x512xf32> to vector<2x512xbf16>
      %c0_14 = arith.constant 0 : index
      %c0_15 = arith.constant 0 : index
      %19 = vector.load %arg4[%c0_14, %c0_15] : memref<512x512xbf16, #tpu.memory_space<vmem>>, vector<512x512xbf16>
      %cst_16 = arith.constant dense<0.000000e+00> : vector<2x512xf32>
      %20 = tpu.matmul %18, %19, %cst_16 {dimension_numbers = #tpu.dot_dimension_numbers<[1], [0], [0], [1], [0, 0, 1, 1], [], []>} : vector<2x512xbf16>, vector<512x512xbf16>, vector<2x512xf32> -> vector<2x512xf32>
      %c0_17 = arith.constant 0 : index
      %c0_18 = arith.constant 0 : index
      %21 = vector.load %arg5[%c0_17, %c0_18] : memref<1x512xf32, #tpu.memory_space<vmem>>, vector<1x512xf32>
      %22 = vector.broadcast %21 : vector<1x512xf32> to vector<2x512xf32>
      %23 = arith.addf %20, %22 : vector<2x512xf32>
      %cst_19 = arith.constant 0.000000e+00 : f32
      %24 = vector.broadcast %cst_19 : f32 to vector<2x512xf32>
      %25 = arith.maximumf %23, %24 : vector<2x512xf32>
      %26 = arith.truncf %25 : vector<2x512xf32> to vector<2x512xbf16>
      %c0_20 = arith.constant 0 : index
      %c0_21 = arith.constant 0 : index
      %27 = vector.load %arg6[%c0_20, %c0_21] : memref<512x128xbf16, #tpu.memory_space<vmem>>, vector<512x128xbf16>
      %cst_22 = arith.constant dense<0.000000e+00> : vector<2x128xf32>
      %28 = tpu.matmul %26, %27, %cst_22 {dimension_numbers = #tpu.dot_dimension_numbers<[1], [0], [0], [1], [0, 0, 1, 1], [], []>} : vector<2x512xbf16>, vector<512x128xbf16>, vector<2x128xf32> -> vector<2x128xf32>
      %c0_23 = arith.constant 0 : index
      %c0_24 = arith.constant 0 : index
      %29 = vector.load %arg7[%c0_23, %c0_24] : memref<1x128xf32, #tpu.memory_space<vmem>>, vector<1x128xf32>
      %30 = vector.broadcast %29 : vector<1x128xf32> to vector<2x128xf32>
      %31 = arith.addf %28, %30 : vector<2x128xf32>
      %c0_25 = arith.constant 0 : index
      %c0_26 = arith.constant 0 : index
      %32 = vector.load %arg8[%c0_25, %c0_26] : memref<2x128xf32, #tpu.memory_space<vmem>>, vector<2x128xf32>
      tpu.vector_store %arg8[%c0_25, %c0_26], %31 {strides = array<i32>} : memref<2x128xf32, #tpu.memory_space<vmem>>, vector<2x128xf32>,
    } else {
    }
    return
  }
  func.func @transform_0(%arg0: i32) -> (i32, i32) {
    %c0_i32 = arith.constant 0 : i32
    %c0_i32_0 = arith.constant 0 : i32
    return %c0_i32, %arg0 : i32, i32
  }
  func.func @transform_1(%arg0: i32) -> (i32, i32) {
    %c0_i32 = arith.constant 0 : i32
    %c0_i32_0 = arith.constant 0 : i32
    return %arg0, %c0_i32 : i32, i32
  }
  func.func @transform_2(%arg0: i32) -> (i32, i32) {
    %c0_i32 = arith.constant 0 : i32
    %c0_i32_0 = arith.constant 0 : i32
    %c0_i32_1 = arith.constant 0 : i32
    return %c0_i32, %c0_i32_0 : i32, i32
  }
  func.func @transform_3(%arg0: i32) -> (i32, i32) {
    %c0_i32 = arith.constant 0 : i32
    %c0_i32_0 = arith.constant 0 : i32
    %c0_i32_1 = arith.constant 0 : i32
    return %c0_i32, %c0_i32_0 : i32, i32
  }
  func.func @transform_4(%arg0: i32) -> (i32, i32) {
    %c0_i32 = arith.constant 0 : i32
    %c0_i32_0 = arith.constant 0 : i32
    %c0_i32_1 = arith.constant 0 : i32
    return %c0_i32, %c0_i32_0 : i32, i32
  }
  func.func @transform_5(%arg0: i32) -> (i32, i32) {
    %c0_i32 = arith.constant 0 : i32
    %c0_i32_0 = arith.constant 0 : i32
    %c0_i32_1 = arith.constant 0 : i32
    return %c0_i32, %c0_i32_0 : i32, i32
  }
  func.func @transform_6(%arg0: i32) -> (i32, i32) {
    %c0_i32 = arith.constant 0 : i32
    %c0_i32_0 = arith.constant 0 : i32
    %c0_i32_1 = arith.constant 0 : i32
    return %c0_i32, %c0_i32_0 : i32, i32
  }
  func.func @transform_7(%arg0: i32) -> (i32, i32) {
    %c0_i32 = arith.constant 0 : i32
    %c0_i32_0 = arith.constant 0 : i32
    %c0_i32_1 = arith.constant 0 : i32
    return %c0_i32, %c0_i32_0 : i32, i32
  }
}

</mosaic_0001>

<bundles_post_ra>
// kernel: actor_forward.6
= control target key start
LH: loop header
LB: loop body
LE: loop exit
PB: predicated region body
PF: predicated region fallthrough
CT: control target
= control target key end

     0   :  { %s1478_s12 = smov 0   ;;  %s1812_s0 = inlined_call_operand.vmem [shape: bf16[800,256], index: 0, kind: input, shape index: {}]   ;;  %s1813_s1 = inlined_call_operand.vmem [shape: bf16[256,32], index: 1, kind: input, shape index: {}]   ;;  %s1814_s2 = inlined_call_operand.vmem [shape: f32[1,32], index: 2, kind: input, shape index: {}]   ;;  %s1815_s3 = inlined_call_operand.vmem [shape: bf16[800,32], index: 3, kind: output, shape index: {}]  }
   0x1 LB: > { %s1084_s13 = sadd.s32 4294967295, %s1456_s12   ;;  %p1088_p0 = scmp.ge.s32.totalorder %s1456_s12, 1  ;;  %s1456_s12 = sphi %s1478_s12, %s13_s12  }
   0x2   : > { %p139_p1 = scmp.lt.s32.totalorder %s1456_s12, 3 }
   0x4   : > { %p140_p2 = pnand %p1088_p0, %p139_p1 }
   0x5   : > { %s164_s26 = smul.u32 (!%p140_p2), 50, %s1084_s13 }
   0x6   : > { %143 = sbr.rel (%p140_p2) target bundleno = 384 (0x180), region = 32 }
   0x7   : > { %p165_p3 = scmp.lt.s32.totalorder (!%p140_p2), %s164_s26, 99 }
   0xb   : > { %v1416_v0 = vld [vmem:[%s1813_s1 + $0x38] sm:$0xff]  ;;  %v1415_v2 = vld [vmem:[%s1813_s1 + $0x30] sm:$0xff]  ;;  %v1414_v4 = vld [vmem:[%s1813_s1 + $0x28] sm:$0xff]  ;;  %s1817_s26 = smov (!%p165_p3, %s164_s26), 99  ;;  %vm977_vm0 = vcmask 257024  }
   0xc   : > { %v1424_v1 = vld [vmem:[%s1813_s1 + $0x78] sm:$0xff]  ;;  %609 = vmatpush.bf16.msra.mxu0 %v1416_v0  ;;  %1425 = vmatpush.bf16.msra.mxu2 %v1416_v0  ;;  %v1423_v3 = vld [vmem:[%s1813_s1 + $0x70] sm:$0xff]  ;;  %v1422_v5 = vld [vmem:[%s1813_s1 + $0x68] sm:$0xff]  ;;  %s1358_s13 = sshll.u32 %s1817_s26, 3  ;;  %s1091_s28 = sshll.u32 %s1817_s26, 2 }
   0xd   : > { %743 = vmatpush.bf16.msra.mxu1 %v1424_v1  ;;  %1433 = vmatpush.bf16.msra.mxu3 %v1424_v1  ;;  %v1413_v6 = vld [vmem:[%s1813_s1 + $0x20] sm:$0xff]  ;;  %v1412_v8 = vld [vmem:[%s1813_s1 + $0x18] sm:$0xff]  ;;  %v1411_v10 = vld [vmem:[%s1813_s1 + $0x10] sm:$0xff]  ;;  %s1531_s18 = scalar_lea.vmem %s1812_s0, %s1358_s13  ;;  %s1624_s4 = scalar_lea.vmem %s1815_s3, %s1091_s28 }
   0xe   : > { %v1421_v7 = vld [vmem:[%s1813_s1 + $0x60] sm:$0xff]  ;;  %v1420_v9 = vld [vmem:[%s1813_s1 + $0x58] sm:$0xff]  ;;  %v1419_v11 = vld [vmem:[%s1813_s1 + $0x50] sm:$0xff] }
   0xf   : > { %v1410_v12 = vld [vmem:[%s1813_s1 + $0x8] sm:$0xff]  ;;  %v1409_v14 = vld [vmem:[%s1813_s1] sm:$0xff]  ;;  %v1385_v22 = vld [vmem:[%s1531_s18 + $0xd4] sm:$0xf] }
  0x10   : > { %610 = vmatpush.bf16.msra.mxu0 %v1415_v2  ;;  %1426 = vmatpush.bf16.msra.mxu2 %v1415_v2  ;;  %v1418_v13 = vld [vmem:[%s1813_s1 + $0x48] sm:$0xff]  ;;  %v1417_v15 = vld [vmem:[%s1813_s1 + $0x40] sm:$0xff]  ;;  %v1200_v23 = vld [vmem:[%s1531_s18 + $0xd8] sm:$0xf0] }
  0x11   : > { %744 = vmatpush.bf16.msra.mxu1 %v1423_v3  ;;  %1434 = vmatpush.bf16.msra.mxu3 %v1423_v3  ;;  %v1094_v16 = vld [vmem:[%s1531_s18] sm:$0xf]  ;;  %v1360_v17 = vld [vmem:[%s1531_s18 + $0x4] sm:$0xf0]  ;;  %v1359_v20 = vld [vmem:[%s1531_s18 + $0x4] sm:$0xf]  ;;  %v1203_v27 = vor.u32 %v1385_v22, %v1200_v23 }
  0x12   : > { %v1190_v18 = vld [vmem:[%s1531_s18 + $0xc0] sm:$0xf]  ;;  %v1384_v19 = vld [vmem:[%s1531_s18 + $0xc4] sm:$0xf0]  ;;  %v1096_v21 = vld [vmem:[%s1531_s18 + $0x8] sm:$0xf0]  ;;  %v1095_v24 = vor.u32 %v1360_v17, %v1094_v16 }
  0x13   : > { %v1191_v25 = vor.u32 %v1384_v19, %v1190_v18  ;;  %v1099_v26 = vor.u32 %v1359_v20, %v1096_v21  ;;  %v1102_v28 = vld [vmem:[%s1531_s18 + $0x10] sm:$0xf]  ;;  %v1362_v29 = vld [vmem:[%s1531_s18 + $0x14] sm:$0xf0]  ;;  %v1361_v32 = vld [vmem:[%s1531_s18 + $0x14] sm:$0xf] }
  0x14   : > { %611 = vmatpush.bf16.msra.mxu0 %v1414_v4  ;;  %1427 = vmatpush.bf16.msra.mxu2 %v1414_v4  ;;  %v1198_v30 = vld [vmem:[%s1531_s18 + $0xd0] sm:$0xf]  ;;  %v1386_v31 = vld [vmem:[%s1531_s18 + $0xd4] sm:$0xf0]  ;;  %v1104_v33 = vld [vmem:[%s1531_s18 + $0x18] sm:$0xf0]  ;;  %v1103_v36 = vor.u32 %v1362_v29, %v1102_v28 }
  0x15   : > { %745 = vmatpush.bf16.msra.mxu1 %v1422_v5  ;;  %1435 = vmatpush.bf16.msra.mxu3 %v1422_v5  ;;  %v1387_v34 = vld [vmem:[%s1531_s18 + $0xe4] sm:$0xf]  ;;  %v1208_v35 = vld [vmem:[%s1531_s18 + $0xe8] sm:$0xf0]  ;;  %v1199_v37 = vor.u32 %v1386_v31, %v1198_v30  ;;  %v1107_v38 = vor.u32 %v1361_v32, %v1104_v33  ;;  %v1110_v40 = vld [vmem:[%s1531_s18 + $0x20] sm:$0xf] }
  0x16   : > { %v1211_v39 = vor.u32 %v1387_v34, %v1208_v35  ;;  %v1364_v41 = vld [vmem:[%s1531_s18 + $0x24] sm:$0xf0]  ;;  %v1206_v42 = vld [vmem:[%s1531_s18 + $0xe0] sm:$0xf]  ;;  %v1363_v44 = vld [vmem:[%s1531_s18 + $0x24] sm:$0xf] }
  0x17   : > { %v1388_v43 = vld [vmem:[%s1531_s18 + $0xe4] sm:$0xf0]  ;;  %v1112_v45 = vld [vmem:[%s1531_s18 + $0x28] sm:$0xf0]  ;;  %v1389_v46 = vld [vmem:[%s1531_s18 + $0xf4] sm:$0xf]  ;;  %v1111_v48 = vor.u32 %v1364_v41, %v1110_v40 }
  0x18   : > { %612 = vmatpush.bf16.msra.mxu0 %v1413_v6  ;;  %1428 = vmatpush.bf16.msra.mxu2 %v1413_v6  ;;  %v1216_v47 = vld [vmem:[%s1531_s18 + $0xf8] sm:$0xf0]  ;;  %v1207_v49 = vor.u32 %v1388_v43, %v1206_v42  ;;  %v1115_v50 = vor.u32 %v1363_v44, %v1112_v45  ;;  %v1118_v52 = vld [vmem:[%s1531_s18 + $0x30] sm:$0xf]  ;;  %v1366_v53 = vld [vmem:[%s1531_s18 + $0x34] sm:$0xf0] }
  0x19   : > { %746 = vmatpush.bf16.msra.mxu1 %v1421_v7  ;;  %1436 = vmatpush.bf16.msra.mxu3 %v1421_v7  ;;  %v1219_v51 = vor.u32 %v1389_v46, %v1216_v47  ;;  %v1214_v54 = vld [vmem:[%s1531_s18 + $0xf0] sm:$0xf]  ;;  %v1390_v55 = vld [vmem:[%s1531_s18 + $0xf4] sm:$0xf0]  ;;  %v1365_v56 = vld [vmem:[%s1531_s18 + $0x34] sm:$0xf]  ;;  %v1119_v60 = vor.u32 %v1366_v53, %v1118_v52 }
  0x1a   : > { %v1120_v57 = vld [vmem:[%s1531_s18 + $0x38] sm:$0xf0]  ;;  %v1391_v58 = vld [vmem:[%s1531_s18 + $0x104] sm:$0xf]  ;;  %v1224_v59 = vld [vmem:[%s1531_s18 + $0x108] sm:$0xf0]  ;;  %v1215_v61 = vor.u32 %v1390_v55, %v1214_v54 }
  0x1b   : > { %v1123_v62 = vor.u32 %v1365_v56, %v1120_v57  ;;  %v1227_v63 = vor.u32 %v1391_v58, %v1224_v59  ;;  %v1126_v0 = vld [vmem:[%s1531_s18 + $0x40] sm:$0xf]  ;;  %v1368_v1 = vld [vmem:[%s1531_s18 + $0x44] sm:$0xf0]  ;;  %v1367_v4 = vld [vmem:[%s1531_s18 + $0x44] sm:$0xf] }
  0x1c   : > { %613 = vmatpush.bf16.msra.mxu0 %v1412_v8  ;;  %1429 = vmatpush.bf16.msra.mxu2 %v1412_v8  ;;  %v1222_v2 = vld [vmem:[%s1531_s18 + $0x100] sm:$0xf]  ;;  %v1392_v3 = vld [vmem:[%s1531_s18 + $0x104] sm:$0xf0]  ;;  %v1128_v5 = vld [vmem:[%s1531_s18 + $0x48] sm:$0xf0]  ;;  %v1127_v8 = vor.u32 %v1368_v1, %v1126_v0 }
  0x1d   : > { %747 = vmatpush.bf16.msra.mxu1 %v1420_v9  ;;  %1437 = vmatpush.bf16.msra.mxu3 %v1420_v9  ;;  %v1393_v6 = vld [vmem:[%s1531_s18 + $0x114] sm:$0xf]  ;;  %v1232_v7 = vld [vmem:[%s1531_s18 + $0x118] sm:$0xf0]  ;;  %v1223_v9 = vor.u32 %v1392_v3, %v1222_v2  ;;  %v1395_v18 = vld [vmem:[%s1531_s18 + $0x124] sm:$0xf] }
  0x1e   : > { %v1369_v16 = vld [vmem:[%s1531_s18 + $0x54] sm:$0xf]  ;;  %v1136_v17 = vld [vmem:[%s1531_s18 + $0x58] sm:$0xf0]  ;;  %v1240_v19 = vld [vmem:[%s1531_s18 + $0x128] sm:$0xf0] }
  0x1f   : > { %v1139_v22 = vor.u32 %v1369_v16, %v1136_v17  ;;  %v1243_v23 = vor.u32 %v1395_v18, %v1240_v19  ;;  %v1371_v28 = vld [vmem:[%s1531_s18 + $0x64] sm:$0xf]  ;;  %v1144_v29 = vld [vmem:[%s1531_s18 + $0x68] sm:$0xf0]  ;;  %v1397_v30 = vld [vmem:[%s1531_s18 + $0x134] sm:$0xf] }
  0x20   : > { %614 = vmatpush.bf16.msra.mxu0 %v1411_v10  ;;  %1430 = vmatpush.bf16.msra.mxu2 %v1411_v10  ;;  %v1131_v10 = vor.u32 %v1367_v4, %v1128_v5  ;;  %v1248_v31 = vld [vmem:[%s1531_s18 + $0x138] sm:$0xf0]  ;;  %v1147_v34 = vor.u32 %v1371_v28, %v1144_v29  ;;  %v1373_v40 = vld [vmem:[%s1531_s18 + $0x74] sm:$0xf]  ;;  %v1399_v42 = vld [vmem:[%s1531_s18 + $0x144] sm:$0xf] }
  0x21   : > { %748 = vmatpush.bf16.msra.mxu1 %v1419_v11  ;;  %1438 = vmatpush.bf16.msra.mxu3 %v1419_v11  ;;  %v1235_v11 = vor.u32 %v1393_v6, %v1232_v7  ;;  %v1251_v35 = vor.u32 %v1397_v30, %v1248_v31  ;;  %v1152_v41 = vld [vmem:[%s1531_s18 + $0x78] sm:$0xf0]  ;;  %v1256_v43 = vld [vmem:[%s1531_s18 + $0x148] sm:$0xf0]  ;;  %v1400_v52 = vld [vmem:[%s1531_s18 + $0x144] sm:$0xf0] }
  0x22   : > { %v1155_v46 = vor.u32 %v1373_v40, %v1152_v41  ;;  %v1259_v47 = vor.u32 %v1399_v42, %v1256_v43  ;;  %v1375_v53 = vld [vmem:[%s1531_s18 + $0x84] sm:$0xf]  ;;  %v1160_v54 = vld [vmem:[%s1531_s18 + $0x88] sm:$0xf0]  ;;  %v1401_v55 = vld [vmem:[%s1531_s18 + $0x154] sm:$0xf] }
  0x23   : > { %v1264_v56 = vld [vmem:[%s1531_s18 + $0x158] sm:$0xf0]  ;;  %v1403_v16 = vld [vmem:[%s1531_s18 + $0x164] sm:$0xf]  ;;  %v1272_v17 = vld [vmem:[%s1531_s18 + $0x168] sm:$0xf0] }
  0x24   : > { %615 = vmatpush.bf16.msra.mxu0 %v1410_v12  ;;  %1431 = vmatpush.bf16.msra.mxu2 %v1410_v12  ;;  %v1134_v12 = vld [vmem:[%s1531_s18 + $0x50] sm:$0xf]  ;;  %v1380_v41 = vld [vmem:[%s1531_s18 + $0xa4] sm:$0xf0]  ;;  %v1270_v42 = vld [vmem:[%s1531_s18 + $0x160] sm:$0xf] }
  0x25   : > { %749 = vmatpush.bf16.msra.mxu1 %v1418_v13  ;;  %1439 = vmatpush.bf16.msra.mxu3 %v1418_v13  ;;  %v1370_v13 = vld [vmem:[%s1531_s18 + $0x54] sm:$0xf0]  ;;  %v1404_v43 = vld [vmem:[%s1531_s18 + $0x164] sm:$0xf0] }
  0x26   : > { %v1135_v20 = vor.u32 %v1370_v13, %v1134_v12  ;;  %v1402_v12 = vld [vmem:[%s1531_s18 + $0x154] sm:$0xf0]  ;;  %v1377_v13 = vld [vmem:[%s1531_s18 + $0x94] sm:$0xf] }
  0x28   : > { %616 = vmatpush.bf16.msra.mxu0 %v1409_v14  ;;  %1432 = vmatpush.bf16.msra.mxu2 %v1409_v14  ;;  %v1230_v14 = vld [vmem:[%s1531_s18 + $0x110] sm:$0xf] }
  0x29   : > { %750 = vmatpush.bf16.msra.mxu1 %v1417_v15  ;;  %1440 = vmatpush.bf16.msra.mxu3 %v1417_v15  ;;  %v1394_v15 = vld [vmem:[%s1531_s18 + $0x114] sm:$0xf0] }
  0x2a   : > { %v1231_v21 = vor.u32 %v1394_v15, %v1230_v14  ;;  %v1168_v14 = vld [vmem:[%s1531_s18 + $0x98] sm:$0xf0] }
  0x2b   : > { %617 = vmatmul.bf16.vlgmr.msra.gmra.mxu0 %v1095_v24  ;;  %677 = vmatmul.bf16.vlgmr.msra.gmra.mxu2 %v1191_v25  ;;  %v1142_v24 = vld [vmem:[%s1531_s18 + $0x60] sm:$0xf]  ;;  %v1372_v25 = vld [vmem:[%s1531_s18 + $0x64] sm:$0xf0] }
  0x2c   : > { %751 = vmatmul.bf16.vlgmr.msra.gmra.mxu1 %v1099_v26  ;;  %816 = vmatmul.bf16.vlgmr.msra.gmra.mxu3 %v1203_v27  ;;  %v1238_v26 = vld [vmem:[%s1531_s18 + $0x120] sm:$0xf]  ;;  %v1396_v27 = vld [vmem:[%s1531_s18 + $0x124] sm:$0xf0]  ;;  %v1143_v32 = vor.u32 %v1372_v25, %v1142_v24  ;;  %v1171_v24 = vor.u32 %v1377_v13, %v1168_v14  ;;  %v1275_v25 = vor.u32 %v1403_v16, %v1272_v17  ;;  %v1278_v16 = vld [vmem:[%s1531_s18 + $0x170] sm:$0xf] }
  0x2d   : > { %v1239_v33 = vor.u32 %v1396_v27, %v1238_v26  ;;  %v1406_v17 = vld [vmem:[%s1531_s18 + $0x174] sm:$0xf0] }
  0x3b   : > { %622 = vmatmul.bf16.gmra.mxu0 %v1103_v36  ;;  %682 = vmatmul.bf16.gmra.mxu2 %v1199_v37  ;;  %v1150_v36 = vld [vmem:[%s1531_s18 + $0x70] sm:$0xf]  ;;  %v1374_v37 = vld [vmem:[%s1531_s18 + $0x74] sm:$0xf0] }
  0x3c   : > { %756 = vmatmul.bf16.gmra.mxu1 %v1107_v38  ;;  %821 = vmatmul.bf16.gmra.mxu3 %v1211_v39  ;;  %v1246_v38 = vld [vmem:[%s1531_s18 + $0x130] sm:$0xf]  ;;  %v1398_v39 = vld [vmem:[%s1531_s18 + $0x134] sm:$0xf0]  ;;  %v1151_v44 = vor.u32 %v1374_v37, %v1150_v36 }
  0x3d   : > { %v1247_v45 = vor.u32 %v1398_v39, %v1246_v38  ;;  %v1174_v38 = vld [vmem:[%s1531_s18 + $0xa0] sm:$0xf] }
  0x4b   : > { %627 = vmatmul.bf16.gmra.mxu0 %v1111_v48  ;;  %687 = vmatmul.bf16.gmra.mxu2 %v1207_v49  ;;  %v1609_v48 = vld [vmem:[%s1814_s2] ss:$0 sm:$0xff] }
  0x4c   : > { %761 = vmatmul.bf16.gmra.mxu1 %v1115_v50  ;;  %826 = vmatmul.bf16.gmra.mxu3 %v1219_v51  ;;  %v1158_v49 = vld [vmem:[%s1531_s18 + $0x80] sm:$0xf]  ;;  %v1376_v50 = vld [vmem:[%s1531_s18 + $0x84] sm:$0xf0] }
  0x4d   : > { %v1254_v51 = vld [vmem:[%s1531_s18 + $0x140] sm:$0xf]  ;;  %v1159_v57 = vor.u32 %v1376_v50, %v1158_v49  ;;  %v1405_v49 = vld [vmem:[%s1531_s18 + $0x174] sm:$0xf]  ;;  %v1280_v50 = vld [vmem:[%s1531_s18 + $0x178] sm:$0xf0] }
  0x4e   : > { %v1255_v58 = vor.u32 %v1400_v52, %v1254_v51 }
  0x5b   : > { %632 = vmatmul.bf16.gmra.mxu0 %v1119_v60  ;;  %692 = vmatmul.bf16.gmra.mxu2 %v1215_v61  ;;  %v1163_v60 = vor.u32 %v1375_v53, %v1160_v54  ;;  %v1267_v61 = vor.u32 %v1401_v55, %v1264_v56  ;;  %v1175_v54 = vor.u32 %v1380_v41, %v1174_v38 }
  0x5c   : > { %766 = vmatmul.bf16.gmra.mxu1 %v1123_v62  ;;  %831 = vmatmul.bf16.gmra.mxu3 %v1227_v63  ;;  %v1271_v55 = vor.u32 %v1404_v43, %v1270_v42 }
  0x6b   : > { %637 = vmatmul.bf16.gmra.mxu0 %v1127_v8  ;;  %697 = vmatmul.bf16.gmra.mxu2 %v1223_v9  ;;  %v1166_v9 = vld [vmem:[%s1531_s18 + $0x90] sm:$0xf] }
  0x6c   : > { %771 = vmatmul.bf16.gmra.mxu1 %v1131_v10  ;;  %836 = vmatmul.bf16.gmra.mxu3 %v1235_v11  ;;  %v1378_v10 = vld [vmem:[%s1531_s18 + $0x94] sm:$0xf0]  ;;  %v1262_v11 = vld [vmem:[%s1531_s18 + $0x150] sm:$0xf] }
  0x7b   : > { %642 = vmatmul.bf16.gmra.mxu0 %v1135_v20  ;;  %702 = vmatmul.bf16.gmra.mxu2 %v1231_v21  ;;  %v1167_v20 = vor.u32 %v1378_v10, %v1166_v9  ;;  %v1263_v21 = vor.u32 %v1402_v12, %v1262_v11  ;;  %v1182_v12 = vld [vmem:[%s1531_s18 + $0xb0] sm:$0xf] }
  0x7c   : > { %776 = vmatmul.bf16.gmra.mxu1 %v1139_v22  ;;  %841 = vmatmul.bf16.gmra.mxu3 %v1243_v23 }
  0x8b   : > { %647 = vmatmul.bf16.gmra.mxu0 %v1143_v32  ;;  %707 = vmatmul.bf16.gmra.mxu2 %v1239_v33 }
  0x8c   : > { %781 = vmatmul.bf16.gmra.mxu1 %v1147_v34  ;;  %846 = vmatmul.bf16.gmra.mxu3 %v1251_v35 }
  0x9b   : > { %652 = vmatmul.bf16.gmra.mxu0 %v1151_v44  ;;  %712 = vmatmul.bf16.gmra.mxu2 %v1247_v45  ;;  %v1379_v44 = vld [vmem:[%s1531_s18 + $0xa4] sm:$0xf]  ;;  %v1176_v45 = vld [vmem:[%s1531_s18 + $0xa8] sm:$0xf0] }
  0x9c   : > { %786 = vmatmul.bf16.gmra.mxu1 %v1155_v46  ;;  %851 = vmatmul.bf16.gmra.mxu3 %v1259_v47 }
  0xa8   : > { %v618_v59 = vpop.f32.mrf.mxu0 }
  0xa9   : > { %v619_v62 = vadd.f32 %v1609_v48, %v618_v59  ;;  %v752_v63 = vpop.f32.mrf.mxu1  ;;  %v1283_v59 = vor.u32 %v1405_v49, %v1280_v50 }
  0xab   : > { %v753_v0 = vadd.f32 %v752_v63, %v619_v62  ;;  %657 = vmatmul.bf16.gmra.mxu0 %v1159_v57  ;;  %717 = vmatmul.bf16.gmra.mxu2 %v1255_v58  ;;  %v1179_v58 = vor.u32 %v1379_v44, %v1176_v45 }
  0xac   : > { %791 = vmatmul.bf16.gmra.mxu1 %v1163_v60  ;;  %856 = vmatmul.bf16.gmra.mxu3 %v1267_v61 }
  0xad   : > { %v877_v1 = vmax.f32 %v753_v0, 0.0 }
  0xae   : > { %v1626_v2 = vpop.f32.mrf.mxu2 }
  0xaf   : > { %v927_v3 = vpack.c.bf16 %v877_v1, %v877_v1  ;;  %v817_v4 = vpop.f32.mrf.mxu3 }
  0xb0   : > { %v620_v5 = vpop.f32.mrf.mxu0 }
  0xb1   : > { %978 = vst.msk [vmem:[%s1624_s4] sm:$0xf] %vm977_vm0, %v927_v3  ;;  %v621_v6 = vadd.f32 %v1609_v48, %v620_v5  ;;  %v754_v7 = vpop.f32.mrf.mxu1 }
  0xb3   : > { %v755_v8 = vadd.f32 %v754_v7, %v621_v6 }
  0xb5   : > { %v878_v15 = vmax.f32 %v755_v8, 0.0 }
  0xb6   : > { %v1639_v18 = vpop.f32.mrf.mxu2 }
  0xb7   : > { %v928_v19 = vpack.c.bf16 %v878_v15, %v878_v15  ;;  %v819_v22 = vpop.f32.mrf.mxu3  ;;  %v1382_v15 = vld [vmem:[%s1531_s18 + $0xb4] sm:$0xf0] }
  0xb8   : > { %v623_v23 = vpop.f32.mrf.mxu0 }
  0xb9   : > { %979 = vst.msk [vmem:[%s1624_s4 + $0x4] sm:$0xf] %vm977_vm0, %v928_v19  ;;  %v624_v26 = vadd.f32 %v1609_v48, %v623_v23  ;;  %v757_v27 = vpop.f32.mrf.mxu1  ;;  %v1381_v19 = vld [vmem:[%s1531_s18 + $0xb4] sm:$0xf]  ;;  %v1407_v23 = vld [vmem:[%s1531_s18 + $0x184] sm:$0xf] }
  0xbb   : > { %v758_v28 = vadd.f32 %v757_v27, %v624_v26  ;;  %662 = vmatmul.bf16.gmra.mxu0 %v1167_v20  ;;  %722 = vmatmul.bf16.gmra.mxu2 %v1263_v21  ;;  %v1184_v20 = vld [vmem:[%s1531_s18 + $0xb8] sm:$0xf0] }
  0xbc   : > { %796 = vmatmul.bf16.gmra.mxu1 %v1171_v24  ;;  %861 = vmatmul.bf16.gmra.mxu3 %v1275_v25  ;;  %v1288_v24 = vld [vmem:[%s1531_s18 + $0x188] sm:$0xf0] }
  0xbd   : > { %v879_v29 = vmax.f32 %v758_v28, 0.0  ;;  %v1183_v28 = vor.u32 %v1382_v15, %v1182_v12 }
  0xbe   : > { %v683_v30 = vpop.f32.mrf.mxu2 }
  0xbf   : > { %v929_v31 = vpack.c.bf16 %v879_v29, %v879_v29  ;;  %v684_v32 = vadd.f32 %v1609_v48, %v683_v30  ;;  %v822_v33 = vpop.f32.mrf.mxu3  ;;  %v1279_v29 = vor.u32 %v1406_v17, %v1278_v16 }
  0xc0   : > { %v625_v34 = vpop.f32.mrf.mxu0 }
  0xc1   : > { %980 = vst.msk [vmem:[%s1624_s4 + $0x8] sm:$0xf] %vm977_vm0, %v929_v31  ;;  %v818_v35 = vadd.f32 %v817_v4, %v684_v32  ;;  %v626_v36 = vadd.f32 %v1609_v48, %v625_v34  ;;  %v759_v37 = vpop.f32.mrf.mxu1  ;;  %v1187_v32 = vor.u32 %v1381_v19, %v1184_v20 }
  0xc3   : > { %v903_v39 = vmax.f32 %v818_v35, 0.0  ;;  %v760_v40 = vadd.f32 %v759_v37, %v626_v36 }
  0xc5   : > { %v953_v46 = vpack.c.bf16 %v903_v39, %v903_v39  ;;  %v880_v47 = vmax.f32 %v760_v40, 0.0 }
  0xc6   : > { %v685_v51 = vpop.f32.mrf.mxu2 }
  0xc7   : > { %1004 = vst.msk [vmem:[%s1624_s4 + $0x68] sm:$0xf] %vm977_vm0, %v953_v46  ;;  %v930_v52 = vpack.c.bf16 %v880_v47, %v880_v47  ;;  %v686_v53 = vadd.f32 %v1609_v48, %v685_v51  ;;  %v824_v56 = vpop.f32.mrf.mxu3 }
  0xc8   : > { %v628_v57 = vpop.f32.mrf.mxu0 }
  0xc9   : > { %981 = vst.msk [vmem:[%s1624_s4 + $0xc] sm:$0xf] %vm977_vm0, %v930_v52  ;;  %v820_v60 = vadd.f32 %v819_v22, %v686_v53  ;;  %v629_v61 = vadd.f32 %v1609_v48, %v628_v57  ;;  %v762_v62 = vpop.f32.mrf.mxu1  ;;  %v1286_v52 = vld [vmem:[%s1531_s18 + $0x180] sm:$0xf]  ;;  %v1408_v53 = vld [vmem:[%s1531_s18 + $0x184] sm:$0xf0] }
  0xca   : > { %v1192_v57 = vld [vmem:[%s1531_s18 + $0xc8] sm:$0xf0] }
  0xcb   : > { %v904_v63 = vmax.f32 %v820_v60, 0.0  ;;  %v763_v0 = vadd.f32 %v762_v62, %v629_v61  ;;  %667 = vmatmul.bf16.gmra.mxu0 %v1175_v54  ;;  %727 = vmatmul.bf16.gmra.mxu2 %v1271_v55  ;;  %v1287_v61 = vor.u32 %v1408_v53, %v1286_v52 }
  0xcc   : > { %801 = vmatmul.bf16.gmra.mxu1 %v1179_v58  ;;  %866 = vmatmul.bf16.gmra.mxu3 %v1283_v59 }
  0xcd   : > { %v954_v1 = vpack.c.bf16 %v904_v63, %v904_v63  ;;  %v881_v3 = vmax.f32 %v763_v0, 0.0 }
  0xce   : > { %v688_v4 = vpop.f32.mrf.mxu2 }
  0xcf   : > { %1005 = vst.msk [vmem:[%s1624_s4 + $0x6c] sm:$0xf] %vm977_vm0, %v954_v1  ;;  %v931_v5 = vpack.c.bf16 %v881_v3, %v881_v3  ;;  %v689_v6 = vadd.f32 %v1609_v48, %v688_v4  ;;  %v827_v7 = vpop.f32.mrf.mxu3 }
  0xd0   : > { %v630_v8 = vpop.f32.mrf.mxu0 }
  0xd1   : > { %982 = vst.msk [vmem:[%s1624_s4 + $0x10] sm:$0xf] %vm977_vm0, %v931_v5  ;;  %v823_v9 = vadd.f32 %v822_v33, %v689_v6  ;;  %v631_v10 = vadd.f32 %v1609_v48, %v630_v8  ;;  %v764_v11 = vpop.f32.mrf.mxu1  ;;  %v1291_v33 = vor.u32 %v1407_v23, %v1288_v24 }
  0xd3   : > { %v905_v13 = vmax.f32 %v823_v9, 0.0  ;;  %v765_v14 = vadd.f32 %v764_v11, %v631_v10 }
  0xd5   : > { %v955_v21 = vpack.c.bf16 %v905_v13, %v905_v13  ;;  %v882_v22 = vmax.f32 %v765_v14, 0.0 }
  0xd6   : > { %v690_v25 = vpop.f32.mrf.mxu2 }
  0xd7   : > { %1006 = vst.msk [vmem:[%s1624_s4 + $0x70] sm:$0xf] %vm977_vm0, %v955_v21  ;;  %v932_v26 = vpack.c.bf16 %v882_v22, %v882_v22  ;;  %v691_v27 = vadd.f32 %v1609_v48, %v690_v25  ;;  %v829_v30 = vpop.f32.mrf.mxu3 }
  0xd8   : > { %v633_v31 = vpop.f32.mrf.mxu0 }
  0xd9   : > { %983 = vst.msk [vmem:[%s1624_s4 + $0x14] sm:$0xf] %vm977_vm0, %v932_v26  ;;  %v825_v34 = vadd.f32 %v824_v56, %v691_v27  ;;  %v634_v35 = vadd.f32 %v1609_v48, %v633_v31  ;;  %v767_v36 = vpop.f32.mrf.mxu1  ;;  %v1383_v56 = vld [vmem:[%s1531_s18 + $0xc4] sm:$0xf] }
  0xda   : > { %v1195_v0 = vor.u32 %v1383_v56, %v1192_v57 }
  0xdb   : > { %v906_v37 = vmax.f32 %v825_v34, 0.0  ;;  %v768_v38 = vadd.f32 %v767_v36, %v634_v35  ;;  %672 = vmatmul.bf16.gmra.mxu0 %v1183_v28  ;;  %732 = vmatmul.bf16.gmra.mxu2 %v1279_v29 }
  0xdc   : > { %806 = vmatmul.bf16.gmra.mxu1 %v1187_v32  ;;  %871 = vmatmul.bf16.gmra.mxu3 %v1291_v33 }
  0xdd   : > { %v956_v39 = vpack.c.bf16 %v906_v37, %v906_v37  ;;  %v883_v40 = vmax.f32 %v768_v38, 0.0 }
  0xde   : > { %v693_v41 = vpop.f32.mrf.mxu2 }
  0xdf   : > { %1007 = vst.msk [vmem:[%s1624_s4 + $0x74] sm:$0xf] %vm977_vm0, %v956_v39  ;;  %v933_v42 = vpack.c.bf16 %v883_v40, %v883_v40  ;;  %v694_v43 = vadd.f32 %v1609_v48, %v693_v41  ;;  %v832_v44 = vpop.f32.mrf.mxu3 }
  0xe0   : > { %v635_v45 = vpop.f32.mrf.mxu0 }
  0xe1   : > { %984 = vst.msk [vmem:[%s1624_s4 + $0x18] sm:$0xf] %vm977_vm0, %v933_v42  ;;  %v828_v46 = vadd.f32 %v827_v7, %v694_v43  ;;  %v636_v47 = vadd.f32 %v1609_v48, %v635_v45  ;;  %v769_v49 = vpop.f32.mrf.mxu1 }
  0xe3   : > { %v907_v50 = vmax.f32 %v828_v46, 0.0  ;;  %v770_v51 = vadd.f32 %v769_v49, %v636_v47 }
  0xe5   : > { %v957_v54 = vpack.c.bf16 %v907_v50, %v907_v50  ;;  %v884_v55 = vmax.f32 %v770_v51, 0.0 }
  0xe6   : > { %v695_v58 = vpop.f32.mrf.mxu2 }
  0xe7   : > { %1008 = vst.msk [vmem:[%s1624_s4 + $0x78] sm:$0xf] %vm977_vm0, %v957_v54  ;;  %v934_v59 = vpack.c.bf16 %v884_v55, %v884_v55  ;;  %v696_v60 = vadd.f32 %v1609_v48, %v695_v58  ;;  %v834_v62 = vpop.f32.mrf.mxu3 }
  0xe8   : > { %v638_v63 = vpop.f32.mrf.mxu0 }
  0xe9   : > { %985 = vst.msk [vmem:[%s1624_s4 + $0x1c] sm:$0xf] %vm977_vm0, %v934_v59  ;;  %v830_v1 = vadd.f32 %v829_v30, %v696_v60  ;;  %v639_v3 = vadd.f32 %v1609_v48, %v638_v63  ;;  %v772_v4 = vpop.f32.mrf.mxu1 }
  0xeb   : > { %v908_v5 = vmax.f32 %v830_v1, 0.0  ;;  %v773_v6 = vadd.f32 %v772_v4, %v639_v3  ;;  %737 = vmatmul.bf16.gmra.mxu2 %v1287_v61 }
  0xec   : > { %811 = vmatmul.bf16.gmra.mxu1 %v1195_v0 }
  0xed   : > { %v958_v7 = vpack.c.bf16 %v908_v5, %v908_v5  ;;  %v885_v8 = vmax.f32 %v773_v6, 0.0 }
  0xee   : > { %v698_v9 = vpop.f32.mrf.mxu2 }
  0xef   : > { %1009 = vst.msk [vmem:[%s1624_s4 + $0x7c] sm:$0xf] %vm977_vm0, %v958_v7  ;;  %v935_v10 = vpack.c.bf16 %v885_v8, %v885_v8  ;;  %v699_v11 = vadd.f32 %v1609_v48, %v698_v9  ;;  %v837_v12 = vpop.f32.mrf.mxu3 }
  0xf0   : > { %v640_v13 = vpop.f32.mrf.mxu0 }
  0xf1   : > { %986 = vst.msk [vmem:[%s1624_s4 + $0x20] sm:$0xf] %vm977_vm0, %v935_v10  ;;  %v833_v14 = vadd.f32 %v832_v44, %v699_v11  ;;  %v641_v15 = vadd.f32 %v1609_v48, %v640_v13  ;;  %v774_v16 = vpop.f32.mrf.mxu1 }
  0xf3   : > { %v909_v17 = vmax.f32 %v833_v14, 0.0  ;;  %v775_v19 = vadd.f32 %v774_v16, %v641_v15 }
  0xf5   : > { %v959_v20 = vpack.c.bf16 %v909_v17, %v909_v17  ;;  %v886_v21 = vmax.f32 %v775_v19, 0.0 }
  0xf6   : > { %v700_v22 = vpop.f32.mrf.mxu2 }
  0xf7   : > { %1010 = vst.msk [vmem:[%s1624_s4 + $0x80] sm:$0xf] %vm977_vm0, %v959_v20  ;;  %v936_v23 = vpack.c.bf16 %v886_v21, %v886_v21  ;;  %v701_v24 = vadd.f32 %v1609_v48, %v700_v22  ;;  %v839_v25 = vpop.f32.mrf.mxu3 }
  0xf8   : > { %v643_v26 = vpop.f32.mrf.mxu0 }
  0xf9   : > { %987 = vst.msk [vmem:[%s1624_s4 + $0x24] sm:$0xf] %vm977_vm0, %v936_v23  ;;  %v835_v27 = vadd.f32 %v834_v62, %v701_v24  ;;  %v644_v28 = vadd.f32 %v1609_v48, %v643_v26  ;;  %v777_v29 = vpop.f32.mrf.mxu1 }
  0xfb   : > { %v910_v30 = vmax.f32 %v835_v27, 0.0  ;;  %v778_v31 = vadd.f32 %v777_v29, %v644_v28 }
  0xfd   : > { %v960_v32 = vpack.c.bf16 %v910_v30, %v910_v30  ;;  %v887_v33 = vmax.f32 %v778_v31, 0.0 }
  0xfe   : > { %v703_v34 = vpop.f32.mrf.mxu2 }
  0xff   : > { %1011 = vst.msk [vmem:[%s1624_s4 + $0x84] sm:$0xf] %vm977_vm0, %v960_v32  ;;  %v937_v35 = vpack.c.bf16 %v887_v33, %v887_v33  ;;  %v704_v36 = vadd.f32 %v1609_v48, %v703_v34  ;;  %v842_v37 = vpop.f32.mrf.mxu3 }
 0x100   : > { %v645_v38 = vpop.f32.mrf.mxu0 }
 0x101   : > { %988 = vst.msk [vmem:[%s1624_s4 + $0x28] sm:$0xf] %vm977_vm0, %v937_v35  ;;  %v838_v39 = vadd.f32 %v837_v12, %v704_v36  ;;  %v646_v40 = vadd.f32 %v1609_v48, %v645_v38  ;;  %v779_v41 = vpop.f32.mrf.mxu1 }
 0x103   : > { %v911_v42 = vmax.f32 %v838_v39, 0.0  ;;  %v780_v43 = vadd.f32 %v779_v41, %v646_v40 }
 0x105   : > { %v961_v44 = vpack.c.bf16 %v911_v42, %v911_v42  ;;  %v888_v45 = vmax.f32 %v780_v43, 0.0 }
 0x106   : > { %v705_v46 = vpop.f32.mrf.mxu2 }
 0x107   : > { %1012 = vst.msk [vmem:[%s1624_s4 + $0x88] sm:$0xf] %vm977_vm0, %v961_v44  ;;  %v938_v47 = vpack.c.bf16 %v888_v45, %v888_v45  ;;  %v706_v49 = vadd.f32 %v1609_v48, %v705_v46  ;;  %v844_v50 = vpop.f32.mrf.mxu3 }
 0x108   : > { %v648_v51 = vpop.f32.mrf.mxu0 }
 0x109   : > { %989 = vst.msk [vmem:[%s1624_s4 + $0x2c] sm:$0xf] %vm977_vm0, %v938_v47  ;;  %v840_v52 = vadd.f32 %v839_v25, %v706_v49  ;;  %v649_v53 = vadd.f32 %v1609_v48, %v648_v51  ;;  %v782_v54 = vpop.f32.mrf.mxu1 }
 0x10b   : > { %v912_v55 = vmax.f32 %v840_v52, 0.0  ;;  %v783_v56 = vadd.f32 %v782_v54, %v649_v53 }
 0x10d   : > { %v962_v57 = vpack.c.bf16 %v912_v55, %v912_v55  ;;  %v889_v58 = vmax.f32 %v783_v56, 0.0 }
 0x10e   : > { %v708_v59 = vpop.f32.mrf.mxu2 }
 0x10f   : > { %1013 = vst.msk [vmem:[%s1624_s4 + $0x8c] sm:$0xf] %vm977_vm0, %v962_v57  ;;  %v939_v60 = vpack.c.bf16 %v889_v58, %v889_v58  ;;  %v709_v61 = vadd.f32 %v1609_v48, %v708_v59  ;;  %v847_v62 = vpop.f32.mrf.mxu3 }
 0x110   : > { %v650_v63 = vpop.f32.mrf.mxu0 }
 0x111   : > { %990 = vst.msk [vmem:[%s1624_s4 + $0x30] sm:$0xf] %vm977_vm0, %v939_v60  ;;  %v843_v0 = vadd.f32 %v842_v37, %v709_v61  ;;  %v651_v1 = vadd.f32 %v1609_v48, %v650_v63  ;;  %v784_v3 = vpop.f32.mrf.mxu1 }
 0x113   : > { %v913_v4 = vmax.f32 %v843_v0, 0.0  ;;  %v785_v5 = vadd.f32 %v784_v3, %v651_v1 }
 0x115   : > { %v963_v6 = vpack.c.bf16 %v913_v4, %v913_v4  ;;  %v890_v7 = vmax.f32 %v785_v5, 0.0 }
 0x116   : > { %v710_v8 = vpop.f32.mrf.mxu2 }
 0x117   : > { %1014 = vst.msk [vmem:[%s1624_s4 + $0x90] sm:$0xf] %vm977_vm0, %v963_v6  ;;  %v940_v9 = vpack.c.bf16 %v890_v7, %v890_v7  ;;  %v711_v10 = vadd.f32 %v1609_v48, %v710_v8  ;;  %v849_v11 = vpop.f32.mrf.mxu3 }
 0x118   : > { %v653_v12 = vpop.f32.mrf.mxu0 }
 0x119   : > { %991 = vst.msk [vmem:[%s1624_s4 + $0x34] sm:$0xf] %vm977_vm0, %v940_v9  ;;  %v845_v13 = vadd.f32 %v844_v50, %v711_v10  ;;  %v654_v14 = vadd.f32 %v1609_v48, %v653_v12  ;;  %v787_v15 = vpop.f32.mrf.mxu1 }
 0x11b   : > { %v914_v16 = vmax.f32 %v845_v13, 0.0  ;;  %v788_v17 = vadd.f32 %v787_v15, %v654_v14 }
 0x11d   : > { %v964_v19 = vpack.c.bf16 %v914_v16, %v914_v16  ;;  %v891_v20 = vmax.f32 %v788_v17, 0.0 }
 0x11e   : > { %v713_v21 = vpop.f32.mrf.mxu2 }
 0x11f   : > { %1015 = vst.msk [vmem:[%s1624_s4 + $0x94] sm:$0xf] %vm977_vm0, %v964_v19  ;;  %v941_v22 = vpack.c.bf16 %v891_v20, %v891_v20  ;;  %v714_v23 = vadd.f32 %v1609_v48, %v713_v21  ;;  %v852_v24 = vpop.f32.mrf.mxu3 }
 0x120   : > { %v655_v25 = vpop.f32.mrf.mxu0 }
 0x121   : > { %992 = vst.msk [vmem:[%s1624_s4 + $0x38] sm:$0xf] %vm977_vm0, %v941_v22  ;;  %v848_v26 = vadd.f32 %v847_v62, %v714_v23  ;;  %v656_v27 = vadd.f32 %v1609_v48, %v655_v25  ;;  %v789_v28 = vpop.f32.mrf.mxu1 }
 0x123   : > { %v915_v29 = vmax.f32 %v848_v26, 0.0  ;;  %v790_v30 = vadd.f32 %v789_v28, %v656_v27 }
 0x125   : > { %v965_v31 = vpack.c.bf16 %v915_v29, %v915_v29  ;;  %v892_v32 = vmax.f32 %v790_v30, 0.0 }
 0x126   : > { %v715_v33 = vpop.f32.mrf.mxu2 }
 0x127   : > { %1016 = vst.msk [vmem:[%s1624_s4 + $0x98] sm:$0xf] %vm977_vm0, %v965_v31  ;;  %v942_v34 = vpack.c.bf16 %v892_v32, %v892_v32  ;;  %v716_v35 = vadd.f32 %v1609_v48, %v715_v33  ;;  %v854_v37 = vpop.f32.mrf.mxu3 }
 0x128   : > { %v658_v36 = vpop.f32.mrf.mxu0 }
 0x129   : > { %993 = vst.msk [vmem:[%s1624_s4 + $0x3c] sm:$0xf] %vm977_vm0, %v942_v34  ;;  %v850_v38 = vadd.f32 %v849_v11, %v716_v35  ;;  %v659_v39 = vadd.f32 %v1609_v48, %v658_v36  ;;  %v792_v40 = vpop.f32.mrf.mxu1 }
 0x12b   : > { %v916_v41 = vmax.f32 %v850_v38, 0.0  ;;  %v793_v42 = vadd.f32 %v792_v40, %v659_v39 }
 0x12d   : > { %v966_v43 = vpack.c.bf16 %v916_v41, %v916_v41  ;;  %v893_v44 = vmax.f32 %v793_v42, 0.0 }
 0x12e   : > { %v718_v45 = vpop.f32.mrf.mxu2 }
 0x12f   : > { %1017 = vst.msk [vmem:[%s1624_s4 + $0x9c] sm:$0xf] %vm977_vm0, %v966_v43  ;;  %v943_v46 = vpack.c.bf16 %v893_v44, %v893_v44  ;;  %v719_v47 = vadd.f32 %v1609_v48, %v718_v45  ;;  %v857_v53 = vpop.f32.mrf.mxu3 }
 0x130   : > { %v660_v49 = vpop.f32.mrf.mxu0 }
 0x131   : > { %994 = vst.msk [vmem:[%s1624_s4 + $0x40] sm:$0xf] %vm977_vm0, %v943_v46  ;;  %v853_v50 = vadd.f32 %v852_v24, %v719_v47  ;;  %v661_v51 = vadd.f32 %v1609_v48, %v660_v49  ;;  %v794_v52 = vpop.f32.mrf.mxu1 }
 0x133   : > { %v917_v54 = vmax.f32 %v853_v50, 0.0  ;;  %v795_v55 = vadd.f32 %v794_v52, %v661_v51 }
 0x135   : > { %v967_v56 = vpack.c.bf16 %v917_v54, %v917_v54  ;;  %v894_v57 = vmax.f32 %v795_v55, 0.0 }
 0x136   : > { %v720_v58 = vpop.f32.mrf.mxu2 }
 0x137   : > { %1018 = vst.msk [vmem:[%s1624_s4 + $0xa0] sm:$0xf] %vm977_vm0, %v967_v56  ;;  %v944_v59 = vpack.c.bf16 %v894_v57, %v894_v57  ;;  %v721_v60 = vadd.f32 %v1609_v48, %v720_v58  ;;  %v859_v4 = vpop.f32.mrf.mxu3 }
 0x138   : > { %v663_v61 = vpop.f32.mrf.mxu0 }
 0x139   : > { %995 = vst.msk [vmem:[%s1624_s4 + $0x44] sm:$0xf] %vm977_vm0, %v944_v59  ;;  %v855_v62 = vadd.f32 %v854_v37, %v721_v60  ;;  %v664_v63 = vadd.f32 %v1609_v48, %v663_v61  ;;  %v797_v0 = vpop.f32.mrf.mxu1 }
 0x13b   : > { %v918_v1 = vmax.f32 %v855_v62, 0.0  ;;  %v798_v3 = vadd.f32 %v797_v0, %v664_v63 }
 0x13d   : > { %v968_v5 = vpack.c.bf16 %v918_v1, %v918_v1  ;;  %v895_v6 = vmax.f32 %v798_v3, 0.0 }
 0x13e   : > { %v723_v7 = vpop.f32.mrf.mxu2 }
 0x13f   : > { %1019 = vst.msk [vmem:[%s1624_s4 + $0xa4] sm:$0xf] %vm977_vm0, %v968_v5  ;;  %v945_v8 = vpack.c.bf16 %v895_v6, %v895_v6  ;;  %v724_v9 = vadd.f32 %v1609_v48, %v723_v7  ;;  %v862_v20 = vpop.f32.mrf.mxu3 }
 0x140   : > { %v665_v10 = vpop.f32.mrf.mxu0 }
 0x141   : > { %996 = vst.msk [vmem:[%s1624_s4 + $0x48] sm:$0xf] %vm977_vm0, %v945_v8  ;;  %v858_v11 = vadd.f32 %v857_v53, %v724_v9  ;;  %v666_v12 = vadd.f32 %v1609_v48, %v665_v10  ;;  %v799_v13 = vpop.f32.mrf.mxu1  ;;  %v679_v8 = vadd.f32 %v1609_v48, %v1626_v2  ;;  %v681_v2 = vadd.f32 %v1609_v48, %v1639_v18 }
 0x143   : > { %v919_v14 = vmax.f32 %v858_v11, 0.0  ;;  %v800_v15 = vadd.f32 %v799_v13, %v666_v12 }
 0x145   : > { %v969_v16 = vpack.c.bf16 %v919_v14, %v919_v14  ;;  %v896_v17 = vmax.f32 %v800_v15, 0.0 }
 0x146   : > { %v725_v19 = vpop.f32.mrf.mxu2 }
 0x147   : > { %1020 = vst.msk [vmem:[%s1624_s4 + $0xa8] sm:$0xf] %vm977_vm0, %v969_v16  ;;  %v946_v21 = vpack.c.bf16 %v896_v17, %v896_v17  ;;  %v726_v22 = vadd.f32 %v1609_v48, %v725_v19  ;;  %v864_v35 = vpop.f32.mrf.mxu3 }
 0x148   : > { %v668_v23 = vpop.f32.mrf.mxu0 }
 0x149   : > { %997 = vst.msk [vmem:[%s1624_s4 + $0x4c] sm:$0xf] %vm977_vm0, %v946_v21  ;;  %v860_v24 = vadd.f32 %v859_v4, %v726_v22  ;;  %v669_v25 = vadd.f32 %v1609_v48, %v668_v23  ;;  %v802_v26 = vpop.f32.mrf.mxu1 }
 0x14b   : > { %v920_v27 = vmax.f32 %v860_v24, 0.0  ;;  %v803_v28 = vadd.f32 %v802_v26, %v669_v25 }
 0x14d   : > { %v970_v29 = vpack.c.bf16 %v920_v27, %v920_v27  ;;  %v897_v30 = vmax.f32 %v803_v28, 0.0 }
 0x14e   : > { %v728_v31 = vpop.f32.mrf.mxu2 }
 0x14f   : > { %1021 = vst.msk [vmem:[%s1624_s4 + $0xac] sm:$0xf] %vm977_vm0, %v970_v29  ;;  %v947_v32 = vpack.c.bf16 %v897_v30, %v897_v30  ;;  %v729_v33 = vadd.f32 %v1609_v48, %v728_v31  ;;  %v867_v51 = vpop.f32.mrf.mxu3 }
 0x150   : > { %v670_v34 = vpop.f32.mrf.mxu0 }
 0x151   : > { %998 = vst.msk [vmem:[%s1624_s4 + $0x50] sm:$0xf] %vm977_vm0, %v947_v32  ;;  %v863_v36 = vadd.f32 %v862_v20, %v729_v33  ;;  %v671_v37 = vadd.f32 %v1609_v48, %v670_v34  ;;  %v804_v38 = vpop.f32.mrf.mxu1 }
 0x153   : > { %v921_v39 = vmax.f32 %v863_v36, 0.0  ;;  %v805_v40 = vadd.f32 %v804_v38, %v671_v37 }
 0x155   : > { %v971_v41 = vpack.c.bf16 %v921_v39, %v921_v39  ;;  %v898_v42 = vmax.f32 %v805_v40, 0.0 }
 0x156   : > { %v730_v43 = vpop.f32.mrf.mxu2 }
 0x157   : > { %1022 = vst.msk [vmem:[%s1624_s4 + $0xb0] sm:$0xf] %vm977_vm0, %v971_v41  ;;  %v948_v44 = vpack.c.bf16 %v898_v42, %v898_v42  ;;  %v731_v45 = vadd.f32 %v1609_v48, %v730_v43  ;;  %v869_v1 = vpop.f32.mrf.mxu3 }
 0x158   : > { %v673_v46 = vpop.f32.mrf.mxu0 }
 0x159   : > { %999 = vst.msk [vmem:[%s1624_s4 + $0x54] sm:$0xf] %vm977_vm0, %v948_v44  ;;  %v865_v47 = vadd.f32 %v864_v35, %v731_v45  ;;  %v674_v49 = vadd.f32 %v1609_v48, %v673_v46  ;;  %v807_v50 = vpop.f32.mrf.mxu1 }
 0x15b   : > { %v922_v52 = vmax.f32 %v865_v47, 0.0  ;;  %v808_v53 = vadd.f32 %v807_v50, %v674_v49 }
 0x15d   : > { %v972_v54 = vpack.c.bf16 %v922_v52, %v922_v52  ;;  %v899_v55 = vmax.f32 %v808_v53, 0.0 }
 0x15e   : > { %v733_v56 = vpop.f32.mrf.mxu2 }
 0x15f   : > { %1023 = vst.msk [vmem:[%s1624_s4 + $0xb4] sm:$0xf] %vm977_vm0, %v972_v54  ;;  %v949_v57 = vpack.c.bf16 %v899_v55, %v899_v55  ;;  %v734_v58 = vadd.f32 %v1609_v48, %v733_v56  ;;  %v872_v16 = vpop.f32.mrf.mxu3 }
 0x160   : > { %v675_v59 = vpop.f32.mrf.mxu0 }
 0x161   : > { %1000 = vst.msk [vmem:[%s1624_s4 + $0x58] sm:$0xf] %vm977_vm0, %v949_v57  ;;  %v868_v60 = vadd.f32 %v867_v51, %v734_v58  ;;  %v676_v61 = vadd.f32 %v1609_v48, %v675_v59  ;;  %v809_v62 = vpop.f32.mrf.mxu1 }
 0x163   : > { %v923_v63 = vmax.f32 %v868_v60, 0.0  ;;  %v810_v0 = vadd.f32 %v809_v62, %v676_v61 }
 0x165   : > { %v973_v3 = vpack.c.bf16 %v923_v63, %v923_v63  ;;  %v900_v4 = vmax.f32 %v810_v0, 0.0 }
 0x166   : > { %v735_v5 = vpop.f32.mrf.mxu2 }
 0x167   : > { %1024 = vst.msk [vmem:[%s1624_s4 + $0xb8] sm:$0xf] %vm977_vm0, %v973_v3  ;;  %v950_v6 = vpack.c.bf16 %v900_v4, %v900_v4  ;;  %v736_v7 = vadd.f32 %v1609_v48, %v735_v5  ;;  %v874_v29 = vpop.f32.mrf.mxu3 }
 0x169   : > { %1001 = vst.msk [vmem:[%s1624_s4 + $0x5c] sm:$0xf] %vm977_vm0, %v950_v6  ;;  %v870_v9 = vadd.f32 %v869_v1, %v736_v7  ;;  %v812_v10 = vpop.f32.mrf.mxu1 }
 0x16a   : > { %v813_v11 = vadd.f32 %v812_v10, %v679_v8 }
 0x16b   : > { %v924_v12 = vmax.f32 %v870_v9, 0.0 }
 0x16c   : > { %v901_v13 = vmax.f32 %v813_v11, 0.0 }
 0x16d   : > { %v974_v14 = vpack.c.bf16 %v924_v12, %v924_v12 }
 0x16e   : > { %v951_v15 = vpack.c.bf16 %v901_v13, %v901_v13  ;;  %v738_v17 = vpop.f32.mrf.mxu2 }
 0x16f   : > { %1025 = vst.msk [vmem:[%s1624_s4 + $0xbc] sm:$0xf] %vm977_vm0, %v974_v14  ;;  %v739_v19 = vadd.f32 %v1609_v48, %v738_v17 }
 0x170   : > { %1002 = vst.msk [vmem:[%s1624_s4 + $0x60] sm:$0xf] %vm977_vm0, %v951_v15 }
 0x171   : > { %v873_v20 = vadd.f32 %v872_v16, %v739_v19  ;;  %v814_v21 = vpop.f32.mrf.mxu1 }
 0x172   : > { %v815_v22 = vadd.f32 %v814_v21, %v681_v2 }
 0x173   : > { %v925_v23 = vmax.f32 %v873_v20, 0.0 }
 0x174   : > { %v902_v24 = vmax.f32 %v815_v22, 0.0 }
 0x175   : > { %v975_v25 = vpack.c.bf16 %v925_v23, %v925_v23 }
 0x176   : > { %v952_v26 = vpack.c.bf16 %v902_v24, %v902_v24  ;;  %v740_v27 = vpop.f32.mrf.mxu2 }
 0x177   : > { %1026 = vst.msk [vmem:[%s1624_s4 + $0xc0] sm:$0xf] %vm977_vm0, %v975_v25  ;;  %v741_v28 = vadd.f32 %v1609_v48, %v740_v27 }
 0x178   : > { %1003 = vst.msk [vmem:[%s1624_s4 + $0x64] sm:$0xf] %vm977_vm0, %v952_v26 }
 0x179   : > { %v875_v30 = vadd.f32 %v874_v29, %v741_v28 }
 0x17b   : > { %v926_v18 = vmax.f32 %v875_v30, 0.0 }
 0x17d   : > { %v976_v31 = vpack.c.bf16 %v926_v18, %v926_v18 }
 0x17f   : > { %1027 = vst.msk [vmem:[%s1624_s4 + $0xc4] sm:$0xf] %vm977_vm0, %v976_v31 }
 0x180 PF: > { %s13_s12 = sadd.s32 1, %s1456_s12  }
 0x181   : > { %p10_p4 = scmp.ge.s32.totalorder %s13_s12, 4  }
 0x183   :  { %12 = sbr.rel (!%p10_p4) target bundleno = 1 (0x1), region = 62 }

// kernel: actor_forward.7
= control target key start
LH: loop header
LB: loop body
LE: loop exit
PB: predicated region body
PF: predicated region fallthrough
CT: control target
= control target key end

     0   :  { %vm824_vm0 = vcmask 519168   ;;  %vm845_vm1 = vcmask 516096   ;;  %s1683_s1 = inlined_call_operand.vmem [shape: bf16[512,64], index: 1, kind: input, shape index: {}]   ;;  %s1684_s2 = inlined_call_operand.vmem [shape: f32[1,64], index: 2, kind: input, shape index: {}]   ;;  %s1685_s0 = inlined_call_operand.vmem [shape: bf16[162,512], index: 0, kind: input, shape index: {}]   ;;  %s1686_s3 = inlined_call_operand.vmem [shape: bf16[162,64], index: 3, kind: output, shape index: {}]  }
   0x1   :  { %v1186_v0 = vld [vmem:[%s1683_s1 + $0x38] sm:$0xff]  ;;  %v1185_v4 = vld [vmem:[%s1683_s1 + $0x30] sm:$0xff]  ;;  %v1184_v8 = vld [vmem:[%s1683_s1 + $0x28] sm:$0xff] }
   0x2   :  { %v1194_v1 = vld [vmem:[%s1683_s1 + $0x78] sm:$0xff]  ;;  %530 = vmatpush.bf16.msra.mxu0 %v1186_v0  ;;  %v1193_v5 = vld [vmem:[%s1683_s1 + $0x70] sm:$0xff]  ;;  %v1192_v9 = vld [vmem:[%s1683_s1 + $0x68] sm:$0xff] }
   0x3   :  { %v1202_v2 = vld [vmem:[%s1683_s1 + $0xb8] sm:$0xff]  ;;  %593 = vmatpush.bf16.msra.mxu1 %v1194_v1  ;;  %v1201_v6 = vld [vmem:[%s1683_s1 + $0xb0] sm:$0xff]  ;;  %v1200_v10 = vld [vmem:[%s1683_s1 + $0xa8] sm:$0xff] }
   0x4   :  { %v1210_v3 = vld [vmem:[%s1683_s1 + $0xf8] sm:$0xff]  ;;  %656 = vmatpush.bf16.msra.mxu2 %v1202_v2  ;;  %v1209_v7 = vld [vmem:[%s1683_s1 + $0xf0] sm:$0xff]  ;;  %v1208_v11 = vld [vmem:[%s1683_s1 + $0xe8] sm:$0xff] }
   0x5   :  { %719 = vmatpush.bf16.msra.mxu3 %v1210_v3  ;;  %v1183_v12 = vld [vmem:[%s1683_s1 + $0x20] sm:$0xff]  ;;  %v1182_v16 = vld [vmem:[%s1683_s1 + $0x18] sm:$0xff]  ;;  %v1181_v20 = vld [vmem:[%s1683_s1 + $0x10] sm:$0xff] }
   0x6   :  { %531 = vmatpush.bf16.msra.mxu0 %v1185_v4  ;;  %v1191_v13 = vld [vmem:[%s1683_s1 + $0x60] sm:$0xff]  ;;  %v1190_v17 = vld [vmem:[%s1683_s1 + $0x58] sm:$0xff]  ;;  %v1189_v21 = vld [vmem:[%s1683_s1 + $0x50] sm:$0xff] }
   0x7   :  { %594 = vmatpush.bf16.msra.mxu1 %v1193_v5  ;;  %v1199_v14 = vld [vmem:[%s1683_s1 + $0xa0] sm:$0xff]  ;;  %v1198_v18 = vld [vmem:[%s1683_s1 + $0x98] sm:$0xff]  ;;  %v1197_v22 = vld [vmem:[%s1683_s1 + $0x90] sm:$0xff] }
   0x8   :  { %657 = vmatpush.bf16.msra.mxu2 %v1201_v6  ;;  %v1207_v15 = vld [vmem:[%s1683_s1 + $0xe0] sm:$0xff]  ;;  %v1206_v19 = vld [vmem:[%s1683_s1 + $0xd8] sm:$0xff]  ;;  %v1205_v23 = vld [vmem:[%s1683_s1 + $0xd0] sm:$0xff] }
   0x9   :  { %720 = vmatpush.bf16.msra.mxu3 %v1209_v7  ;;  %v1180_v24 = vld [vmem:[%s1683_s1 + $0x8] sm:$0xff]  ;;  %v1179_v28 = vld [vmem:[%s1683_s1] sm:$0xff]  ;;  %v1141_v33 = vld [vmem:[%s1685_s0 + $0xc] sm:$0xf0] }
   0xa   :  { %532 = vmatpush.bf16.msra.mxu0 %v1184_v8  ;;  %v1188_v25 = vld [vmem:[%s1683_s1 + $0x48] sm:$0xff]  ;;  %v1187_v29 = vld [vmem:[%s1683_s1 + $0x40] sm:$0xff]  ;;  %v855_v35 = vld [vmem:[%s1685_s0 + $0x10] sm:$0xf0] }
   0xb   :  { %595 = vmatpush.bf16.msra.mxu1 %v1192_v9  ;;  %v1196_v26 = vld [vmem:[%s1683_s1 + $0x88] sm:$0xff]  ;;  %v1195_v30 = vld [vmem:[%s1683_s1 + $0x80] sm:$0xff]  ;;  %v1142_v37 = vld [vmem:[%s1685_s0 + $0x14] sm:$0xf0] }
   0xc   :  { %658 = vmatpush.bf16.msra.mxu2 %v1200_v10  ;;  %v1204_v27 = vld [vmem:[%s1683_s1 + $0xc8] sm:$0xff]  ;;  %v1203_v31 = vld [vmem:[%s1683_s1 + $0xc0] sm:$0xff]  ;;  %v863_v39 = vld [vmem:[%s1685_s0 + $0x18] sm:$0xf0] }
   0xd   :  { %721 = vmatpush.bf16.msra.mxu3 %v1208_v11  ;;  %v853_v32 = vld [vmem:[%s1685_s0] sm:$0xf]  ;;  %v1139_v34 = vld [vmem:[%s1685_s0 + $0x4] sm:$0xf]  ;;  %v861_v36 = vld [vmem:[%s1685_s0 + $0x8] sm:$0xf] }
   0xe   :  { %533 = vmatpush.bf16.msra.mxu0 %v1183_v12  ;;  %v1140_v38 = vld [vmem:[%s1685_s0 + $0xc] sm:$0xf]  ;;  %v854_v40 = vor.u32 %v1141_v33, %v853_v32  ;;  %v858_v41 = vor.u32 %v1139_v34, %v855_v35  ;;  %v862_v42 = vor.u32 %v1142_v37, %v861_v36  ;;  %v869_v44 = vld [vmem:[%s1685_s0 + $0x20] sm:$0xf]  ;;  %v1145_v45 = vld [vmem:[%s1685_s0 + $0x2c] sm:$0xf0] }
   0xf   :  { %596 = vmatpush.bf16.msra.mxu1 %v1191_v13  ;;  %v866_v43 = vor.u32 %v1140_v38, %v863_v39  ;;  %v1143_v46 = vld [vmem:[%s1685_s0 + $0x24] sm:$0xf]  ;;  %v871_v47 = vld [vmem:[%s1685_s0 + $0x30] sm:$0xf0]  ;;  %v877_v48 = vld [vmem:[%s1685_s0 + $0x28] sm:$0xf]  ;;  %v870_v52 = vor.u32 %v1145_v45, %v869_v44 }
  0x10   :  { %659 = vmatpush.bf16.msra.mxu2 %v1199_v14  ;;  %v1146_v49 = vld [vmem:[%s1685_s0 + $0x34] sm:$0xf0]  ;;  %v1144_v50 = vld [vmem:[%s1685_s0 + $0x2c] sm:$0xf]  ;;  %v879_v51 = vld [vmem:[%s1685_s0 + $0x38] sm:$0xf0]  ;;  %v874_v53 = vor.u32 %v1143_v46, %v871_v47 }
  0x11   :  { %722 = vmatpush.bf16.msra.mxu3 %v1207_v15  ;;  %v878_v54 = vor.u32 %v1146_v49, %v877_v48  ;;  %v882_v55 = vor.u32 %v1144_v50, %v879_v51  ;;  %v885_v56 = vld [vmem:[%s1685_s0 + $0x40] sm:$0xf]  ;;  %v1149_v57 = vld [vmem:[%s1685_s0 + $0x4c] sm:$0xf0]  ;;  %v1147_v58 = vld [vmem:[%s1685_s0 + $0x44] sm:$0xf] }
  0x12   :  { %534 = vmatpush.bf16.msra.mxu0 %v1182_v16  ;;  %v887_v59 = vld [vmem:[%s1685_s0 + $0x50] sm:$0xf0]  ;;  %v893_v60 = vld [vmem:[%s1685_s0 + $0x48] sm:$0xf]  ;;  %v1150_v61 = vld [vmem:[%s1685_s0 + $0x54] sm:$0xf0]  ;;  %v886_v0 = vor.u32 %v1149_v57, %v885_v56 }
  0x13   :  { %597 = vmatpush.bf16.msra.mxu1 %v1190_v17  ;;  %v1148_v62 = vld [vmem:[%s1685_s0 + $0x4c] sm:$0xf]  ;;  %v895_v63 = vld [vmem:[%s1685_s0 + $0x58] sm:$0xf0]  ;;  %v890_v1 = vor.u32 %v1147_v58, %v887_v59  ;;  %v894_v2 = vor.u32 %v1150_v61, %v893_v60  ;;  %v901_v4 = vld [vmem:[%s1685_s0 + $0x60] sm:$0xf] }
  0x14   :  { %660 = vmatpush.bf16.msra.mxu2 %v1198_v18  ;;  %v898_v3 = vor.u32 %v1148_v62, %v895_v63  ;;  %v1153_v5 = vld [vmem:[%s1685_s0 + $0x6c] sm:$0xf0]  ;;  %v1151_v6 = vld [vmem:[%s1685_s0 + $0x64] sm:$0xf]  ;;  %v903_v7 = vld [vmem:[%s1685_s0 + $0x70] sm:$0xf0] }
  0x15   :  { %723 = vmatpush.bf16.msra.mxu3 %v1206_v19  ;;  %v909_v8 = vld [vmem:[%s1685_s0 + $0x68] sm:$0xf]  ;;  %v1154_v9 = vld [vmem:[%s1685_s0 + $0x74] sm:$0xf0]  ;;  %v1152_v10 = vld [vmem:[%s1685_s0 + $0x6c] sm:$0xf]  ;;  %v902_v12 = vor.u32 %v1153_v5, %v901_v4  ;;  %v906_v13 = vor.u32 %v1151_v6, %v903_v7 }
  0x16   :  { %535 = vmatpush.bf16.msra.mxu0 %v1181_v20  ;;  %v911_v11 = vld [vmem:[%s1685_s0 + $0x78] sm:$0xf0]  ;;  %v910_v14 = vor.u32 %v1154_v9, %v909_v8  ;;  %v917_v16 = vld [vmem:[%s1685_s0 + $0x80] sm:$0xf]  ;;  %v1157_v17 = vld [vmem:[%s1685_s0 + $0x8c] sm:$0xf0] }
  0x17   :  { %598 = vmatpush.bf16.msra.mxu1 %v1189_v21  ;;  %v914_v15 = vor.u32 %v1152_v10, %v911_v11  ;;  %v1155_v18 = vld [vmem:[%s1685_s0 + $0x84] sm:$0xf]  ;;  %v919_v19 = vld [vmem:[%s1685_s0 + $0x90] sm:$0xf0]  ;;  %v925_v20 = vld [vmem:[%s1685_s0 + $0x88] sm:$0xf] }
  0x18   :  { %661 = vmatpush.bf16.msra.mxu2 %v1197_v22  ;;  %v1158_v21 = vld [vmem:[%s1685_s0 + $0x94] sm:$0xf0]  ;;  %v1156_v22 = vld [vmem:[%s1685_s0 + $0x8c] sm:$0xf]  ;;  %v941_v32 = vld [vmem:[%s1685_s0 + $0xa8] sm:$0xf] }
  0x19   :  { %724 = vmatpush.bf16.msra.mxu3 %v1205_v23  ;;  %v927_v23 = vld [vmem:[%s1685_s0 + $0x98] sm:$0xf0]  ;;  %v1162_v33 = vld [vmem:[%s1685_s0 + $0xb4] sm:$0xf0]  ;;  %v1160_v34 = vld [vmem:[%s1685_s0 + $0xac] sm:$0xf] }
  0x1a   :  { %536 = vmatpush.bf16.msra.mxu0 %v1180_v24  ;;  %v918_v24 = vor.u32 %v1157_v17, %v917_v16  ;;  %v943_v35 = vld [vmem:[%s1685_s0 + $0xb8] sm:$0xf0]  ;;  %v942_v38 = vor.u32 %v1162_v33, %v941_v32  ;;  %v957_v44 = vld [vmem:[%s1685_s0 + $0xc8] sm:$0xf]  ;;  %v1166_v45 = vld [vmem:[%s1685_s0 + $0xd4] sm:$0xf0] }
  0x1b   :  { %599 = vmatpush.bf16.msra.mxu1 %v1188_v25  ;;  %v922_v25 = vor.u32 %v1155_v18, %v919_v19  ;;  %v946_v39 = vor.u32 %v1160_v34, %v943_v35  ;;  %v1164_v46 = vld [vmem:[%s1685_s0 + $0xcc] sm:$0xf]  ;;  %v959_v47 = vld [vmem:[%s1685_s0 + $0xd8] sm:$0xf0]  ;;  %v958_v50 = vor.u32 %v1166_v45, %v957_v44  ;;  %v973_v56 = vld [vmem:[%s1685_s0 + $0xe8] sm:$0xf] }
  0x1c   :  { %662 = vmatpush.bf16.msra.mxu2 %v1196_v26  ;;  %v926_v26 = vor.u32 %v1158_v21, %v925_v20  ;;  %v962_v51 = vor.u32 %v1164_v46, %v959_v47  ;;  %v1170_v57 = vld [vmem:[%s1685_s0 + $0xf4] sm:$0xf0]  ;;  %v1168_v58 = vld [vmem:[%s1685_s0 + $0xec] sm:$0xf]  ;;  %v975_v59 = vld [vmem:[%s1685_s0 + $0xf8] sm:$0xf0] }
  0x1d   :  { %725 = vmatpush.bf16.msra.mxu3 %v1204_v27  ;;  %v930_v27 = vor.u32 %v1156_v22, %v927_v23  ;;  %v974_v62 = vor.u32 %v1170_v57, %v973_v56  ;;  %v978_v63 = vor.u32 %v1168_v58, %v975_v59  ;;  %v983_v4 = vld [vmem:[%s1685_s0 + $0x110] sm:$0xf0]  ;;  %v989_v5 = vld [vmem:[%s1685_s0 + $0x108] sm:$0xf]  ;;  %v1174_v6 = vld [vmem:[%s1685_s0 + $0x114] sm:$0xf0] }
  0x1e   :  { %537 = vmatpush.bf16.msra.mxu0 %v1179_v28  ;;  %v933_v28 = vld [vmem:[%s1685_s0 + $0xa0] sm:$0xf]  ;;  %v1172_v7 = vld [vmem:[%s1685_s0 + $0x10c] sm:$0xf]  ;;  %v991_v8 = vld [vmem:[%s1685_s0 + $0x118] sm:$0xf0] }
  0x1f   :  { %600 = vmatpush.bf16.msra.mxu1 %v1187_v29  ;;  %v1161_v29 = vld [vmem:[%s1685_s0 + $0xac] sm:$0xf0]  ;;  %v1007_v32 = vld [vmem:[%s1685_s0 + $0x138] sm:$0xf0] }
  0x20   :  { %663 = vmatpush.bf16.msra.mxu2 %v1195_v30  ;;  %v1159_v30 = vld [vmem:[%s1685_s0 + $0xa4] sm:$0xf]  ;;  %v934_v36 = vor.u32 %v1161_v29, %v933_v28  ;;  %v999_v28 = vld [vmem:[%s1685_s0 + $0x130] sm:$0xf0]  ;;  %v1005_v29 = vld [vmem:[%s1685_s0 + $0x128] sm:$0xf] }
  0x21   :  { %726 = vmatpush.bf16.msra.mxu3 %v1203_v31  ;;  %538 = vmatmul.bf16.vlgmr.msra.gmra.mxu0 %v854_v40  ;;  %v935_v31 = vld [vmem:[%s1685_s0 + $0xb0] sm:$0xf0]  ;;  %v949_v40 = vld [vmem:[%s1685_s0 + $0xc0] sm:$0xf] }
  0x22   :  { %601 = vmatmul.bf16.vlgmr.msra.gmra.mxu1 %v858_v41  ;;  %v938_v37 = vor.u32 %v1159_v30, %v935_v31  ;;  %v1165_v41 = vld [vmem:[%s1685_s0 + $0xcc] sm:$0xf0]  ;;  %v1178_v30 = vld [vmem:[%s1685_s0 + $0x134] sm:$0xf0]  ;;  %v1176_v31 = vld [vmem:[%s1685_s0 + $0x12c] sm:$0xf] }
  0x23   :  { %664 = vmatmul.bf16.vlgmr.msra.gmra.mxu2 %v862_v42  ;;  %v1163_v42 = vld [vmem:[%s1685_s0 + $0xc4] sm:$0xf]  ;;  %v950_v48 = vor.u32 %v1165_v41, %v949_v40 }
  0x24   :  { %727 = vmatmul.bf16.vlgmr.msra.gmra.mxu3 %v866_v43  ;;  %v951_v43 = vld [vmem:[%s1685_s0 + $0xd0] sm:$0xf0] }
  0x25   :  { %v954_v49 = vor.u32 %v1163_v42, %v951_v43  ;;  %v1006_v42 = vor.u32 %v1178_v30, %v1005_v29  ;;  %v1010_v43 = vor.u32 %v1176_v31, %v1007_v32 }
  0x31   :  { %543 = vmatmul.bf16.gmra.mxu0 %v870_v52  ;;  %v965_v52 = vld [vmem:[%s1685_s0 + $0xe0] sm:$0xf] }
  0x32   :  { %606 = vmatmul.bf16.gmra.mxu1 %v874_v53  ;;  %v1169_v53 = vld [vmem:[%s1685_s0 + $0xec] sm:$0xf0] }
  0x33   :  { %669 = vmatmul.bf16.gmra.mxu2 %v878_v54  ;;  %v1167_v54 = vld [vmem:[%s1685_s0 + $0xe4] sm:$0xf]  ;;  %v966_v60 = vor.u32 %v1169_v53, %v965_v52 }
  0x34   :  { %732 = vmatmul.bf16.gmra.mxu3 %v882_v55  ;;  %v967_v55 = vld [vmem:[%s1685_s0 + $0xf0] sm:$0xf0] }
  0x35   :  { %v970_v61 = vor.u32 %v1167_v54, %v967_v55  ;;  %v54_v54 = vld [vmem:[%s1685_s0 + $0x140] sm:$0x11]  ;;  %v55_v55 = vld [vmem:[%s1685_s0 + $0x148] sm:$0x11] }
  0x36   :  { %v246_v58 = vunpack.c.l.b16 %v54_v54  ;;  %v247_v59 = vunpack.c.h.b16 %v54_v54 }
  0x41   :  { %548 = vmatmul.bf16.gmra.mxu0 %v886_v0  ;;  %v1523_v0 = vld [vmem:[%s1684_s2] ss:$0 sm:$0xff] }
  0x42   :  { %611 = vmatmul.bf16.gmra.mxu1 %v890_v1  ;;  %v981_v1 = vld [vmem:[%s1685_s0 + $0x100] sm:$0xf] }
  0x43   :  { %674 = vmatmul.bf16.gmra.mxu2 %v894_v2  ;;  %v1173_v2 = vld [vmem:[%s1685_s0 + $0x10c] sm:$0xf0] }
  0x44   :  { %737 = vmatmul.bf16.gmra.mxu3 %v898_v3  ;;  %v1171_v3 = vld [vmem:[%s1685_s0 + $0x104] sm:$0xf]  ;;  %v982_v9 = vor.u32 %v1173_v2, %v981_v1 }
  0x45   :  { %v986_v10 = vor.u32 %v1171_v3, %v983_v4  ;;  %v290_v4 = vpack.c.b16 %v246_v58, %v246_v58 }
  0x51   :  { %553 = vmatmul.bf16.gmra.mxu0 %v902_v12 }
  0x52   :  { %616 = vmatmul.bf16.gmra.mxu1 %v906_v13  ;;  %v990_v13 = vor.u32 %v1174_v6, %v989_v5  ;;  %v291_v5 = vpack.c.b16 %v247_v59, %v247_v59 }
  0x53   :  { %679 = vmatmul.bf16.gmra.mxu2 %v910_v14  ;;  %v994_v14 = vor.u32 %v1172_v7, %v991_v8 }
  0x54   :  { %742 = vmatmul.bf16.gmra.mxu3 %v914_v15 }
  0x61   :  { %558 = vmatmul.bf16.gmra.mxu0 %v918_v24  ;;  %v997_v24 = vld [vmem:[%s1685_s0 + $0x120] sm:$0xf] }
  0x62   :  { %621 = vmatmul.bf16.gmra.mxu1 %v922_v25  ;;  %v1177_v25 = vld [vmem:[%s1685_s0 + $0x12c] sm:$0xf0] }
  0x63   :  { %684 = vmatmul.bf16.gmra.mxu2 %v926_v26  ;;  %v1175_v26 = vld [vmem:[%s1685_s0 + $0x124] sm:$0xf] }
  0x64   :  { %747 = vmatmul.bf16.gmra.mxu3 %v930_v27 }
  0x71   :  { %563 = vmatmul.bf16.gmra.mxu0 %v934_v36 }
  0x72   :  { %626 = vmatmul.bf16.gmra.mxu1 %v938_v37  ;;  %v998_v37 = vor.u32 %v1177_v25, %v997_v24 }
  0x73   :  { %689 = vmatmul.bf16.gmra.mxu2 %v942_v38  ;;  %v1002_v38 = vor.u32 %v1175_v26, %v999_v28 }
  0x74   :  { %752 = vmatmul.bf16.gmra.mxu3 %v946_v39 }
  0x81   :  { %568 = vmatmul.bf16.gmra.mxu0 %v950_v48 }
  0x82   :  { %631 = vmatmul.bf16.gmra.mxu1 %v954_v49 }
  0x83   :  { %694 = vmatmul.bf16.gmra.mxu2 %v958_v50 }
  0x84   :  { %757 = vmatmul.bf16.gmra.mxu3 %v962_v51 }
  0x91   :  { %573 = vmatmul.bf16.gmra.mxu0 %v966_v60 }
  0x92   :  { %636 = vmatmul.bf16.gmra.mxu1 %v970_v61  ;;  %v248_v61 = vunpack.c.l.b16 %v55_v55 }
  0x93   :  { %699 = vmatmul.bf16.gmra.mxu2 %v974_v62  ;;  %v249_v62 = vunpack.c.h.b16 %v55_v55 }
  0x94   :  { %762 = vmatmul.bf16.gmra.mxu3 %v978_v63 }
  0x9e   :  { %v539_v11 = vpop.f32.mrf.mxu0 }
  0x9f   :  { %v602_v12 = vpop.f32.mrf.mxu1  ;;  %v540_v15 = vadd.f32 %v1523_v0, %v539_v11 }
  0xa1   :  { %578 = vmatmul.bf16.gmra.mxu0 %v982_v9  ;;  %v603_v16 = vadd.f32 %v602_v12, %v540_v15  ;;  %v292_v9 = vpack.c.b16 %v248_v61, %v248_v61 }
  0xa2   :  { %641 = vmatmul.bf16.gmra.mxu1 %v986_v10  ;;  %v293_v10 = vpack.c.b16 %v249_v62, %v249_v62 }
  0xa3   :  { %704 = vmatmul.bf16.gmra.mxu2 %v990_v13 }
  0xa4   :  { %767 = vmatmul.bf16.gmra.mxu3 %v994_v14 }
  0xa6   :  { %v665_v17 = vpop.f32.mrf.mxu2  ;;  %v541_v20 = vpop.f32.mrf.mxu0 }
  0xa7   :  { %v728_v18 = vpop.f32.mrf.mxu3  ;;  %v666_v19 = vadd.f32 %v665_v17, %v603_v16  ;;  %v604_v21 = vpop.f32.mrf.mxu1  ;;  %v542_v23 = vadd.f32 %v1523_v0, %v541_v20 }
  0xa9   :  { %v729_v22 = vadd.f32 %v728_v18, %v666_v19  ;;  %v605_v34 = vadd.f32 %v604_v21, %v542_v23 }
  0xab   :  { %v782_v27 = vmax.f32 %v729_v22, 0.0 }
  0xad   :  { %v803_v33 = vpack.c.bf16 %v782_v27, %v782_v27 }
  0xae   :  { %v667_v35 = vpop.f32.mrf.mxu2  ;;  %v544_v40 = vpop.f32.mrf.mxu0 }
  0xaf   :  { %v730_v36 = vpop.f32.mrf.mxu3  ;;  %825 = vst.msk [vmem:[%s1686_s3] sm:$0xf] %vm824_vm0, %v803_v33  ;;  %v668_v39 = vadd.f32 %v667_v35, %v605_v34  ;;  %v607_v41 = vpop.f32.mrf.mxu1  ;;  %v545_v44 = vadd.f32 %v1523_v0, %v544_v40 }
  0xb1   :  { %v731_v45 = vadd.f32 %v730_v36, %v668_v39  ;;  %583 = vmatmul.bf16.gmra.mxu0 %v998_v37  ;;  %v608_v47 = vadd.f32 %v607_v41, %v545_v44 }
  0xb2   :  { %646 = vmatmul.bf16.gmra.mxu1 %v1002_v38 }
  0xb3   :  { %v783_v46 = vmax.f32 %v731_v45, 0.0  ;;  %709 = vmatmul.bf16.gmra.mxu2 %v1006_v42 }
  0xb4   :  { %772 = vmatmul.bf16.gmra.mxu3 %v1010_v43 }
  0xb5   :  { %v804_v48 = vpack.c.bf16 %v783_v46, %v783_v46 }
  0xb6   :  { %v670_v49 = vpop.f32.mrf.mxu2  ;;  %v546_v52 = vpop.f32.mrf.mxu0 }
  0xb7   :  { %v733_v50 = vpop.f32.mrf.mxu3  ;;  %826 = vst.msk [vmem:[%s1686_s3 + $0x4] sm:$0xf] %vm824_vm0, %v804_v48  ;;  %v671_v51 = vadd.f32 %v670_v49, %v608_v47  ;;  %v609_v53 = vpop.f32.mrf.mxu1  ;;  %v547_v57 = vadd.f32 %v1523_v0, %v546_v52 }
  0xb9   :  { %v734_v56 = vadd.f32 %v733_v50, %v671_v51  ;;  %v610_v1 = vadd.f32 %v609_v53, %v547_v57 }
  0xbb   :  { %v784_v60 = vmax.f32 %v734_v56, 0.0 }
  0xbd   :  { %v805_v63 = vpack.c.bf16 %v784_v60, %v784_v60 }
  0xbe   :  { %v672_v2 = vpop.f32.mrf.mxu2  ;;  %v549_v7 = vpop.f32.mrf.mxu0 }
  0xbf   :  { %v735_v3 = vpop.f32.mrf.mxu3  ;;  %827 = vst.msk [vmem:[%s1686_s3 + $0x8] sm:$0xf] %vm824_vm0, %v805_v63  ;;  %v673_v6 = vadd.f32 %v672_v2, %v610_v1  ;;  %v612_v8 = vpop.f32.mrf.mxu1  ;;  %v550_v11 = vadd.f32 %v1523_v0, %v549_v7 }
  0xc1   :  { %v736_v12 = vadd.f32 %v735_v3, %v673_v6  ;;  %588 = vmatmul.bf16.gmra.mxu0 %v290_v4  ;;  %v613_v14 = vadd.f32 %v612_v8, %v550_v11 }
  0xc2   :  { %651 = vmatmul.bf16.gmra.mxu1 %v291_v5 }
  0xc3   :  { %v785_v13 = vmax.f32 %v736_v12, 0.0  ;;  %714 = vmatmul.bf16.gmra.mxu2 %v292_v9 }
  0xc4   :  { %777 = vmatmul.bf16.gmra.mxu3 %v293_v10 }
  0xc5   :  { %v806_v15 = vpack.c.bf16 %v785_v13, %v785_v13 }
  0xc6   :  { %v675_v16 = vpop.f32.mrf.mxu2  ;;  %v551_v19 = vpop.f32.mrf.mxu0 }
  0xc7   :  { %v738_v17 = vpop.f32.mrf.mxu3  ;;  %828 = vst.msk [vmem:[%s1686_s3 + $0xc] sm:$0xf] %vm824_vm0, %v806_v15  ;;  %v676_v18 = vadd.f32 %v675_v16, %v613_v14  ;;  %v614_v20 = vpop.f32.mrf.mxu1  ;;  %v552_v22 = vadd.f32 %v1523_v0, %v551_v19 }
  0xc9   :  { %v739_v21 = vadd.f32 %v738_v17, %v676_v18  ;;  %v615_v25 = vadd.f32 %v614_v20, %v552_v22 }
  0xcb   :  { %v786_v23 = vmax.f32 %v739_v21, 0.0 }
  0xcd   :  { %v807_v24 = vpack.c.bf16 %v786_v23, %v786_v23 }
  0xce   :  { %v677_v26 = vpop.f32.mrf.mxu2  ;;  %v554_v29 = vpop.f32.mrf.mxu0 }
  0xcf   :  { %v740_v27 = vpop.f32.mrf.mxu3  ;;  %829 = vst.msk [vmem:[%s1686_s3 + $0x10] sm:$0xf] %vm824_vm0, %v807_v24  ;;  %v678_v28 = vadd.f32 %v677_v26, %v615_v25  ;;  %v617_v30 = vpop.f32.mrf.mxu1  ;;  %v555_v31 = vadd.f32 %v1523_v0, %v554_v29 }
  0xd1   :  { %v741_v32 = vadd.f32 %v740_v27, %v678_v28  ;;  %v618_v34 = vadd.f32 %v617_v30, %v555_v31 }
  0xd3   :  { %v787_v33 = vmax.f32 %v741_v32, 0.0 }
  0xd5   :  { %v808_v35 = vpack.c.bf16 %v787_v33, %v787_v33 }
  0xd6   :  { %v680_v36 = vpop.f32.mrf.mxu2  ;;  %v556_v39 = vpop.f32.mrf.mxu0 }
  0xd7   :  { %v743_v37 = vpop.f32.mrf.mxu3  ;;  %830 = vst.msk [vmem:[%s1686_s3 + $0x14] sm:$0xf] %vm824_vm0, %v808_v35  ;;  %v681_v38 = vadd.f32 %v680_v36, %v618_v34  ;;  %v619_v40 = vpop.f32.mrf.mxu1  ;;  %v557_v42 = vadd.f32 %v1523_v0, %v556_v39 }
  0xd9   :  { %v744_v41 = vadd.f32 %v743_v37, %v681_v38  ;;  %v620_v45 = vadd.f32 %v619_v40, %v557_v42 }
  0xdb   :  { %v788_v43 = vmax.f32 %v744_v41, 0.0 }
  0xdd   :  { %v809_v44 = vpack.c.bf16 %v788_v43, %v788_v43 }
  0xde   :  { %v682_v46 = vpop.f32.mrf.mxu2  ;;  %v559_v49 = vpop.f32.mrf.mxu0 }
  0xdf   :  { %v745_v47 = vpop.f32.mrf.mxu3  ;;  %831 = vst.msk [vmem:[%s1686_s3 + $0x18] sm:$0xf] %vm824_vm0, %v809_v44  ;;  %v683_v48 = vadd.f32 %v682_v46, %v620_v45  ;;  %v622_v50 = vpop.f32.mrf.mxu1  ;;  %v560_v51 = vadd.f32 %v1523_v0, %v559_v49 }
  0xe1   :  { %v746_v52 = vadd.f32 %v745_v47, %v683_v48  ;;  %v623_v54 = vadd.f32 %v622_v50, %v560_v51 }
  0xe3   :  { %v789_v53 = vmax.f32 %v746_v52, 0.0 }
  0xe5   :  { %v810_v55 = vpack.c.bf16 %v789_v53, %v789_v53 }
  0xe6   :  { %v685_v56 = vpop.f32.mrf.mxu2  ;;  %v561_v59 = vpop.f32.mrf.mxu0 }
  0xe7   :  { %v748_v57 = vpop.f32.mrf.mxu3  ;;  %832 = vst.msk [vmem:[%s1686_s3 + $0x1c] sm:$0xf] %vm824_vm0, %v810_v55  ;;  %v686_v58 = vadd.f32 %v685_v56, %v623_v54  ;;  %v624_v60 = vpop.f32.mrf.mxu1  ;;  %v562_v62 = vadd.f32 %v1523_v0, %v561_v59 }
  0xe9   :  { %v749_v61 = vadd.f32 %v748_v57, %v686_v58  ;;  %v625_v2 = vadd.f32 %v624_v60, %v562_v62 }
  0xeb   :  { %v790_v63 = vmax.f32 %v749_v61, 0.0 }
  0xed   :  { %v811_v1 = vpack.c.bf16 %v790_v63, %v790_v63 }
  0xee   :  { %v687_v3 = vpop.f32.mrf.mxu2  ;;  %v564_v6 = vpop.f32.mrf.mxu0 }
  0xef   :  { %v750_v4 = vpop.f32.mrf.mxu3  ;;  %833 = vst.msk [vmem:[%s1686_s3 + $0x20] sm:$0xf] %vm824_vm0, %v811_v1  ;;  %v688_v5 = vadd.f32 %v687_v3, %v625_v2  ;;  %v627_v7 = vpop.f32.mrf.mxu1  ;;  %v565_v8 = vadd.f32 %v1523_v0, %v564_v6 }
  0xf1   :  { %v751_v9 = vadd.f32 %v750_v4, %v688_v5  ;;  %v628_v11 = vadd.f32 %v627_v7, %v565_v8 }
  0xf3   :  { %v791_v10 = vmax.f32 %v751_v9, 0.0 }
  0xf5   :  { %v812_v12 = vpack.c.bf16 %v791_v10, %v791_v10 }
  0xf6   :  { %v690_v13 = vpop.f32.mrf.mxu2  ;;  %v566_v16 = vpop.f32.mrf.mxu0 }
  0xf7   :  { %v753_v14 = vpop.f32.mrf.mxu3  ;;  %834 = vst.msk [vmem:[%s1686_s3 + $0x24] sm:$0xf] %vm824_vm0, %v812_v12  ;;  %v691_v15 = vadd.f32 %v690_v13, %v628_v11  ;;  %v629_v17 = vpop.f32.mrf.mxu1  ;;  %v567_v19 = vadd.f32 %v1523_v0, %v566_v16 }
  0xf9   :  { %v754_v18 = vadd.f32 %v753_v14, %v691_v15  ;;  %v630_v22 = vadd.f32 %v629_v17, %v567_v19 }
  0xfb   :  { %v792_v20 = vmax.f32 %v754_v18, 0.0 }
  0xfd   :  { %v813_v21 = vpack.c.bf16 %v792_v20, %v792_v20 }
  0xfe   :  { %v692_v23 = vpop.f32.mrf.mxu2  ;;  %v569_v26 = vpop.f32.mrf.mxu0 }
  0xff   :  { %v755_v24 = vpop.f32.mrf.mxu3  ;;  %835 = vst.msk [vmem:[%s1686_s3 + $0x28] sm:$0xf] %vm824_vm0, %v813_v21  ;;  %v693_v25 = vadd.f32 %v692_v23, %v630_v22  ;;  %v632_v27 = vpop.f32.mrf.mxu1  ;;  %v570_v28 = vadd.f32 %v1523_v0, %v569_v26 }
 0x101   :  { %v756_v29 = vadd.f32 %v755_v24, %v693_v25  ;;  %v633_v31 = vadd.f32 %v632_v27, %v570_v28 }
 0x103   :  { %v793_v30 = vmax.f32 %v756_v29, 0.0 }
 0x105   :  { %v814_v32 = vpack.c.bf16 %v793_v30, %v793_v30 }
 0x106   :  { %v695_v33 = vpop.f32.mrf.mxu2  ;;  %v571_v36 = vpop.f32.mrf.mxu0 }
 0x107   :  { %v758_v34 = vpop.f32.mrf.mxu3  ;;  %836 = vst.msk [vmem:[%s1686_s3 + $0x2c] sm:$0xf] %vm824_vm0, %v814_v32  ;;  %v696_v35 = vadd.f32 %v695_v33, %v633_v31  ;;  %v634_v37 = vpop.f32.mrf.mxu1  ;;  %v572_v39 = vadd.f32 %v1523_v0, %v571_v36 }
 0x109   :  { %v759_v38 = vadd.f32 %v758_v34, %v696_v35  ;;  %v635_v42 = vadd.f32 %v634_v37, %v572_v39 }
 0x10b   :  { %v794_v40 = vmax.f32 %v759_v38, 0.0 }
 0x10d   :  { %v815_v41 = vpack.c.bf16 %v794_v40, %v794_v40 }
 0x10e   :  { %v697_v43 = vpop.f32.mrf.mxu2  ;;  %v574_v46 = vpop.f32.mrf.mxu0 }
 0x10f   :  { %v760_v44 = vpop.f32.mrf.mxu3  ;;  %837 = vst.msk [vmem:[%s1686_s3 + $0x30] sm:$0xf] %vm824_vm0, %v815_v41  ;;  %v698_v45 = vadd.f32 %v697_v43, %v635_v42  ;;  %v637_v47 = vpop.f32.mrf.mxu1  ;;  %v575_v48 = vadd.f32 %v1523_v0, %v574_v46 }
 0x111   :  { %v761_v49 = vadd.f32 %v760_v44, %v698_v45  ;;  %v638_v51 = vadd.f32 %v637_v47, %v575_v48 }
 0x113   :  { %v795_v50 = vmax.f32 %v761_v49, 0.0 }
 0x115   :  { %v816_v52 = vpack.c.bf16 %v795_v50, %v795_v50 }
 0x116   :  { %v700_v53 = vpop.f32.mrf.mxu2  ;;  %v576_v56 = vpop.f32.mrf.mxu0 }
 0x117   :  { %v763_v54 = vpop.f32.mrf.mxu3  ;;  %838 = vst.msk [vmem:[%s1686_s3 + $0x34] sm:$0xf] %vm824_vm0, %v816_v52  ;;  %v701_v55 = vadd.f32 %v700_v53, %v638_v51  ;;  %v639_v57 = vpop.f32.mrf.mxu1  ;;  %v577_v59 = vadd.f32 %v1523_v0, %v576_v56 }
 0x119   :  { %v764_v58 = vadd.f32 %v763_v54, %v701_v55  ;;  %v640_v62 = vadd.f32 %v639_v57, %v577_v59 }
 0x11b   :  { %v796_v60 = vmax.f32 %v764_v58, 0.0 }
 0x11d   :  { %v817_v61 = vpack.c.bf16 %v796_v60, %v796_v60 }
 0x11e   :  { %v702_v63 = vpop.f32.mrf.mxu2  ;;  %v579_v3 = vpop.f32.mrf.mxu0 }
 0x11f   :  { %v765_v1 = vpop.f32.mrf.mxu3  ;;  %839 = vst.msk [vmem:[%s1686_s3 + $0x38] sm:$0xf] %vm824_vm0, %v817_v61  ;;  %v703_v2 = vadd.f32 %v702_v63, %v640_v62  ;;  %v642_v4 = vpop.f32.mrf.mxu1  ;;  %v580_v5 = vadd.f32 %v1523_v0, %v579_v3 }
 0x121   :  { %v766_v6 = vadd.f32 %v765_v1, %v703_v2  ;;  %v643_v8 = vadd.f32 %v642_v4, %v580_v5 }
 0x123   :  { %v797_v7 = vmax.f32 %v766_v6, 0.0 }
 0x125   :  { %v818_v9 = vpack.c.bf16 %v797_v7, %v797_v7 }
 0x126   :  { %v705_v10 = vpop.f32.mrf.mxu2  ;;  %v581_v13 = vpop.f32.mrf.mxu0 }
 0x127   :  { %v768_v11 = vpop.f32.mrf.mxu3  ;;  %840 = vst.msk [vmem:[%s1686_s3 + $0x3c] sm:$0xf] %vm824_vm0, %v818_v9  ;;  %v706_v12 = vadd.f32 %v705_v10, %v643_v8  ;;  %v644_v14 = vpop.f32.mrf.mxu1  ;;  %v582_v16 = vadd.f32 %v1523_v0, %v581_v13 }
 0x129   :  { %v769_v15 = vadd.f32 %v768_v11, %v706_v12  ;;  %v645_v19 = vadd.f32 %v644_v14, %v582_v16 }
 0x12b   :  { %v798_v17 = vmax.f32 %v769_v15, 0.0 }
 0x12d   :  { %v819_v18 = vpack.c.bf16 %v798_v17, %v798_v17 }
 0x12e   :  { %v707_v20 = vpop.f32.mrf.mxu2  ;;  %v584_v23 = vpop.f32.mrf.mxu0 }
 0x12f   :  { %v770_v21 = vpop.f32.mrf.mxu3  ;;  %841 = vst.msk [vmem:[%s1686_s3 + $0x40] sm:$0xf] %vm824_vm0, %v819_v18  ;;  %v708_v22 = vadd.f32 %v707_v20, %v645_v19  ;;  %v647_v24 = vpop.f32.mrf.mxu1  ;;  %v585_v25 = vadd.f32 %v1523_v0, %v584_v23 }
 0x131   :  { %v771_v26 = vadd.f32 %v770_v21, %v708_v22  ;;  %v648_v28 = vadd.f32 %v647_v24, %v585_v25 }
 0x133   :  { %v799_v27 = vmax.f32 %v771_v26, 0.0 }
 0x135   :  { %v820_v29 = vpack.c.bf16 %v799_v27, %v799_v27 }
 0x136   :  { %v710_v30 = vpop.f32.mrf.mxu2  ;;  %v586_v33 = vpop.f32.mrf.mxu0 }
 0x137   :  { %v773_v31 = vpop.f32.mrf.mxu3  ;;  %842 = vst.msk [vmem:[%s1686_s3 + $0x44] sm:$0xf] %vm824_vm0, %v820_v29  ;;  %v711_v32 = vadd.f32 %v710_v30, %v648_v28  ;;  %v649_v34 = vpop.f32.mrf.mxu1  ;;  %v587_v36 = vadd.f32 %v1523_v0, %v586_v33 }
 0x139   :  { %v774_v35 = vadd.f32 %v773_v31, %v711_v32  ;;  %v650_v39 = vadd.f32 %v649_v34, %v587_v36 }
 0x13b   :  { %v800_v37 = vmax.f32 %v774_v35, 0.0 }
 0x13d   :  { %v821_v38 = vpack.c.bf16 %v800_v37, %v800_v37 }
 0x13e   :  { %v712_v40 = vpop.f32.mrf.mxu2  ;;  %v589_v43 = vpop.f32.mrf.mxu0 }
 0x13f   :  { %v775_v41 = vpop.f32.mrf.mxu3  ;;  %843 = vst.msk [vmem:[%s1686_s3 + $0x48] sm:$0xf] %vm824_vm0, %v821_v38  ;;  %v713_v42 = vadd.f32 %v712_v40, %v650_v39  ;;  %v652_v44 = vpop.f32.mrf.mxu1  ;;  %v590_v45 = vadd.f32 %v1523_v0, %v589_v43 }
 0x141   :  { %v776_v46 = vadd.f32 %v775_v41, %v713_v42  ;;  %v653_v48 = vadd.f32 %v652_v44, %v590_v45 }
 0x143   :  { %v801_v47 = vmax.f32 %v776_v46, 0.0 }
 0x145   :  { %v822_v49 = vpack.c.bf16 %v801_v47, %v801_v47 }
 0x146   :  { %v715_v50 = vpop.f32.mrf.mxu2  ;;  %v591_v53 = vpop.f32.mrf.mxu0 }
 0x147   :  { %v778_v51 = vpop.f32.mrf.mxu3  ;;  %844 = vst.msk [vmem:[%s1686_s3 + $0x4c] sm:$0xf] %vm824_vm0, %v822_v49  ;;  %v716_v52 = vadd.f32 %v715_v50, %v653_v48  ;;  %v654_v54 = vpop.f32.mrf.mxu1 }
 0x149   :  { %v779_v55 = vadd.f32 %v778_v51, %v716_v52 }
 0x14b   :  { %v802_v56 = vmax.f32 %v779_v55, 0.0 }
 0x14d   :  { %v823_v57 = vpack.c.bf16 %v802_v56, %v802_v56 }
 0x14e   :  { %v717_v58 = vpop.f32.mrf.mxu2 }
 0x14f   :  { %v780_v0 = vpop.f32.mrf.mxu3  ;;  %846 = vst.msk [vmem:[%s1686_s3 + $0x50] sm:$0x1] %vm845_vm1, %v823_v57 }

// kernel: actor_forward.8
= control target key start
LH: loop header
LB: loop body
LE: loop exit
PB: predicated region body
PF: predicated region fallthrough
CT: control target
= control target key end

     0   :  { %s3233_s0 = inlined_call_operand.vmem [shape: bf16[640,64], index: 0, kind: input, shape index: {}]   ;;  %s3234_s1 = inlined_call_operand.vmem [shape: f32[1,64], index: 1, kind: input, shape index: {}]   ;;  %s3235_s2 = inlined_call_operand.vmem [shape: bf16[98,576], index: 2, kind: input, shape index: {}]   ;;  %s3236_s3 = inlined_call_operand.<no memory space> [shape: bf16[], index: 3, kind: input, shape index: {}]   ;;  %s3237_s4 = inlined_call_operand.vmem [shape: bf16[98,64], index: 4, kind: output, shape index: {}]  }
   0x1   :  { %v9_v0 = vstv %s3236_s3 }
   0x2   :  { %v2834_v1 = vunpack.i.l.bf16 %v9_v0 }
   0x3   :  { %v2548_v2 = vld [vmem:[%s3233_s0 + $0x38] sm:$0xff]  ;;  %v112_v3 = vlaneseq  ;;  %v2547_v4 = vld [vmem:[%s3233_s0 + $0x30] sm:$0xff]  ;;  %v2190_v8 = vld [vmem:[%s3235_s2 + $0x60] sm:$0xff]   ;;  %vm2148_vm2 = vcmask 519168   ;;  %vm2161_vm3 = vcmask 516096  }
   0x4   :  { %2781 = vmatpush.bf16.msra.mxu1 %v2548_v2  ;;  %2782 = vmatpush.bf16.msra.mxu2 %v2548_v2  ;;  %v2769_v7 = vld [vmem:[%s3235_s2 + $0x50] sm:$0xff]  ;;  %v2775_v9 = vld [vmem:[%s3235_s2 + $0xa0] sm:$0xff]  ;;  %v521_v11 = vunpack.c.l.bf16 %v2190_v8  ;;  %v2628_v12 = vunpack.c.h.bf16 %v2190_v8  ;;  %v2546_v19 = vld [vmem:[%s3233_s0 + $0x28] sm:$0xff] }
   0x5   :  { %v113_v5 = vand.u32 127, %v112_v3  ;;  %v1271_v6 = vshrl.u32 %v112_v3, 7  ;;  %2783 = vmatpush.bf16.msra.mxu3 %v2548_v2  ;;  %1907 = vmatpush.bf16.msra.mxu0 %v2548_v2  ;;  %v2210_v13 = vld [vmem:[%s3235_s2 + $0xb0] sm:$0xff]   ;;  %v20_v14 = vld [vmem:[%s3235_s2] sm:$0xff]   ;;  %2620 = vst [vmem:[#allocation7 + $0x50] sm:$0xff] %v2769_v7   ;;  %v2200_v31 = vld [vmem:[%s3235_s2 + $0x88] sm:$0xff]  }
   0x6   :  { %v937_v16 = vunpack.c.l.bf16 %v2210_v13  ;;  %v2668_v17 = vunpack.c.h.bf16 %v2210_v13  ;;  %v2170_v18 = vld [vmem:[%s3235_s2 + $0x10] sm:$0xff]   ;;  %2660 = vst [vmem:[#allocation7 + $0xa0] sm:$0xff] %v2775_v9   ;;  %v2220_v32 = vld [vmem:[%s3235_s2 + $0xd8] sm:$0xff]   ;;  %v2545_v33 = vld [vmem:[%s3233_s0 + $0x20] sm:$0xff]  ;;  %v729_v35 = vunpack.c.l.bf16 %v2200_v31  ;;  %v2648_v36 = vunpack.c.h.bf16 %v2200_v31 }
   0x7   :  { %v2851_v10 = vadd.s32 512, %v113_v5  ;;  %v2859_v15 = vadd.s32 96, %v1271_v6  ;;  %v105_v20 = vunpack.c.l.bf16 %v2170_v18  ;;  %v2588_v21 = vunpack.c.h.bf16 %v2170_v18  ;;  %36 = vst [vmem:[#allocation7] sm:$0xff] %v20_v14   ;;  %v2226_v24 = vld [vmem:[%s3235_s2 + $0xf0] sm:$0xff]   ;;  %v2772_v40 = vld [vmem:[%s3235_s2 + $0x78] sm:$0xff]  ;;  %v2778_v48 = vld [vmem:[%s3235_s2 + $0xc8] sm:$0xff] }
   0x8   :  { %2784 = vmatpush.bf16.msra.mxu1 %v2547_v4  ;;  %2785 = vmatpush.bf16.msra.mxu2 %v2547_v4  ;;  %v1268_v28 = vunpack.c.l.bf16 %v2226_v24  ;;  %v1287_v30 = vunpack.c.h.bf16 %v2226_v24  ;;  %v1145_v37 = vunpack.c.l.bf16 %v2220_v32  ;;  %v2688_v41 = vunpack.c.h.bf16 %v2220_v32  ;;  %v2180_v42 = vld [vmem:[%s3235_s2 + $0x38] sm:$0xff]   ;;  %2640 = vst [vmem:[#allocation7 + $0x78] sm:$0xff] %v2772_v40   ;;  %v2766_v53 = vld [vmem:[%s3235_s2 + $0x28] sm:$0xff]  ;;  %v2543_v55 = vld [vmem:[%s3233_s0 + $0x10] sm:$0xff] }
   0x9   :  { %vm115_vm0 = vcmp.lt.s32.totalorder %v2851_v10, 576  ;;  %2786 = vmatpush.bf16.msra.mxu3 %v2547_v4  ;;  %1908 = vmatpush.bf16.msra.mxu0 %v2547_v4  ;;  %vm1273_vm1 = vcmp.lt.s32.totalorder %v2859_v15, 98  ;;  %v313_v46 = vunpack.c.l.bf16 %v2180_v42  ;;  %v2608_v49 = vunpack.c.h.bf16 %v2180_v42  ;;  %v2544_v50 = vld [vmem:[%s3233_s0 + $0x18] sm:$0xff]  ;;  %2680 = vst [vmem:[#allocation7 + $0xc8] sm:$0xff] %v2778_v48   ;;  %v2764_v56 = vld [vmem:[%s3235_s2 + $0x8] sm:$0xff]  ;;  %v2541_v2 = vld [vmem:[%s3233_s0] sm:$0xff] }
   0xa   :  { %v532_v22 = vsel %vm115_vm0, %v521_v11, %v2834_v1  ;;  %v948_v23 = vsel %vm115_vm0, %v937_v16, %v2834_v1  ;;  %v116_v27 = vsel %vm115_vm0, %v105_v20, %v2834_v1  ;;  %v1274_v34 = vsel %vm1273_vm1, %v1268_v28, %v2834_v1  ;;  %2600 = vst [vmem:[#allocation7 + $0x28] sm:$0xff] %v2766_v53   ;;  %v2175_v57 = vld [vmem:[%s3235_s2 + $0x24] sm:$0xf]  ;;  %v2174_v58 = vld [vmem:[%s3235_s2 + $0x20] sm:$0xf]  ;;  %v2542_v60 = vld [vmem:[%s3233_s0 + $0x8] sm:$0xff] }
   0xb   :  { %v2629_v25 = vpack.c.bf16 %v2628_v12, %v532_v22  ;;  %v2669_v26 = vpack.c.bf16 %v2668_v17, %v948_v23  ;;  %v2589_v29 = vpack.c.bf16 %v2588_v21, %v116_v27  ;;  %v1281_v38 = vpack.c.bf16 0.0, %v1274_v34  ;;  %2585 = vst [vmem:[#allocation7 + $0x8] sm:$0xff] %v2764_v56   ;;  %v2765_v62 = vld [vmem:[%s3235_s2 + $0x18] sm:$0xff]  ;;  %v2571_v20 = vld [vmem:[%s3233_s0 + $0xf0] sm:$0xff]  ;;  %v2184_v24 = vld [vmem:[%s3235_s2 + $0x48] sm:$0xf] }
   0xc   :  { %2787 = vmatpush.bf16.msra.mxu1 %v2546_v19  ;;  %2788 = vmatpush.bf16.msra.mxu2 %v2546_v19  ;;  %v1293_v39 = vsel %vm1273_vm1, %v1287_v30, %v2834_v1  ;;  %v740_v44 = vsel %vm115_vm0, %v729_v35, %v2834_v1  ;;  %v1156_v45 = vsel %vm115_vm0, %v1145_v37, %v2834_v1  ;;  %v209_v59 = vunpack.c.l.bf16 %v2175_v57  ;;  %v2273_v3 = vld [vmem:[#allocation7 + $0x50] sm:$0xf]  ;;  %v2572_v11 = vld [vmem:[%s3233_s0 + $0xf8] sm:$0xff]  ;;  %v2570_v27 = vld [vmem:[%s3233_s0 + $0xe8] sm:$0xff] }
   0xd   :  { %2630 = vst [vmem:[#allocation7 + $0x60] sm:$0xff] %v2629_v25   ;;  %2789 = vmatpush.bf16.msra.mxu3 %v2546_v19  ;;  %1909 = vmatpush.bf16.msra.mxu0 %v2546_v19  ;;  %v1300_v43 = vpack.c.bf16 0.0, %v1293_v39  ;;  %v2649_v47 = vpack.c.bf16 %v2648_v36, %v740_v44  ;;  %v2689_v51 = vpack.c.bf16 %v2688_v41, %v1156_v45  ;;  %v2313_v4 = vld [vmem:[#allocation7 + $0xa0] sm:$0xf]  ;;  %v2564_v12 = vld [vmem:[%s3233_s0 + $0xb8] sm:$0xff]  ;;  %v2563_v21 = vld [vmem:[%s3233_s0 + $0xb0] sm:$0xff] }
   0xe   :  { %2670 = vst [vmem:[#allocation7 + $0xb0] sm:$0xff] %v2669_v26   ;;  %v324_v52 = vsel %vm115_vm0, %v313_v46, %v2834_v1  ;;  %v220_v61 = vsel %vm115_vm0, %v209_v59, %v2834_v1  ;;  %v2233_v7 = vld [vmem:[#allocation7] sm:$0xf]  ;;  %v2556_v17 = vld [vmem:[%s3233_s0 + $0x78] sm:$0xff]  ;;  %v2555_v22 = vld [vmem:[%s3233_s0 + $0x70] sm:$0xff] }
   0xf   :  { %2590 = vst [vmem:[#allocation7 + $0x10] sm:$0xff] %v2589_v29   ;;  %v2609_v54 = vpack.c.bf16 %v2608_v49, %v324_v52  ;;  %v222_v63 = vpack.c.bf16 0.0, %v220_v61  ;;  %v2580_v18 = vld [vmem:[%s3233_s0 + $0x138] sm:$0xff]  ;;  %v2767_v23 = vld [vmem:[%s3235_s2 + $0x30] sm:$0xff]  ;;  %v2185_v26 = vld [vmem:[%s3235_s2 + $0x4c] sm:$0xf] }
  0x10   :  { %1284 = vst [vmem:[#allocation7 + $0xf0] sm:$0xf] %v1281_v38  ;;  %2790 = vmatpush.bf16.msra.mxu1 %v2545_v33  ;;  %2791 = vmatpush.bf16.msra.mxu2 %v2545_v33  ;;  %v2579_v25 = vld [vmem:[%s3233_s0 + $0x130] sm:$0xff]  ;;  %v2562_v28 = vld [vmem:[%s3233_s0 + $0xa8] sm:$0xff]  ;;  %v417_v29 = vunpack.c.l.bf16 %v2185_v26  ;;  %v2768_v31 = vld [vmem:[%s3235_s2 + $0x40] sm:$0xff] }
  0x11   :  { %1303 = vst [vmem:[#allocation7 + $0xf4] sm:$0xf] %v1300_v43  ;;  %2792 = vmatpush.bf16.msra.mxu3 %v2545_v33  ;;  %1910 = vmatpush.bf16.msra.mxu0 %v2545_v33  ;;  %v2554_v30 = vld [vmem:[%s3233_s0 + $0x68] sm:$0xff]  ;;  %v2569_v35 = vld [vmem:[%s3233_s0 + $0xe0] sm:$0xff]  ;;  %v2293_v38 = vld [vmem:[#allocation7 + $0x78] sm:$0xf] }
  0x12   :  { %2650 = vst [vmem:[#allocation7 + $0x88] sm:$0xff] %v2649_v47   ;;  %v428_v32 = vsel %vm115_vm0, %v417_v29, %v2834_v1  ;;  %v2578_v33 = vld [vmem:[%s3233_s0 + $0x128] sm:$0xff]  ;;  %v2561_v36 = vld [vmem:[%s3233_s0 + $0xa0] sm:$0xff]  ;;  %v2568_v45 = vld [vmem:[%s3233_s0 + $0xd8] sm:$0xff] }
  0x13   :  { %2690 = vst [vmem:[#allocation7 + $0xd8] sm:$0xff] %v2689_v51   ;;  %v430_v34 = vpack.c.bf16 0.0, %v428_v32  ;;  %v2553_v37 = vld [vmem:[%s3233_s0 + $0x60] sm:$0xff]  ;;  %v2333_v40 = vld [vmem:[#allocation7 + $0xc8] sm:$0xf]  ;;  %v2560_v46 = vld [vmem:[%s3233_s0 + $0x98] sm:$0xff] }
  0x14   :  { %2793 = vmatpush.bf16.msra.mxu1 %v2544_v50  ;;  %2794 = vmatpush.bf16.msra.mxu2 %v2544_v50  ;;  %2610 = vst [vmem:[#allocation7 + $0x38] sm:$0xff] %v2609_v54   ;;  %v2523_v5 = vld [vmem:[#allocation7 + $0x60] sm:$0xf0]  ;;  %v2253_v43 = vld [vmem:[#allocation7 + $0x28] sm:$0xf]  ;;  %v2576_v51 = vld [vmem:[%s3233_s0 + $0x118] sm:$0xff] }
  0x15   :  { %2795 = vmatpush.bf16.msra.mxu3 %v2544_v50  ;;  %1911 = vmatpush.bf16.msra.mxu0 %v2544_v50  ;;  %197 = vst [vmem:[#allocation7 + $0x20] sm:$0xf] %v2174_v58  ;;  %v2533_v6 = vld [vmem:[#allocation7 + $0xb0] sm:$0xf0]  ;;  %v2274_v13 = vor.u32 %v2523_v5, %v2273_v3  ;;  %v2577_v42 = vld [vmem:[%s3233_s0 + $0x120] sm:$0xff]  ;;  %v2552_v50 = vld [vmem:[%s3233_s0 + $0x58] sm:$0xff] }
  0x16   :  { %2595 = vst [vmem:[#allocation7 + $0x18] sm:$0xff] %v2765_v62   ;;  %v2513_v8 = vld [vmem:[#allocation7 + $0x10] sm:$0xf0]  ;;  %v2314_v14 = vor.u32 %v2533_v6, %v2313_v4  ;;  %v2194_v56 = vld [vmem:[%s3235_s2 + $0x70] sm:$0xf]  ;;  %v2566_v59 = vld [vmem:[%s3233_s0 + $0xc8] sm:$0xff] }
  0x17   :  { %225 = vst [vmem:[#allocation7 + $0x24] sm:$0xf] %v222_v63  ;;  %v2234_v16 = vor.u32 %v2513_v8, %v2233_v7  ;;  %v2567_v52 = vld [vmem:[%s3233_s0 + $0xd0] sm:$0xff]  ;;  %v2550_v62 = vld [vmem:[%s3233_s0 + $0x48] sm:$0xff]  ;;  %v2565_v3 = vld [vmem:[%s3233_s0 + $0xc0] sm:$0xff] }
  0x18   :  { %2796 = vmatpush.bf16.msra.mxu1 %v2543_v55  ;;  %2797 = vmatpush.bf16.msra.mxu2 %v2543_v55  ;;  %v2941_v0 = vld [vmem:[#allocation7 + $0xf0] sm:$0x11]  ;;  %405 = vst [vmem:[#allocation7 + $0x48] sm:$0xf] %v2184_v24  ;;  %v2771_v63 = vld [vmem:[%s3235_s2 + $0x68] sm:$0xff]  ;;  %v2557_v6 = vld [vmem:[%s3233_s0 + $0x80] sm:$0xff] }
  0x19   :  { %2798 = vmatpush.bf16.msra.mxu3 %v2543_v55  ;;  %1912 = vmatpush.bf16.msra.mxu0 %v2543_v55  ;;  %v1592_v9 = vunpack.c.l.b16 %v2941_v0  ;;  %2605 = vst [vmem:[#allocation7 + $0x30] sm:$0xff] %v2767_v23   ;;  %v2528_v39 = vld [vmem:[#allocation7 + $0x88] sm:$0xf0]  ;;  %v2559_v53 = vld [vmem:[%s3233_s0 + $0x90] sm:$0xff]  ;;  %v2770_v55 = vld [vmem:[%s3235_s2 + $0x58] sm:$0xff] }
  0x1a   :  { %2615 = vst [vmem:[#allocation7 + $0x40] sm:$0xff] %v2768_v31   ;;  %v2538_v41 = vld [vmem:[#allocation7 + $0xd8] sm:$0xf0]  ;;  %v2294_v47 = vor.u32 %v2528_v39, %v2293_v38  ;;  %v2551_v54 = vld [vmem:[%s3233_s0 + $0x50] sm:$0xff]  ;;  %v2574_v4 = vld [vmem:[%s3233_s0 + $0x108] sm:$0xff] }
  0x1b   :  { %v1627_v19 = vpack.c.b16 %v1592_v9, %v1592_v9  ;;  %433 = vst [vmem:[#allocation7 + $0x4c] sm:$0xf] %v430_v34  ;;  %v2518_v44 = vld [vmem:[#allocation7 + $0x38] sm:$0xf0]  ;;  %v2334_v48 = vor.u32 %v2538_v41, %v2333_v40  ;;  %v2575_v57 = vld [vmem:[%s3233_s0 + $0x110] sm:$0xff]  ;;  %v2549_v9 = vld [vmem:[%s3233_s0 + $0x40] sm:$0xff] }
  0x1c   :  { %2799 = vmatpush.bf16.msra.mxu1 %v2542_v60  ;;  %2800 = vmatpush.bf16.msra.mxu2 %v2542_v60  ;;  %v2254_v49 = vor.u32 %v2518_v44, %v2253_v43  ;;  %613 = vst [vmem:[#allocation7 + $0x70] sm:$0xf] %v2194_v56  ;;  %v2195_v58 = vld [vmem:[%s3235_s2 + $0x74] sm:$0xf]  ;;  %v2512_v7 = vld [vmem:[#allocation7 + $0xc] sm:$0xf] }
  0x1d   :  { %2801 = vmatpush.bf16.msra.mxu3 %v2542_v60  ;;  %1913 = vmatpush.bf16.msra.mxu0 %v2542_v60  ;;  %v2558_v60 = vld [vmem:[%s3233_s0 + $0x88] sm:$0xff]  ;;  %2625 = vst [vmem:[#allocation7 + $0x58] sm:$0xff] %v2770_v55   ;;  %v625_v61 = vunpack.c.l.bf16 %v2195_v58  ;;  %v2243_v8 = vld [vmem:[#allocation7 + $0x1c] sm:$0xf0]  ;;  %v2204_v24 = vld [vmem:[%s3235_s2 + $0x98] sm:$0xf] }
  0x1e   :  { %2635 = vst [vmem:[#allocation7 + $0x68] sm:$0xff] %v2771_v63   ;;  %v2773_v23 = vld [vmem:[%s3235_s2 + $0x80] sm:$0xff]  ;;  %v2516_v32 = vld [vmem:[#allocation7 + $0x2c] sm:$0xf] }
  0x1f   :  { %821 = vst [vmem:[#allocation7 + $0x98] sm:$0xf] %v2204_v24  ;;  %v2263_v31 = vld [vmem:[#allocation7 + $0x44] sm:$0xf0]  ;;  %v2214_v43 = vld [vmem:[%s3235_s2 + $0xc0] sm:$0xf] }
  0x20   :  { %2802 = vmatpush.bf16.msra.mxu1 %v2541_v2  ;;  %2803 = vmatpush.bf16.msra.mxu2 %v2541_v2  ;;  %2645 = vst [vmem:[#allocation7 + $0x80] sm:$0xff] %v2773_v23   ;;  %v2261_v34 = vld [vmem:[#allocation7 + $0x30] sm:$0xf]  ;;  %v2215_v44 = vld [vmem:[%s3235_s2 + $0xc4] sm:$0xf] }
  0x21   :  { %2804 = vmatpush.bf16.msra.mxu3 %v2541_v2  ;;  %1914 = vmatpush.bf16.msra.mxu0 %v2541_v2  ;;  %v636_v2 = vsel %vm115_vm0, %v625_v61, %v2834_v1  ;;  %1029 = vst [vmem:[#allocation7 + $0xc0] sm:$0xf] %v2214_v43  ;;  %v2289_v56 = vld [vmem:[#allocation7 + $0x60] sm:$0xf]  ;;  %v2779_v61 = vld [vmem:[%s3235_s2 + $0xd0] sm:$0xff] }
  0x22   :  { %v638_v5 = vpack.c.bf16 0.0, %v636_v2  ;;  %v2520_v38 = vld [vmem:[#allocation7 + $0x48] sm:$0xf0]  ;;  %2685 = vst [vmem:[#allocation7 + $0xd0] sm:$0xff] %v2779_v61  }
  0x23   :  { %1925 = vmatmul.bf16.vlgmr.msra.gmra.mxu1 %v2274_v13  ;;  %1935 = vmatmul.bf16.vlgmr.msra.gmra.mxu2 %v2314_v14  ;;  %v2241_v13 = vld [vmem:[#allocation7 + $0x8] sm:$0xf]  ;;  %v2514_v14 = vld [vmem:[#allocation7 + $0x18] sm:$0xf0]  ;;  %v2225_v63 = vld [vmem:[%s3235_s2 + $0xec] sm:$0xf] }
  0x24   :  { %1993 = vmatpush.bf16.msrb.mxu2 %v2564_v12  ;;  %1915 = vmatmul.bf16.vlgmr.msra.gmra.mxu0 %v2234_v16  ;;  %641 = vst [vmem:[#allocation7 + $0x74] sm:$0xf] %v638_v5  ;;  %v2235_v12 = vld [vmem:[#allocation7 + $0x14] sm:$0xf0]  ;;  %v2246_v16 = vor.u32 %v2512_v7, %v2243_v8  ;;  %v1249_v2 = vunpack.c.l.bf16 %v2225_v63  ;;  %v2526_v8 = vld [vmem:[#allocation7 + $0x7c] sm:$0xf] }
  0x25   :  { %2036 = vmatpush.bf16.msrb.mxu3 %v2572_v11  ;;  %1950 = vmatpush.bf16.msrb.mxu1 %v2556_v17  ;;  %v2511_v11 = vld [vmem:[#allocation7 + $0x4] sm:$0xf]  ;;  %v2536_v15 = vld [vmem:[#allocation7 + $0xcc] sm:$0xf] }
  0x26   :  { %2079 = vmatpush.bf16.msrb.mxu0 %v2580_v18  ;;  %1945 = vmatmul.bf16.vlgmr.msra.gmra.mxu3 %v1627_v19  ;;  %v2573_v17 = vld [vmem:[%s3233_s0 + $0x100] sm:$0xff]  ;;  %v2249_v18 = vld [vmem:[#allocation7 + $0x10] sm:$0xf]  ;;  %v2303_v7 = vld [vmem:[#allocation7 + $0x94] sm:$0xf0] }
  0x27   :  { %v2515_v19 = vld [vmem:[#allocation7 + $0x20] sm:$0xf0] }
  0x28   :  { %1994 = vmatpush.bf16.msrb.mxu2 %v2563_v21  ;;  %v2242_v21 = vor.u32 %v2514_v14, %v2241_v13  ;;  %v2309_v14 = vld [vmem:[#allocation7 + $0x88] sm:$0xf] }
  0x29   :  { %2037 = vmatpush.bf16.msrb.mxu3 %v2571_v20  ;;  %1951 = vmatpush.bf16.msrb.mxu1 %v2555_v22  ;;  %v2238_v20 = vor.u32 %v2511_v11, %v2235_v12  ;;  %v2250_v22 = vor.u32 %v2515_v19, %v2249_v18  ;;  %v2301_v11 = vld [vmem:[#allocation7 + $0x80] sm:$0xf]  ;;  %v2228_v19 = vld [vmem:[%s3235_s2 + $0xf8] sm:$0xff]   ;;  %v2537_v10 = vld [vmem:[#allocation7 + $0xd4] sm:$0xf] }
  0x2a   :  { %2080 = vmatpush.bf16.msrb.mxu0 %v2579_v25  ;;  %v2205_v25 = vld [vmem:[%s3235_s2 + $0x9c] sm:$0xf] }
  0x2b   :  { %v833_v26 = vunpack.c.l.bf16 %v2205_v25 }
  0x2c   :  { %1995 = vmatpush.bf16.msrb.mxu2 %v2562_v28 }
  0x2d   :  { %2038 = vmatpush.bf16.msrb.mxu3 %v2570_v27  ;;  %1952 = vmatpush.bf16.msrb.mxu1 %v2554_v30  ;;  %v2774_v27 = vld [vmem:[%s3235_s2 + $0x90] sm:$0xff]  ;;  %v844_v28 = vsel %vm115_vm0, %v833_v26, %v2834_v1 }
  0x2e   :  { %2081 = vmatpush.bf16.msrb.mxu0 %v2578_v33  ;;  %v846_v29 = vpack.c.bf16 0.0, %v844_v28  ;;  %v2517_v30 = vld [vmem:[#allocation7 + $0x34] sm:$0xf]  ;;  %2655 = vst [vmem:[#allocation7 + $0x90] sm:$0xff] %v2774_v27   ;;  %v2255_v33 = vld [vmem:[#allocation7 + $0x3c] sm:$0xf0] }
  0x2f   :  { %v2258_v39 = vor.u32 %v2516_v32, %v2255_v33  ;;  %v2230_v27 = vld [vmem:[%s3235_s2 + $0x100] sm:$0xf] }
  0x30   :  { %1996 = vmatpush.bf16.msrb.mxu2 %v2561_v36  ;;  %849 = vst [vmem:[#allocation7 + $0x9c] sm:$0xf] %v846_v29  ;;  %v2266_v36 = vor.u32 %v2517_v30, %v2263_v31  ;;  %v1353_v28 = vunpack.c.l.bf16 %v2230_v27  ;;  %v2323_v33 = vld [vmem:[#allocation7 + $0xbc] sm:$0xf0] }
  0x31   :  { %2039 = vmatpush.bf16.msrb.mxu3 %v2569_v35  ;;  %1953 = vmatpush.bf16.msrb.mxu1 %v2553_v37  ;;  %v2519_v35 = vld [vmem:[#allocation7 + $0x40] sm:$0xf0]  ;;  %v2269_v37 = vld [vmem:[#allocation7 + $0x38] sm:$0xf] }
  0x32   :  { %2082 = vmatpush.bf16.msrb.mxu0 %v2577_v42  ;;  %v2262_v40 = vor.u32 %v2519_v35, %v2261_v34  ;;  %v2270_v41 = vor.u32 %v2520_v38, %v2269_v37  ;;  %v2776_v42 = vld [vmem:[%s3235_s2 + $0xa8] sm:$0xff]  ;;  %v1359_v29 = vsel %vm1273_vm1, %v1353_v28, %v2834_v1  ;;  %v2531_v34 = vld [vmem:[#allocation7 + $0xa4] sm:$0xf] }
  0x33   :  { %1930 = vmatmul.bf16.gmra.mxu1 %v2294_v47  ;;  %1940 = vmatmul.bf16.gmra.mxu2 %v2334_v48  ;;  %2665 = vst [vmem:[#allocation7 + $0xa8] sm:$0xff] %v2776_v42   ;;  %v1364_v30 = vsel %vm115_vm0, %v1359_v29, %v2834_v1 }
  0x34   :  { %1997 = vmatpush.bf16.msrb.mxu2 %v2560_v46  ;;  %1920 = vmatmul.bf16.gmra.mxu0 %v2254_v49  ;;  %v2777_v46 = vld [vmem:[%s3235_s2 + $0xb8] sm:$0xff]  ;;  %v1366_v31 = vpack.c.bf16 0.0, %v1364_v30 }
  0x35   :  { %2040 = vmatpush.bf16.msrb.mxu3 %v2568_v45  ;;  %1954 = vmatpush.bf16.msrb.mxu1 %v2552_v50  ;;  %v1041_v45 = vunpack.c.l.bf16 %v2215_v44  ;;  %v2522_v49 = vld [vmem:[#allocation7 + $0x5c] sm:$0xf]  ;;  %v2283_v50 = vld [vmem:[#allocation7 + $0x6c] sm:$0xf0]  ;;  %2675 = vst [vmem:[#allocation7 + $0xb8] sm:$0xff] %v2777_v46  }
  0x36   :  { %2083 = vmatpush.bf16.msrb.mxu0 %v2576_v51  ;;  %v2521_v51 = vld [vmem:[#allocation7 + $0x54] sm:$0xf]  ;;  %v2286_v55 = vor.u32 %v2522_v49, %v2283_v50  ;;  %1369 = vst [vmem:[#allocation7 + $0x100] sm:$0xf] %v1366_v31 }
  0x37   :  { %v1052_v47 = vsel %vm115_vm0, %v1041_v45, %v2834_v1  ;;  %v2529_v12 = vld [vmem:[#allocation7 + $0x90] sm:$0xf0]  ;;  %v2341_v45 = vld [vmem:[#allocation7 + $0xd0] sm:$0xf] }
  0x38   :  { %1998 = vmatpush.bf16.msrb.mxu2 %v2559_v53  ;;  %v1054_v48 = vpack.c.bf16 0.0, %v1052_v47  ;;  %v2281_v53 = vld [vmem:[#allocation7 + $0x58] sm:$0xf]  ;;  %v2302_v18 = vor.u32 %v2529_v12, %v2301_v11 }
  0x39   :  { %2041 = vmatpush.bf16.msrb.mxu3 %v2567_v52  ;;  %1955 = vmatpush.bf16.msrb.mxu1 %v2551_v54  ;;  %v2275_v52 = vld [vmem:[#allocation7 + $0x64] sm:$0xf0]  ;;  %v2524_v54 = vld [vmem:[#allocation7 + $0x68] sm:$0xf0] }
  0x3a   :  { %2084 = vmatpush.bf16.msrb.mxu0 %v2575_v57  ;;  %1057 = vst [vmem:[#allocation7 + $0xc4] sm:$0xf] %v1054_v48  ;;  %v2525_v57 = vld [vmem:[#allocation7 + $0x70] sm:$0xf0]  ;;  %v2278_v58 = vor.u32 %v2521_v51, %v2275_v52  ;;  %v2532_v32 = vld [vmem:[#allocation7 + $0xac] sm:$0xf] }
  0x3b   :  { %v2326_v38 = vor.u32 %v2532_v32, %v2323_v33  ;;  %v2349_v48 = vld [vmem:[#allocation7 + $0xd8] sm:$0xf] }
  0x3c   :  { %1999 = vmatpush.bf16.msrb.mxu2 %v2558_v60  ;;  %v2290_v60 = vor.u32 %v2525_v57, %v2289_v56  ;;  %v2315_v35 = vld [vmem:[#allocation7 + $0xb4] sm:$0xf0]  ;;  %v2534_v37 = vld [vmem:[#allocation7 + $0xb8] sm:$0xf0]  ;;  %v1593_v56 = vunpack.c.h.b16 %v2941_v0 }
  0x3d   :  { %2042 = vmatpush.bf16.msrb.mxu3 %v2566_v59  ;;  %1956 = vmatpush.bf16.msrb.mxu1 %v2550_v62  ;;  %v2282_v59 = vor.u32 %v2524_v54, %v2281_v53  ;;  %v2224_v62 = vld [vmem:[%s3235_s2 + $0xe8] sm:$0xf] }
  0x3e   :  { %2085 = vmatpush.bf16.msrb.mxu0 %v2574_v4  ;;  %1237 = vst [vmem:[#allocation7 + $0xe8] sm:$0xf] %v2224_v62  ;;  %v1260_v4 = vsel %vm115_vm0, %v1249_v2, %v2834_v1 }
  0x3f   :  { %v1262_v5 = vpack.c.bf16 0.0, %v1260_v4 }
  0x40   :  { %2000 = vmatpush.bf16.msrb.mxu2 %v2557_v6  ;;  %v2527_v6 = vld [vmem:[#allocation7 + $0x84] sm:$0xf] }
  0x41   :  { %2043 = vmatpush.bf16.msrb.mxu3 %v2565_v3  ;;  %1957 = vmatpush.bf16.msrb.mxu1 %v2549_v9  ;;  %v2780_v3 = vld [vmem:[%s3235_s2 + $0xe0] sm:$0xff]  ;;  %1265 = vst [vmem:[#allocation7 + $0xec] sm:$0xf] %v1262_v5  ;;  %v2295_v9 = vld [vmem:[#allocation7 + $0x8c] sm:$0xf0]  ;;  %v2306_v13 = vor.u32 %v2527_v6, %v2303_v7 }
  0x42   :  { %2086 = vmatpush.bf16.msrb.mxu0 %v2573_v17  ;;  %2695 = vst [vmem:[#allocation7 + $0xe0] sm:$0xff] %v2780_v3   ;;  %v2298_v17 = vor.u32 %v2526_v8, %v2295_v9  ;;  %v3142_v3 = vld [vmem:[%s3234_s1] ss:$0 sm:$0xff] }
  0x43   :  { %2001 = vmatmul.bf16.vlgmr.msrb.gmra.mxu2 %v2242_v21  ;;  %v1306_v21 = vunpack.c.l.bf16 %v2228_v19 }
  0x44   :  { %2044 = vmatmul.bf16.vlgmr.msrb.gmra.mxu3 %v2246_v16  ;;  %1958 = vmatmul.bf16.vlgmr.msrb.gmra.mxu1 %v2238_v20  ;;  %v2530_v16 = vld [vmem:[#allocation7 + $0x98] sm:$0xf0] }
  0x45   :  { %2087 = vmatmul.bf16.vlgmr.msrb.gmra.mxu0 %v2250_v22  ;;  %v2310_v20 = vor.u32 %v2530_v16, %v2309_v14  ;;  %v1325_v22 = vunpack.c.h.bf16 %v2228_v19  ;;  %v1312_v23 = vsel %vm1273_vm1, %v1306_v21, %v2834_v1 }
  0x46   :  { %v1319_v25 = vpack.c.bf16 0.0, %v1312_v23 }
  0x47   :  { %v1331_v24 = vsel %vm1273_vm1, %v1325_v22, %v2834_v1  ;;  %v2343_v1 = vld [vmem:[#allocation7 + $0xe4] sm:$0xf0] }
  0x48   :  { %v1338_v26 = vpack.c.bf16 0.0, %v1331_v24  ;;  %1322 = vst [vmem:[#allocation7 + $0xf8] sm:$0xf] %v1319_v25  ;;  %v2346_v47 = vor.u32 %v2537_v10, %v2343_v1  ;;  %v2540_v49 = vld [vmem:[#allocation7 + $0xe8] sm:$0xf0] }
  0x49   :  { %v2335_v44 = vld [vmem:[#allocation7 + $0xdc] sm:$0xf0]  ;;  %v2539_v46 = vld [vmem:[#allocation7 + $0xe0] sm:$0xf0]  ;;  %v2350_v52 = vor.u32 %v2540_v49, %v2349_v48 }
  0x4a   :  { %1341 = vst [vmem:[#allocation7 + $0xfc] sm:$0xf] %v1338_v26  ;;  %v2338_v50 = vor.u32 %v2536_v15, %v2335_v44  ;;  %v2342_v51 = vor.u32 %v2539_v46, %v2341_v45 }
  0x51   :  { %v1407_v53 = vld [vmem:[#allocation7 + $0xf8] sm:$0x11] }
  0x52   :  { %v1595_v54 = vunpack.c.h.b16 %v1407_v53  ;;  %v1594_v57 = vunpack.c.l.b16 %v1407_v53 }
  0x53   :  { %2006 = vmatmul.bf16.gmra.mxu2 %v2262_v40  ;;  %v2535_v40 = vld [vmem:[#allocation7 + $0xc0] sm:$0xf0] }
  0x54   :  { %2049 = vmatmul.bf16.gmra.mxu3 %v2266_v36  ;;  %1963 = vmatmul.bf16.gmra.mxu1 %v2258_v39  ;;  %v2321_v36 = vld [vmem:[#allocation7 + $0xa8] sm:$0xf]  ;;  %v2329_v39 = vld [vmem:[#allocation7 + $0xb0] sm:$0xf]  ;;  %v1629_v61 = vpack.c.b16 %v1594_v57, %v1594_v57 }
  0x55   :  { %2092 = vmatmul.bf16.gmra.mxu0 %v2270_v41  ;;  %v2318_v41 = vor.u32 %v2531_v34, %v2315_v35  ;;  %v2322_v42 = vor.u32 %v2534_v37, %v2321_v36  ;;  %v2330_v43 = vor.u32 %v2535_v40, %v2329_v39 }
  0x63   :  { %2011 = vmatmul.bf16.gmra.mxu2 %v2282_v59  ;;  %v1630_v59 = vpack.c.b16 %v1595_v54, %v1595_v54 }
  0x64   :  { %2054 = vmatmul.bf16.gmra.mxu3 %v2286_v55  ;;  %1968 = vmatmul.bf16.gmra.mxu1 %v2278_v58  ;;  %v1408_v55 = vld [vmem:[#allocation7 + $0x100] sm:$0x1] }
  0x65   :  { %2097 = vmatmul.bf16.gmra.mxu0 %v2290_v60  ;;  %v1596_v58 = vunpack.c.l.b16 %v1408_v55  ;;  %v1628_v60 = vpack.c.b16 %v1593_v56, %v1593_v56 }
  0x67   :  { %v1631_v63 = vpack.c.b16 %v1596_v58, %v1596_v58 }
  0x73   :  { %2016 = vmatmul.bf16.gmra.mxu2 %v2302_v18 }
  0x74   :  { %2059 = vmatmul.bf16.gmra.mxu3 %v2306_v13  ;;  %1973 = vmatmul.bf16.gmra.mxu1 %v2298_v17 }
  0x75   :  { %2102 = vmatmul.bf16.gmra.mxu0 %v2310_v20 }
  0x83   :  { %2021 = vmatmul.bf16.gmra.mxu2 %v2322_v42 }
  0x84   :  { %2064 = vmatmul.bf16.gmra.mxu3 %v2326_v38  ;;  %1978 = vmatmul.bf16.gmra.mxu1 %v2318_v41 }
  0x85   :  { %2107 = vmatmul.bf16.gmra.mxu0 %v2330_v43 }
  0x93   :  { %2026 = vmatmul.bf16.gmra.mxu2 %v2342_v51 }
  0x94   :  { %2069 = vmatmul.bf16.gmra.mxu3 %v2346_v47  ;;  %1983 = vmatmul.bf16.gmra.mxu1 %v2338_v50 }
  0x95   :  { %2112 = vmatmul.bf16.gmra.mxu0 %v2350_v52 }
  0xa0   :  { %v3137_v62 = vpop.f32.mrf.mxu1 }
  0xa1   :  { %v1916_v2 = vpop.f32.mrf.mxu0 }
  0xa2   :  { %v1917_v24 = vadd.f32 %v3142_v3, %v1916_v2 }
  0xa3   :  { %2031 = vmatmul.bf16.gmra.mxu2 %v1629_v61 }
  0xa4   :  { %2074 = vmatmul.bf16.gmra.mxu3 %v1630_v59  ;;  %1988 = vmatmul.bf16.gmra.mxu1 %v1628_v60 }
  0xa5   :  { %2117 = vmatmul.bf16.gmra.mxu0 %v1631_v63  ;;  %v1927_v63 = vadd.f32 %v3142_v3, %v3137_v62 }
  0xa6   :  { %v1936_v4 = vpop.f32.mrf.mxu2 }
  0xa7   :  { %v3145_v0 = vadd.f32 %v3142_v3, %v1936_v4 }
  0xa8   :  { %v3147_v5 = vpop.f32.mrf.mxu1 }
  0xa9   :  { %v1946_v6 = vpop.f32.mrf.mxu3  ;;  %v1918_v7 = vpop.f32.mrf.mxu0 }
  0xaa   :  { %v3150_v8 = vadd.f32 %v3142_v3, %v1946_v6  ;;  %v1919_v32 = vadd.f32 %v3142_v3, %v1918_v7 }
  0xae   :  { %v1938_v9 = vpop.f32.mrf.mxu2 }
  0xaf   :  { %v3153_v11 = vadd.f32 %v3142_v3, %v1938_v9 }
  0xb0   :  { %v3155_v12 = vpop.f32.mrf.mxu1 }
  0xb1   :  { %v1948_v13 = vpop.f32.mrf.mxu3  ;;  %v1921_v14 = vpop.f32.mrf.mxu0 }
  0xb2   :  { %v1922_v43 = vadd.f32 %v3142_v3, %v1921_v14 }
  0xb6   :  { %v1941_v16 = vpop.f32.mrf.mxu2 }
  0xb7   :  { %v3158_v17 = vadd.f32 %v3142_v3, %v1941_v16 }
  0xb8   :  { %v3160_v18 = vpop.f32.mrf.mxu1 }
  0xb9   :  { %v1923_v19 = vpop.f32.mrf.mxu0 }
  0xba   :  { %v1924_v51 = vadd.f32 %v3142_v3, %v1923_v19 }
  0xbe   :  { %v1943_v20 = vpop.f32.mrf.mxu2 }
  0xbf   :  { %v3163_v21 = vadd.f32 %v3142_v3, %v1943_v20 }
  0xc1   :  { %v1959_v22 = vpop.f32.mrf.mxu1 }
  0xc2   :  { %v2088_v23 = vpop.f32.mrf.mxu0  ;;  %v1960_v26 = vadd.f32 %v1959_v22, %v1917_v24  ;;  %v1929_v22 = vadd.f32 %v3142_v3, %v3147_v5 }
  0xc6   :  { %v2002_v27 = vpop.f32.mrf.mxu2 }
  0xc7   :  { %v2045_v25 = vpop.f32.mrf.mxu3  ;;  %v2003_v28 = vadd.f32 %v2002_v27, %v1960_v26 }
  0xc9   :  { %v1961_v29 = vpop.f32.mrf.mxu1  ;;  %v2046_v30 = vadd.f32 %v2045_v25, %v2003_v28 }
  0xca   :  { %v2090_v31 = vpop.f32.mrf.mxu0  ;;  %v1962_v36 = vadd.f32 %v1961_v29, %v1919_v32  ;;  %v1932_v32 = vadd.f32 %v3142_v3, %v3155_v12 }
  0xcb   :  { %v2089_v33 = vadd.f32 %v2088_v23, %v2046_v30 }
  0xcd   :  { %v2122_v35 = vmax.f32 %v2089_v33, 0.0 }
  0xce   :  { %v2004_v37 = vpop.f32.mrf.mxu2 }
  0xcf   :  { %v2047_v34 = vpop.f32.mrf.mxu3  ;;  %v2135_v38 = vpack.c.bf16 %v2122_v35, %v2122_v35  ;;  %v2005_v39 = vadd.f32 %v2004_v37, %v1962_v36 }
  0xd1   :  { %v1964_v40 = vpop.f32.mrf.mxu1  ;;  %2149 = vst.msk [vmem:[%s3237_s4] sm:$0xf] %vm2148_vm2, %v2135_v38  ;;  %v2048_v41 = vadd.f32 %v2047_v34, %v2005_v39 }
  0xd2   :  { %v2093_v42 = vpop.f32.mrf.mxu0  ;;  %v1965_v44 = vadd.f32 %v1964_v40, %v1922_v43 }
  0xd3   :  { %v2091_v10 = vadd.f32 %v2090_v31, %v2048_v41 }
  0xd5   :  { %v2123_v15 = vmax.f32 %v2091_v10, 0.0 }
  0xd6   :  { %v2007_v45 = vpop.f32.mrf.mxu2 }
  0xd7   :  { %v2050_v1 = vpop.f32.mrf.mxu3  ;;  %v2136_v46 = vpack.c.bf16 %v2123_v15, %v2123_v15  ;;  %v2008_v47 = vadd.f32 %v2007_v45, %v1965_v44 }
  0xd9   :  { %v1966_v48 = vpop.f32.mrf.mxu1  ;;  %2150 = vst.msk [vmem:[%s3237_s4 + $0x4] sm:$0xf] %vm2148_vm2, %v2136_v46  ;;  %v2051_v49 = vadd.f32 %v2050_v1, %v2008_v47 }
  0xda   :  { %v2095_v50 = vpop.f32.mrf.mxu0  ;;  %v1967_v55 = vadd.f32 %v1966_v48, %v1924_v51 }
  0xdb   :  { %v2094_v52 = vadd.f32 %v2093_v42, %v2051_v49  ;;  %v1934_v42 = vadd.f32 %v3142_v3, %v3160_v18 }
  0xdd   :  { %v2124_v54 = vmax.f32 %v2094_v52, 0.0 }
  0xde   :  { %v2009_v56 = vpop.f32.mrf.mxu2 }
  0xdf   :  { %v2052_v53 = vpop.f32.mrf.mxu3  ;;  %v2137_v57 = vpack.c.bf16 %v2124_v54, %v2124_v54  ;;  %v2010_v58 = vadd.f32 %v2009_v56, %v1967_v55 }
  0xe1   :  { %v1969_v59 = vpop.f32.mrf.mxu1  ;;  %2151 = vst.msk [vmem:[%s3237_s4 + $0x8] sm:$0xf] %vm2148_vm2, %v2137_v57  ;;  %v2053_v60 = vadd.f32 %v2052_v53, %v2010_v58 }
  0xe2   :  { %v2098_v61 = vpop.f32.mrf.mxu0  ;;  %v1970_v7 = vadd.f32 %v1969_v59, %v1927_v63 }
  0xe3   :  { %v2096_v2 = vadd.f32 %v2095_v50, %v2053_v60 }
  0xe5   :  { %v2125_v6 = vmax.f32 %v2096_v2, 0.0 }
  0xe6   :  { %v2012_v9 = vpop.f32.mrf.mxu2 }
  0xe7   :  { %v2055_v4 = vpop.f32.mrf.mxu3  ;;  %v2138_v13 = vpack.c.bf16 %v2125_v6, %v2125_v6  ;;  %v2013_v14 = vadd.f32 %v2012_v9, %v1970_v7 }
  0xe9   :  { %v1971_v16 = vpop.f32.mrf.mxu1  ;;  %2152 = vst.msk [vmem:[%s3237_s4 + $0xc] sm:$0xf] %vm2148_vm2, %v2138_v13  ;;  %v2056_v19 = vadd.f32 %v2055_v4, %v2013_v14 }
  0xea   :  { %v2100_v20 = vpop.f32.mrf.mxu0  ;;  %v1972_v25 = vadd.f32 %v1971_v16, %v1929_v22 }
  0xeb   :  { %v2099_v23 = vadd.f32 %v2098_v61, %v2056_v19 }
  0xed   :  { %v2126_v24 = vmax.f32 %v2099_v23, 0.0 }
  0xee   :  { %v2014_v26 = vpop.f32.mrf.mxu2 }
  0xef   :  { %v2057_v62 = vpop.f32.mrf.mxu3  ;;  %v2139_v27 = vpack.c.bf16 %v2126_v24, %v2126_v24  ;;  %v2015_v28 = vadd.f32 %v2014_v26, %v1972_v25 }
  0xf1   :  { %v1974_v29 = vpop.f32.mrf.mxu1  ;;  %2153 = vst.msk [vmem:[%s3237_s4 + $0x10] sm:$0xf] %vm2148_vm2, %v2139_v27  ;;  %v2058_v30 = vadd.f32 %v2057_v62, %v2015_v28 }
  0xf2   :  { %v2103_v31 = vpop.f32.mrf.mxu0  ;;  %v1975_v35 = vadd.f32 %v1974_v29, %v1932_v32 }
  0xf3   :  { %v2101_v33 = vadd.f32 %v2100_v20, %v2058_v30 }
  0xf5   :  { %v2127_v34 = vmax.f32 %v2101_v33, 0.0 }
  0xf6   :  { %v2017_v36 = vpop.f32.mrf.mxu2 }
  0xf7   :  { %v2060_v5 = vpop.f32.mrf.mxu3  ;;  %v2140_v37 = vpack.c.bf16 %v2127_v34, %v2127_v34  ;;  %v2018_v38 = vadd.f32 %v2017_v36, %v1975_v35 }
  0xf9   :  { %v1976_v39 = vpop.f32.mrf.mxu1  ;;  %2154 = vst.msk [vmem:[%s3237_s4 + $0x14] sm:$0xf] %vm2148_vm2, %v2140_v37  ;;  %v2061_v40 = vadd.f32 %v2060_v5, %v2018_v38 }
  0xfa   :  { %v2105_v41 = vpop.f32.mrf.mxu0  ;;  %v1977_v1 = vadd.f32 %v1976_v39, %v1934_v42 }
  0xfb   :  { %v2104_v43 = vadd.f32 %v2103_v31, %v2061_v40 }
  0xfd   :  { %v2128_v10 = vmax.f32 %v2104_v43, 0.0 }
  0xfe   :  { %v2019_v15 = vpop.f32.mrf.mxu2 }
  0xff   :  { %v2062_v12 = vpop.f32.mrf.mxu3  ;;  %v2141_v44 = vpack.c.bf16 %v2128_v10, %v2128_v10  ;;  %v2020_v45 = vadd.f32 %v2019_v15, %v1977_v1 }
 0x101   :  { %v1979_v46 = vpop.f32.mrf.mxu1  ;;  %2155 = vst.msk [vmem:[%s3237_s4 + $0x18] sm:$0xf] %vm2148_vm2, %v2141_v44  ;;  %v2063_v47 = vadd.f32 %v2062_v12, %v2020_v45 }
 0x102   :  { %v2108_v48 = vpop.f32.mrf.mxu0  ;;  %v1980_v3 = vadd.f32 %v1979_v46, %v3145_v0 }
 0x103   :  { %v2106_v49 = vadd.f32 %v2105_v41, %v2063_v47 }
 0x105   :  { %v2129_v51 = vmax.f32 %v2106_v49, 0.0 }
 0x106   :  { %v2022_v18 = vpop.f32.mrf.mxu2 }
 0x107   :  { %v2065_v50 = vpop.f32.mrf.mxu3  ;;  %v2142_v52 = vpack.c.bf16 %v2129_v51, %v2129_v51  ;;  %v2023_v53 = vadd.f32 %v2022_v18, %v1980_v3 }
 0x109   :  { %v1981_v54 = vpop.f32.mrf.mxu1  ;;  %2156 = vst.msk [vmem:[%s3237_s4 + $0x1c] sm:$0xf] %vm2148_vm2, %v2142_v52  ;;  %v2066_v55 = vadd.f32 %v2065_v50, %v2023_v53 }
 0x10a   :  { %v2110_v56 = vpop.f32.mrf.mxu0  ;;  %v1982_v60 = vadd.f32 %v1981_v54, %v3153_v11 }
 0x10b   :  { %v2109_v57 = vadd.f32 %v2108_v48, %v2066_v55 }
 0x10d   :  { %v2130_v59 = vmax.f32 %v2109_v57, 0.0 }
 0x10e   :  { %v2024_v61 = vpop.f32.mrf.mxu2 }
 0x10f   :  { %v2067_v58 = vpop.f32.mrf.mxu3  ;;  %v2143_v63 = vpack.c.bf16 %v2130_v59, %v2130_v59  ;;  %v2025_v2 = vadd.f32 %v2024_v61, %v1982_v60 }
 0x111   :  { %v1984_v0 = vpop.f32.mrf.mxu1  ;;  %2157 = vst.msk [vmem:[%s3237_s4 + $0x20] sm:$0xf] %vm2148_vm2, %v2143_v63  ;;  %v2068_v4 = vadd.f32 %v2067_v58, %v2025_v2 }
 0x112   :  { %v2113_v6 = vpop.f32.mrf.mxu0  ;;  %v1985_v14 = vadd.f32 %v1984_v0, %v3158_v17 }
 0x113   :  { %v2111_v7 = vadd.f32 %v2110_v56, %v2068_v4 }
 0x115   :  { %v2131_v13 = vmax.f32 %v2111_v7, 0.0 }
 0x116   :  { %v2027_v16 = vpop.f32.mrf.mxu2 }
 0x117   :  { %v2070_v9 = vpop.f32.mrf.mxu3  ;;  %v2144_v19 = vpack.c.bf16 %v2131_v13, %v2131_v13  ;;  %v2028_v20 = vadd.f32 %v2027_v16, %v1985_v14 }
 0x119   :  { %v1986_v11 = vpop.f32.mrf.mxu1  ;;  %2158 = vst.msk [vmem:[%s3237_s4 + $0x24] sm:$0xf] %vm2148_vm2, %v2144_v19  ;;  %v2071_v22 = vadd.f32 %v2070_v9, %v2028_v20 }
 0x11a   :  { %v2115_v23 = vpop.f32.mrf.mxu0  ;;  %v1987_v26 = vadd.f32 %v1986_v11, %v3163_v21 }
 0x11b   :  { %v2114_v62 = vadd.f32 %v2113_v6, %v2071_v22 }
 0x11d   :  { %v2132_v25 = vmax.f32 %v2114_v62, 0.0 }
 0x11e   :  { %v2029_v27 = vpop.f32.mrf.mxu2 }
 0x11f   :  { %v2072_v24 = vpop.f32.mrf.mxu3  ;;  %v2145_v28 = vpack.c.bf16 %v2132_v25, %v2132_v25  ;;  %v2030_v29 = vadd.f32 %v2029_v27, %v1987_v26 }
 0x121   :  { %v1989_v17 = vpop.f32.mrf.mxu1  ;;  %2159 = vst.msk [vmem:[%s3237_s4 + $0x28] sm:$0xf] %vm2148_vm2, %v2145_v28  ;;  %v2073_v30 = vadd.f32 %v2072_v24, %v2030_v29 }
 0x122   :  { %v2118_v31 = vpop.f32.mrf.mxu0  ;;  %v1990_v34 = vadd.f32 %v1989_v17, %v3150_v8 }
 0x123   :  { %v2116_v32 = vadd.f32 %v2115_v23, %v2073_v30 }
 0x125   :  { %v2133_v5 = vmax.f32 %v2116_v32, 0.0 }
 0x126   :  { %v2032_v35 = vpop.f32.mrf.mxu2 }
 0x127   :  { %v2075_v33 = vpop.f32.mrf.mxu3  ;;  %v2146_v36 = vpack.c.bf16 %v2133_v5, %v2133_v5  ;;  %v2033_v37 = vadd.f32 %v2032_v35, %v1990_v34 }
 0x129   :  { %v1991_v21 = vpop.f32.mrf.mxu1  ;;  %2160 = vst.msk [vmem:[%s3237_s4 + $0x2c] sm:$0xf] %vm2148_vm2, %v2146_v36  ;;  %v2076_v38 = vadd.f32 %v2075_v33, %v2033_v37 }
 0x12a   :  { %v2120_v39 = vpop.f32.mrf.mxu0 }
 0x12b   :  { %v2119_v40 = vadd.f32 %v2118_v31, %v2076_v38 }
 0x12d   :  { %v2134_v42 = vmax.f32 %v2119_v40, 0.0 }
 0x12e   :  { %v2034_v43 = vpop.f32.mrf.mxu2 }
 0x12f   :  { %v2077_v41 = vpop.f32.mrf.mxu3  ;;  %v2147_v12 = vpack.c.bf16 %v2134_v42, %v2134_v42 }
 0x131   :  { %2162 = vst.msk [vmem:[%s3237_s4 + $0x30] sm:$0x1] %vm2161_vm3, %v2147_v12 }

// kernel: actor_forward.9
= control target key start
LH: loop header
LB: loop body
LE: loop exit
PB: predicated region body
PF: predicated region fallthrough
CT: control target
= control target key end

     0   :  { %s6176_s0 = inlined_call_operand.vmem [shape: bf16[3200,512], index: 0, kind: input, shape index: {}]   ;;  %s6177_s1 = inlined_call_operand.vmem [shape: f32[1,512], index: 1, kind: input, shape index: {}]   ;;  %s6178_s2 = inlined_call_operand.vmem [shape: bf16[512,512], index: 2, kind: input, shape index: {}]   ;;  %s6179_s3 = inlined_call_operand.vmem [shape: f32[1,512], index: 3, kind: input, shape index: {}]   ;;  %s6180_s4 = inlined_call_operand.vmem [shape: bf16[512,128], index: 4, kind: input, shape index: {}]   ;;  %s6181_s5 = inlined_call_operand.vmem [shape: f32[1,128], index: 5, kind: input, shape index: {}]   ;;  %s6182_s6 = inlined_call_operand.vmem [shape: bf16[2,3136], index: 6, kind: input, shape index: {}]   ;;  %s6183_s7 = inlined_call_operand.<no memory space> [shape: bf16[], index: 7, kind: input, shape index: {}]   ;;  %s6184_s8 = inlined_call_operand.hbm [shape: f32[2,128], index: 8, kind: output, shape index: {}]  }
   0x1   :  { %v13_v0 = vstv %s6183_s7 }
   0x2   :  { %v4837_v1 = vunpack.i.l.bf16 %v13_v0 }
   0x3   :  { %18 = vsyncpa [#allocation9], 0  ;;  %s4839_s29 = smov 0  }
   0x4 LB: > { %s4845_s30 = sadd.s32 4294967295, %s4785_s29   ;;  %p3098_p0 = scmp.ge.s32.totalorder %s4785_s29, 1  ;;  %s4785_s29 = sphi %s4839_s29, %s24_s29  }
   0x5   : > { %p257_p1 = scmp.lt.s32.totalorder %s4785_s29, 6 }
   0x7   : > { %p258_p2 = pnand %p3098_p0, %p257_p1 }
   0x9   : > { %261 = sbr.rel (%p258_p2) target bundleno = 767 (0x2ff), region = 48 }
   0xe   : > { %s4850_s7 = smul.u32 5, %s4845_s30  ;;  %v316_v2 = vlaneseq  ;;  %p3110_p6 = scmp.ne.s32.totalorder %s4845_s30, 0 }
   0xf   : > { %s303_s9 = smul.u32 80, %s4845_s30 }
  0x10   : > { %p296_p3 = scmp.lt.s32.totalorder %s4850_s7, 24  ;;  %s4855_s10 = smul.u32 640, %s4845_s30  ;;  %v323_v3 = vand.u32 127, %v316_v2  ;;  %v4857_v4 = vshrl.u32 %v316_v2, 7 }
  0x11   : > { %p304_p4 = scmp.lt.s32.totalorder %s303_s9, 399  ;;  %s408_s11 = sadd.s32 4, %s4850_s7 }
  0x12   : > { %s6186_s7 = smov (!%p296_p3, %s4850_s7), 24  ;;  %v324_v5 = vstv %s4855_s10  ;;  %s4399_s15 = sadd.s32 128, %s4855_s10  ;;  %vm319_vm0 = vcmp.lt.s32.totalorder %v4857_v4, 2 }
  0x13   : > { %s6188_s9 = smov (!%p304_p4, %s303_s9), 399  ;;  %v325_v6 = vadd.s32 %v324_v5, %v323_v3  ;;  %s4865_s14 = scalar_lea.vmem %s6182_s6, %s6186_s7  ;;  %v348_v9 = vstv %s4399_s15 }
  0x14   : > { %s4396_s16 = sshll.u32 %s6188_s9, 4  ;;  %v313_v7 = vld [vmem:[%s4865_s14] sm:$0x1]  ;;  %v3102_v8 = vld [vmem:[%s4865_s14 + $0x1] sm:$0x1]  ;;  %v349_v12 = vadd.s32 %v348_v9, %v323_v3  ;;  %s4401_s20 = sadd.s32 256, %s4855_s10 }
  0x15   : > { %s4874_s19 = scalar_lea.vmem %s6176_s0, %s4396_s16  ;;  %v314_v10 = vunpack.c.l.bf16 %v313_v7  ;;  %vm326_vm1 = vcmp.lt.s32.totalorder %v325_v6, 3136  ;;  %v337_v11 = vunpack.c.l.bf16 %v3102_v8  ;;  %v3104_v13 = vld [vmem:[%s4865_s14 + $0x2] sm:$0x1]  ;;  %v3106_v14 = vld [vmem:[%s4865_s14 + $0x3] sm:$0x1]  ;;  %v373_v16 = vstv %s4401_s20  ;;  %s4403_s21 = sadd.s32 384, %s4855_s10 }
  0x16   : > { %v362_v15 = vunpack.c.l.bf16 %v3104_v13  ;;  %v387_v17 = vunpack.c.l.bf16 %v3106_v14  ;;  %s4880_s22 = ssub.s32 24, %s408_s11  ;;  %vm350_vm2 = vcmp.lt.s32.totalorder %v349_v12, 3136  ;;  %v374_v20 = vadd.s32 %v373_v16, %v323_v3  ;;  %s4405_s23 = sadd.s32 512, %s4855_s10 }
  0x17   : > { %v320_v18 = vsel %vm319_vm0, %v314_v10, %v4837_v1  ;;  %v343_v19 = vsel %vm319_vm0, %v337_v11, %v4837_v1  ;;  %p410_p5 = scmp.lt.s32.totalorder %s4880_s22, 0  ;;  %v398_v26 = vstv %s4403_s21  ;;  %v433_v30 = vstv %s4405_s23 }
  0x18   : > { %v327_v21 = vsel %vm326_vm1, %v320_v18, %v4837_v1  ;;  %v351_v22 = vsel %vm350_vm2, %v343_v19, %v4837_v1  ;;  %v368_v23 = vsel %vm319_vm0, %v362_v15, %v4837_v1  ;;  %vm375_vm3 = vcmp.lt.s32.totalorder %v374_v20, 3136 }
  0x19   : > { %v328_v24 = vpack.c.bf16 0.0, %v327_v21  ;;  %v353_v25 = vpack.c.bf16 0.0, %v351_v22  ;;  %s411_s24 = scalar_select %p410_p5, 0, 255  ;;  %v376_v27 = vsel %vm375_vm3, %v368_v23, %v4837_v1  ;;  %v393_v28 = vsel %vm319_vm0, %v387_v17, %v4837_v1 }
  0x1a   : > { %v399_v29 = vadd.s32 %v398_v26, %v323_v3  ;;  %v378_v31 = vpack.c.bf16 0.0, %v376_v27  ;;  %v421_v32 = vstv %s4880_s22  ;;  %v434_v34 = vadd.s32 %v433_v30, %v323_v3 }
  0x1b   : > { %331 = vst [vmem:[#allocation10] sm:$0x1] %v328_v24  ;;  %s412_s25 = sand.u32 3, %s411_s24  ;;  %vm422_vm5 = vcmp.lt.s32.totalorder %v421_v32, 0 }
  0x1c   : > { %356 = vst [vmem:[#allocation10 + $0x1] sm:$0x1] %v353_v25  ;;  %vm400_vm4 = vcmp.lt.s32.totalorder %v399_v29, 3136  ;;  %s413_s26 = sshrl.u32 %s412_s25, 1  ;;  %vm435_vm6 = vcmp.lt.s32.totalorder %v434_v34, 3136 }
  0x1d   : > { %381 = vst [vmem:[#allocation10 + $0x2] sm:$0x1] %v378_v31  ;;  %v401_v33 = vsel %vm400_vm4, %v393_v28, %v4837_v1  ;;  %s414_s27 = sor.u32 %s413_s26, %s412_s25 }
  0x1e   : > { %v403_v35 = vpack.c.bf16 0.0, %v401_v33  ;;  %s415_s28 = sand.u32 1, %s414_s27 }
  0x1f   : > { %v3108_v36 = vld [vmem:[%s4865_s14 + $0x4] sm:%s415_s28] }
  0x20   : > { %406 = vst [vmem:[#allocation10 + $0x3] sm:$0x1] %v403_v35  ;;  %v417_v37 = vunpack.c.l.bf16 %v3108_v36 }
  0x22   : > { %v423_v38 = vsel %vm422_vm5, %v4837_v1, %v417_v37 }
  0x23   : > { %v428_v39 = vsel %vm319_vm0, %v423_v38, %v4837_v1  ;;  %445 = sbr.rel (%p3110_p6) target bundleno = 42 (0x2a), region = 52 }
  0x24   : > { %v436_v40 = vsel %vm435_vm6, %v428_v39, %v4837_v1 }
  0x25   : > { %v438_v41 = vpack.c.bf16 0.0, %v436_v40 }
  0x27   : > { %441 = vst [vmem:[#allocation10 + $0x4] sm:$0x1] %v438_v41 }
  0x28   : > { %v4787_v42 = vmov 0.0  }
  0x29   : > { %446 = vst [vmem:[#allocation2] sm:$0xff] %v4787_v42 }
  0x2a PF: > { %v3225_v43 = vld [vmem:[%s4874_s19 + $0xe0] sm:$0xf]  ;;  %v4436_v44 = vld [vmem:[%s4874_s19 + $0xec] sm:$0xf0]  ;;  %vm1688_vm7 = vcmask 1041408   ;;  %vm1690_vm8 = vcmask 1045508  }
  0x2b   : > { %v3353_v45 = vld [vmem:[%s4874_s19 + $0x1e0] sm:$0xf]  ;;  %v3226_v46 = vor.u32 %v4436_v44, %v3225_v43  ;;  %v4468_v47 = vld [vmem:[%s4874_s19 + $0x1ec] sm:$0xf0]  ;;  %vm1692_vm9 = vcmask 1043456   ;;  %p3751_p7 = scmp.ne.s32.totalorder %s4845_s30, 4 }
  0x2c   : > { %v3481_v48 = vld [vmem:[%s4874_s19 + $0x2e0] sm:$0xf]  ;;  %v4500_v49 = vld [vmem:[%s4874_s19 + $0x2ec] sm:$0xf0]  ;;  %v3354_v50 = vor.u32 %v4468_v47, %v3353_v45 }
  0x2d   : > { %v3482_v51 = vor.u32 %v4500_v49, %v3481_v48  ;;  %v3609_v52 = vld [vmem:[%s4874_s19 + $0x3e0] sm:$0xf]  ;;  %v4532_v53 = vld [vmem:[%s4874_s19 + $0x3ec] sm:$0xf0]  ;;  %1421 = vmatpush.bf16.msra.mxu0 %v3226_v46 }
  0x2e   : > { %v3209_v54 = vld [vmem:[%s4874_s19 + $0xc0] sm:$0xf]  ;;  %v3610_v55 = vor.u32 %v4532_v53, %v3609_v52  ;;  %v4432_v56 = vld [vmem:[%s4874_s19 + $0xcc] sm:$0xf0]  ;;  %1434 = vmatpush.bf16.msra.mxu1 %v3354_v50 }
  0x2f   : > { %v3337_v57 = vld [vmem:[%s4874_s19 + $0x1c0] sm:$0xf]  ;;  %v4464_v58 = vld [vmem:[%s4874_s19 + $0x1cc] sm:$0xf0]  ;;  %1447 = vmatpush.bf16.msra.mxu2 %v3482_v51  ;;  %v3210_v59 = vor.u32 %v4432_v56, %v3209_v54 }
  0x30   : > { %v3338_v60 = vor.u32 %v4464_v58, %v3337_v57  ;;  %v3465_v61 = vld [vmem:[%s4874_s19 + $0x2c0] sm:$0xf]  ;;  %v4496_v62 = vld [vmem:[%s4874_s19 + $0x2cc] sm:$0xf0]  ;;  %1460 = vmatpush.bf16.msra.mxu3 %v3610_v55 }
  0x31   : > { %v3593_v63 = vld [vmem:[%s4874_s19 + $0x3c0] sm:$0xf]  ;;  %v3466_v0 = vor.u32 %v4496_v62, %v3465_v61  ;;  %v4528_v2 = vld [vmem:[%s4874_s19 + $0x3cc] sm:$0xf0]  ;;  %1422 = vmatpush.bf16.msra.mxu0 %v3210_v59 }
  0x32   : > { %v3193_v3 = vld [vmem:[%s4874_s19 + $0xa0] sm:$0xf]  ;;  %v4428_v4 = vld [vmem:[%s4874_s19 + $0xac] sm:$0xf0]  ;;  %v3594_v5 = vor.u32 %v4528_v2, %v3593_v63  ;;  %1435 = vmatpush.bf16.msra.mxu1 %v3338_v60 }
  0x33   : > { %v3321_v6 = vld [vmem:[%s4874_s19 + $0x1a0] sm:$0xf]  ;;  %v4460_v7 = vld [vmem:[%s4874_s19 + $0x1ac] sm:$0xf0]  ;;  %v3194_v9 = vor.u32 %v4428_v4, %v3193_v3  ;;  %1448 = vmatpush.bf16.msra.mxu2 %v3466_v0 }
  0x34   : > { %v3449_v8 = vld [vmem:[%s4874_s19 + $0x2a0] sm:$0xf]  ;;  %v4492_v10 = vld [vmem:[%s4874_s19 + $0x2ac] sm:$0xf0]  ;;  %v3322_v13 = vor.u32 %v4460_v7, %v3321_v6  ;;  %1461 = vmatpush.bf16.msra.mxu3 %v3594_v5 }
  0x35   : > { %v3577_v11 = vld [vmem:[%s4874_s19 + $0x3a0] sm:$0xf]  ;;  %v4524_v12 = vld [vmem:[%s4874_s19 + $0x3ac] sm:$0xf0]  ;;  %v3450_v14 = vor.u32 %v4492_v10, %v3449_v8  ;;  %1423 = vmatpush.bf16.msra.mxu0 %v3194_v9 }
  0x36   : > { %v3177_v15 = vld [vmem:[%s4874_s19 + $0x80] sm:$0xf]  ;;  %v4424_v16 = vld [vmem:[%s4874_s19 + $0x8c] sm:$0xf0]  ;;  %v3578_v18 = vor.u32 %v4524_v12, %v3577_v11  ;;  %1436 = vmatpush.bf16.msra.mxu1 %v3322_v13  ;;  %v4434_v11 = vld [vmem:[%s4874_s19 + $0xe4] sm:$0xf] }
  0x37   : > { %v3305_v17 = vld [vmem:[%s4874_s19 + $0x180] sm:$0xf]  ;;  %v4456_v19 = vld [vmem:[%s4874_s19 + $0x18c] sm:$0xf0]  ;;  %v3178_v24 = vor.u32 %v4424_v16, %v3177_v15  ;;  %1449 = vmatpush.bf16.msra.mxu2 %v3450_v14  ;;  %v3227_v13 = vld [vmem:[%s4874_s19 + $0xf0] sm:$0xf0] }
  0x38   : > { %v3433_v20 = vld [vmem:[%s4874_s19 + $0x280] sm:$0xf]  ;;  %v4488_v21 = vld [vmem:[%s4874_s19 + $0x28c] sm:$0xf0]  ;;  %v3306_v25 = vor.u32 %v4456_v19, %v3305_v17  ;;  %1462 = vmatpush.bf16.msra.mxu3 %v3578_v18  ;;  %v4466_v14 = vld [vmem:[%s4874_s19 + $0x1e4] sm:$0xf] }
  0x39   : > { %v3561_v22 = vld [vmem:[%s4874_s19 + $0x380] sm:$0xf]  ;;  %v4520_v23 = vld [vmem:[%s4874_s19 + $0x38c] sm:$0xf0]  ;;  %v3434_v26 = vor.u32 %v4488_v21, %v3433_v20  ;;  %1424 = vmatpush.bf16.msra.mxu0 %v3178_v24  ;;  %v3355_v15 = vld [vmem:[%s4874_s19 + $0x1f0] sm:$0xf0] }
  0x3a   : > { %v3161_v27 = vld [vmem:[%s4874_s19 + $0x60] sm:$0xf]  ;;  %v4420_v28 = vld [vmem:[%s4874_s19 + $0x6c] sm:$0xf0]  ;;  %v3562_v30 = vor.u32 %v4520_v23, %v3561_v22  ;;  %1437 = vmatpush.bf16.msra.mxu1 %v3306_v25  ;;  %v4498_v18 = vld [vmem:[%s4874_s19 + $0x2e4] sm:$0xf]  ;;  %v3230_v22 = vor.u32 %v4434_v11, %v3227_v13  ;;  %v3358_v23 = vor.u32 %v4466_v14, %v3355_v15 }
  0x3b   : > { %v3289_v29 = vld [vmem:[%s4874_s19 + $0x160] sm:$0xf]  ;;  %v4452_v31 = vld [vmem:[%s4874_s19 + $0x16c] sm:$0xf0]  ;;  %v3162_v36 = vor.u32 %v4420_v28, %v3161_v27  ;;  %1450 = vmatpush.bf16.msra.mxu2 %v3434_v26  ;;  %v3483_v19 = vld [vmem:[%s4874_s19 + $0x2f0] sm:$0xf0] }
  0x3c   : > { %v3417_v32 = vld [vmem:[%s4874_s19 + $0x260] sm:$0xf]  ;;  %v4484_v33 = vld [vmem:[%s4874_s19 + $0x26c] sm:$0xf0]  ;;  %v3290_v37 = vor.u32 %v4452_v31, %v3289_v29  ;;  %1463 = vmatpush.bf16.msra.mxu3 %v3562_v30  ;;  %v4430_v26 = vld [vmem:[%s4874_s19 + $0xc4] sm:$0xf]  ;;  %v3486_v27 = vor.u32 %v4498_v18, %v3483_v19 }
  0x3d   : > { %v3545_v34 = vld [vmem:[%s4874_s19 + $0x360] sm:$0xf]  ;;  %v4516_v35 = vld [vmem:[%s4874_s19 + $0x36c] sm:$0xf0]  ;;  %v3418_v38 = vor.u32 %v4484_v33, %v3417_v32  ;;  %1425 = vmatpush.bf16.msra.mxu0 %v3162_v36  ;;  %v3211_v28 = vld [vmem:[%s4874_s19 + $0xd0] sm:$0xf0] }
  0x3e   : > { %v3145_v39 = vld [vmem:[%s4874_s19 + $0x40] sm:$0xf]  ;;  %v4416_v40 = vld [vmem:[%s4874_s19 + $0x4c] sm:$0xf0]  ;;  %v3546_v42 = vor.u32 %v4516_v35, %v3545_v34  ;;  %1438 = vmatpush.bf16.msra.mxu1 %v3290_v37  ;;  %v4462_v29 = vld [vmem:[%s4874_s19 + $0x1c4] sm:$0xf]  ;;  %v3214_v34 = vor.u32 %v4430_v26, %v3211_v28 }
  0x3f   : > { %v3273_v41 = vld [vmem:[%s4874_s19 + $0x140] sm:$0xf]  ;;  %v4448_v43 = vld [vmem:[%s4874_s19 + $0x14c] sm:$0xf0]  ;;  %v3146_v48 = vor.u32 %v4416_v40, %v3145_v39  ;;  %1451 = vmatpush.bf16.msra.mxu2 %v3418_v38  ;;  %v3339_v30 = vld [vmem:[%s4874_s19 + $0x1d0] sm:$0xf0] }
  0x40   : > { %v3401_v44 = vld [vmem:[%s4874_s19 + $0x240] sm:$0xf]  ;;  %v4480_v45 = vld [vmem:[%s4874_s19 + $0x24c] sm:$0xf0]  ;;  %v3274_v49 = vor.u32 %v4448_v43, %v3273_v41  ;;  %1464 = vmatpush.bf16.msra.mxu3 %v3546_v42  ;;  %v4494_v31 = vld [vmem:[%s4874_s19 + $0x2c4] sm:$0xf]  ;;  %v3342_v35 = vor.u32 %v4462_v29, %v3339_v30 }
  0x41   : > { %v3529_v46 = vld [vmem:[%s4874_s19 + $0x340] sm:$0xf]  ;;  %v4512_v47 = vld [vmem:[%s4874_s19 + $0x34c] sm:$0xf0]  ;;  %v3402_v50 = vor.u32 %v4480_v45, %v3401_v44  ;;  %1426 = vmatpush.bf16.msra.mxu0 %v3146_v48  ;;  %v3467_v32 = vld [vmem:[%s4874_s19 + $0x2d0] sm:$0xf0] }
  0x42   : > { %v3129_v51 = vld [vmem:[%s4874_s19 + $0x20] sm:$0xf]  ;;  %v4412_v52 = vld [vmem:[%s4874_s19 + $0x2c] sm:$0xf0]  ;;  %v3530_v54 = vor.u32 %v4512_v47, %v3529_v46  ;;  %1439 = vmatpush.bf16.msra.mxu1 %v3274_v49  ;;  %v4426_v38 = vld [vmem:[%s4874_s19 + $0xa4] sm:$0xf]  ;;  %v3470_v39 = vor.u32 %v4494_v31, %v3467_v32 }
  0x43   : > { %v3257_v53 = vld [vmem:[%s4874_s19 + $0x120] sm:$0xf]  ;;  %v4444_v55 = vld [vmem:[%s4874_s19 + $0x12c] sm:$0xf0]  ;;  %v3130_v60 = vor.u32 %v4412_v52, %v3129_v51  ;;  %1452 = vmatpush.bf16.msra.mxu2 %v3402_v50  ;;  %v3195_v40 = vld [vmem:[%s4874_s19 + $0xb0] sm:$0xf0] }
  0x44   : > { %v3385_v56 = vld [vmem:[%s4874_s19 + $0x220] sm:$0xf]  ;;  %v4476_v57 = vld [vmem:[%s4874_s19 + $0x22c] sm:$0xf0]  ;;  %v3258_v63 = vor.u32 %v4444_v55, %v3257_v53  ;;  %1465 = vmatpush.bf16.msra.mxu3 %v3530_v54  ;;  %v4458_v41 = vld [vmem:[%s4874_s19 + $0x1a4] sm:$0xf]  ;;  %v3198_v48 = vor.u32 %v4426_v38, %v3195_v40 }
  0x45   : > { %v3513_v58 = vld [vmem:[%s4874_s19 + $0x320] sm:$0xf]  ;;  %v4508_v59 = vld [vmem:[%s4874_s19 + $0x32c] sm:$0xf0]  ;;  %v3386_v0 = vor.u32 %v4476_v57, %v3385_v56  ;;  %1427 = vmatpush.bf16.msra.mxu0 %v3130_v60  ;;  %v3323_v42 = vld [vmem:[%s4874_s19 + $0x1b0] sm:$0xf0] }
  0x46   : > { %v3113_v61 = vld [vmem:[%s4874_s19] sm:$0xf]  ;;  %v4408_v62 = vld [vmem:[%s4874_s19 + $0xc] sm:$0xf0]  ;;  %v3514_v5 = vor.u32 %v4508_v59, %v3513_v58  ;;  %1440 = vmatpush.bf16.msra.mxu1 %v3258_v63  ;;  %v4490_v43 = vld [vmem:[%s4874_s19 + $0x2a4] sm:$0xf]  ;;  %v3326_v49 = vor.u32 %v4458_v41, %v3323_v42 }
  0x47   : > { %v3241_v2 = vld [vmem:[%s4874_s19 + $0x100] sm:$0xf]  ;;  %v4440_v3 = vld [vmem:[%s4874_s19 + $0x10c] sm:$0xf0]  ;;  %v3114_v12 = vor.u32 %v4408_v62, %v3113_v61  ;;  %1453 = vmatpush.bf16.msra.mxu2 %v3386_v0  ;;  %v3451_v44 = vld [vmem:[%s4874_s19 + $0x2b0] sm:$0xf0] }
  0x48   : > { %v3369_v4 = vld [vmem:[%s4874_s19 + $0x200] sm:$0xf]  ;;  %v4472_v6 = vld [vmem:[%s4874_s19 + $0x20c] sm:$0xf0]  ;;  %v3242_v16 = vor.u32 %v4440_v3, %v3241_v2  ;;  %1466 = vmatpush.bf16.msra.mxu3 %v3514_v5  ;;  %v4422_v51 = vld [vmem:[%s4874_s19 + $0x84] sm:$0xf]  ;;  %v3454_v52 = vor.u32 %v4490_v43, %v3451_v44 }
  0x49   : > { %v3497_v7 = vld [vmem:[%s4874_s19 + $0x300] sm:$0xf]  ;;  %v4504_v8 = vld [vmem:[%s4874_s19 + $0x30c] sm:$0xf0]  ;;  %v3370_v17 = vor.u32 %v4472_v6, %v3369_v4  ;;  %1428 = vmatpush.bf16.msra.mxu0 %v3114_v12  ;;  %v3179_v53 = vld [vmem:[%s4874_s19 + $0x90] sm:$0xf0] }
  0x4a   : > { %v3737_v9 = vld [vmem:[%s4874_s19 + $0x4e0] sm:$0xf]  ;;  %v4564_v10 = vld [vmem:[%s4874_s19 + $0x4ec] sm:$0xf0]  ;;  %v3498_v20 = vor.u32 %v4504_v8, %v3497_v7  ;;  %1441 = vmatpush.bf16.msra.mxu1 %v3242_v16  ;;  %v4454_v54 = vld [vmem:[%s4874_s19 + $0x184] sm:$0xf]  ;;  %v3182_v59 = vor.u32 %v4422_v51, %v3179_v53 }
  0x4b   : > { %v3738_v21 = vor.u32 %v4564_v10, %v3737_v9  ;;  %v3721_v24 = vld [vmem:[%s4874_s19 + $0x4c0] sm:$0xf]  ;;  %v4560_v25 = vld [vmem:[%s4874_s19 + $0x4cc] sm:$0xf0]  ;;  %1454 = vmatpush.bf16.msra.mxu2 %v3370_v17  ;;  %v3307_v55 = vld [vmem:[%s4874_s19 + $0x190] sm:$0xf0] }
  0x4c   : > { %1467 = vmatpush.bf16.msra.mxu3 %v3498_v20  ;;  %v3722_v33 = vor.u32 %v4560_v25, %v3721_v24  ;;  %v3705_v36 = vld [vmem:[%s4874_s19 + $0x4a0] sm:$0xf]  ;;  %v4556_v37 = vld [vmem:[%s4874_s19 + $0x4ac] sm:$0xf0]  ;;  %v4486_v56 = vld [vmem:[%s4874_s19 + $0x284] sm:$0xf]  ;;  %v3310_v60 = vor.u32 %v4454_v54, %v3307_v55 }
  0x4d   : > { %1473 = vmatpush.bf16.msrb.mxu0 %v3738_v21  ;;  %v3706_v45 = vor.u32 %v4556_v37, %v3705_v36  ;;  %v3689_v46 = vld [vmem:[%s4874_s19 + $0x480] sm:$0xf]  ;;  %v448_v47 = vld [vmem:[#allocation10] sm:$0x1f]  ;;  %v4418_v63 = vld [vmem:[%s4874_s19 + $0x64] sm:$0xf] }
  0x4e   : > { %1486 = vmatpush.bf16.msrb.mxu1 %v3230_v22  ;;  %v4552_v50 = vld [vmem:[%s4874_s19 + $0x48c] sm:$0xf0]  ;;  %610 = vst [vmem:[#allocation1] ss:$9 sm:$0xff] %v448_v47  ;;  %v3435_v57 = vld [vmem:[%s4874_s19 + $0x290] sm:$0xf0] }
  0x4f   : > { %1499 = vmatpush.bf16.msrb.mxu2 %v3358_v23  ;;  %v3690_v58 = vor.u32 %v4552_v50, %v3689_v46  ;;  %v3673_v61 = vld [vmem:[%s4874_s19 + $0x460] sm:$0xf]  ;;  %v4548_v62 = vld [vmem:[%s4874_s19 + $0x46c] sm:$0xf0]  ;;  %v3438_v0 = vor.u32 %v4486_v56, %v3435_v57  ;;  %v3163_v2 = vld [vmem:[%s4874_s19 + $0x70] sm:$0xf0] }
  0x50   : > { %1512 = vmatpush.bf16.msrb.mxu3 %v3486_v27  ;;  %v4450_v3 = vld [vmem:[%s4874_s19 + $0x164] sm:$0xf]  ;;  %v3291_v4 = vld [vmem:[%s4874_s19 + $0x170] sm:$0xf0]  ;;  %v3657_v7 = vld [vmem:[%s4874_s19 + $0x440] sm:$0xf]  ;;  %v3674_v8 = vor.u32 %v4548_v62, %v3673_v61  ;;  %v3166_v12 = vor.u32 %v4418_v63, %v3163_v2 }
  0x51   : > { %1474 = vmatpush.bf16.msrb.mxu0 %v3722_v33  ;;  %v4482_v5 = vld [vmem:[%s4874_s19 + $0x264] sm:$0xf]  ;;  %v3419_v6 = vld [vmem:[%s4874_s19 + $0x270] sm:$0xf0]  ;;  %v3294_v13 = vor.u32 %v4450_v3, %v3291_v4  ;;  %v4544_v14 = vld [vmem:[%s4874_s19 + $0x44c] sm:$0xf0] }
  0x52   : > { %1487 = vmatpush.bf16.msrb.mxu1 %v3214_v34  ;;  %v4414_v15 = vld [vmem:[%s4874_s19 + $0x44] sm:$0xf]  ;;  %v3422_v17 = vor.u32 %v4482_v5, %v3419_v6  ;;  %v3147_v18 = vld [vmem:[%s4874_s19 + $0x50] sm:$0xf0]  ;;  %v3658_v23 = vor.u32 %v4544_v14, %v3657_v7  ;;  %v3641_v26 = vld [vmem:[%s4874_s19 + $0x420] sm:$0xf] }
  0x53   : > { %1500 = vmatpush.bf16.msrb.mxu2 %v3342_v35  ;;  %v4446_v19 = vld [vmem:[%s4874_s19 + $0x144] sm:$0xf]  ;;  %v3275_v20 = vld [vmem:[%s4874_s19 + $0x150] sm:$0xf0]  ;;  %v3150_v24 = vor.u32 %v4414_v15, %v3147_v18  ;;  %v4540_v27 = vld [vmem:[%s4874_s19 + $0x42c] sm:$0xf0] }
  0x54   : > { %1513 = vmatpush.bf16.msrb.mxu3 %v3470_v39  ;;  %v4478_v21 = vld [vmem:[%s4874_s19 + $0x244] sm:$0xf]  ;;  %v3403_v22 = vld [vmem:[%s4874_s19 + $0x250] sm:$0xf0]  ;;  %v3278_v25 = vor.u32 %v4446_v19, %v3275_v20  ;;  %v3642_v35 = vor.u32 %v4540_v27, %v3641_v26  ;;  %v3625_v36 = vld [vmem:[%s4874_s19 + $0x400] sm:$0xf] }
  0x55   : > { %1475 = vmatpush.bf16.msrb.mxu0 %v3706_v45  ;;  %v5014_v9 = vld [vmem:[#allocation1] sm:$0xff]  ;;  %v5016_v10 = vld [vmem:[#allocation1 + $0x12] sm:$0xff]  ;;  %v5022_v16 = vld [vmem:[#allocation1 + $0x9] sm:$0xff]  ;;  %v3406_v29 = vor.u32 %v4478_v21, %v3403_v22 }
  0x56   : > { %1488 = vmatpush.bf16.msrb.mxu1 %v3198_v48  ;;  %v5018_v11 = vld [vmem:[#allocation1 + $0x1b] sm:$0xff]  ;;  %1429 = vmatmul.bf16.vlgmr.msra.gmra.mxu0 %v5014_v9  ;;  %v4410_v28 = vld [vmem:[%s4874_s19 + $0x24] sm:$0xf]  ;;  %v3131_v30 = vld [vmem:[%s4874_s19 + $0x30] sm:$0xf0] }
  0x57   : > { %1501 = vmatpush.bf16.msrb.mxu2 %v3326_v49  ;;  %1468 = vmatmul.bf16.vlgmr.msra.gmra.mxu3 %v5018_v11  ;;  %v4442_v31 = vld [vmem:[%s4874_s19 + $0x124] sm:$0xf]  ;;  %v3259_v32 = vld [vmem:[%s4874_s19 + $0x130] sm:$0xf0]  ;;  %v4536_v37 = vld [vmem:[%s4874_s19 + $0x40c] sm:$0xf0]  ;;  %v3134_v38 = vor.u32 %v4410_v28, %v3131_v30 }
  0x58   : > { %1514 = vmatpush.bf16.msrb.mxu3 %v3454_v52  ;;  %1455 = vmatmul.bf16.vlgmr.msra.gmra.mxu2 %v5016_v10  ;;  %v4474_v33 = vld [vmem:[%s4874_s19 + $0x224] sm:$0xf]  ;;  %v3387_v34 = vld [vmem:[%s4874_s19 + $0x230] sm:$0xf0]  ;;  %v3262_v39 = vor.u32 %v4442_v31, %v3259_v32  ;;  %v3626_v50 = vor.u32 %v4536_v37, %v3625_v36  ;;  %v3233_v52 = vld [vmem:[%s4874_s19 + $0xe8] sm:$0xf] }
  0x59   : > { %1476 = vmatpush.bf16.msrb.mxu0 %v3690_v58  ;;  %1442 = vmatmul.bf16.vlgmr.msra.gmra.mxu1 %v5022_v16  ;;  %v4406_v40 = vld [vmem:[%s4874_s19 + $0x4] sm:$0xf]  ;;  %v3115_v41 = vld [vmem:[%s4874_s19 + $0x10] sm:$0xf0]  ;;  %v3390_v43 = vor.u32 %v4474_v33, %v3387_v34  ;;  %v4437_v53 = vld [vmem:[%s4874_s19 + $0xf4] sm:$0xf0] }
  0x5a   : > { %1489 = vmatpush.bf16.msrb.mxu1 %v3182_v59  ;;  %v4438_v42 = vld [vmem:[%s4874_s19 + $0x104] sm:$0xf]  ;;  %v3243_v44 = vld [vmem:[%s4874_s19 + $0x110] sm:$0xf0]  ;;  %v3118_v54 = vor.u32 %v4406_v40, %v3115_v41  ;;  %v3361_v56 = vld [vmem:[%s4874_s19 + $0x1e8] sm:$0xf]  ;;  %v3234_v61 = vor.u32 %v4437_v53, %v3233_v52 }
  0x5b   : > { %1502 = vmatpush.bf16.msrb.mxu2 %v3310_v60  ;;  %v4470_v45 = vld [vmem:[%s4874_s19 + $0x204] sm:$0xf]  ;;  %v3371_v46 = vld [vmem:[%s4874_s19 + $0x210] sm:$0xf0]  ;;  %v3246_v55 = vor.u32 %v4438_v42, %v3243_v44  ;;  %v4469_v57 = vld [vmem:[%s4874_s19 + $0x1f4] sm:$0xf0] }
  0x5c   : > { %1515 = vmatpush.bf16.msrb.mxu3 %v3438_v0  ;;  %v4530_v47 = vld [vmem:[%s4874_s19 + $0x3e4] sm:$0xf]  ;;  %v3611_v48 = vld [vmem:[%s4874_s19 + $0x3f0] sm:$0xf0]  ;;  %v3374_v58 = vor.u32 %v4470_v45, %v3371_v46  ;;  %v3362_v2 = vor.u32 %v4469_v57, %v3361_v56  ;;  %v3217_v4 = vld [vmem:[%s4874_s19 + $0xc8] sm:$0xf] }
  0x5d   : > { %1477 = vmatpush.bf16.msrb.mxu0 %v3674_v8  ;;  %v4562_v49 = vld [vmem:[%s4874_s19 + $0x4e4] sm:$0xf]  ;;  %v3739_v51 = vld [vmem:[%s4874_s19 + $0x4f0] sm:$0xf0]  ;;  %v3614_v59 = vor.u32 %v4530_v47, %v3611_v48  ;;  %v4433_v5 = vld [vmem:[%s4874_s19 + $0xd4] sm:$0xf0] }
  0x5e   : > { %1490 = vmatpush.bf16.msrb.mxu1 %v3166_v12  ;;  %v3742_v60 = vor.u32 %v4562_v49, %v3739_v51  ;;  %v4526_v62 = vld [vmem:[%s4874_s19 + $0x3c4] sm:$0xf]  ;;  %v3595_v63 = vld [vmem:[%s4874_s19 + $0x3d0] sm:$0xf0]  ;;  %v3345_v6 = vld [vmem:[%s4874_s19 + $0x1c8] sm:$0xf]  ;;  %v3218_v14 = vor.u32 %v4433_v5, %v3217_v4 }
  0x5f   : > { %1503 = vmatpush.bf16.msrb.mxu2 %v3294_v13  ;;  %v4558_v0 = vld [vmem:[%s4874_s19 + $0x4c4] sm:$0xf]  ;;  %v3723_v3 = vld [vmem:[%s4874_s19 + $0x4d0] sm:$0xf0]  ;;  %v4465_v7 = vld [vmem:[%s4874_s19 + $0x1d4] sm:$0xf0]  ;;  %v3598_v12 = vor.u32 %v4526_v62, %v3595_v63 }
  0x60   : > { %1516 = vmatpush.bf16.msrb.mxu3 %v3422_v17  ;;  %v5065_v8 = vld [vmem:[#allocation1 + $0x24] sm:$0xff]  ;;  %v3726_v13 = vor.u32 %v4558_v0, %v3723_v3  ;;  %v3579_v17 = vld [vmem:[%s4874_s19 + $0x3b0] sm:$0xf0]  ;;  %v3346_v19 = vor.u32 %v4465_v7, %v3345_v6  ;;  %v4429_v22 = vld [vmem:[%s4874_s19 + $0xb4] sm:$0xf0] }
  0x61   : > { %1478 = vmatpush.bf16.msrb.mxu0 %v3658_v23  ;;  %v4522_v15 = vld [vmem:[%s4874_s19 + $0x3a4] sm:$0xf]  ;;  %v3707_v20 = vld [vmem:[%s4874_s19 + $0x4b0] sm:$0xf0]  ;;  %v3201_v21 = vld [vmem:[%s4874_s19 + $0xa8] sm:$0xf] }
  0x62   : > { %1491 = vmatpush.bf16.msrb.mxu1 %v3150_v24  ;;  %v4554_v18 = vld [vmem:[%s4874_s19 + $0x4a4] sm:$0xf]  ;;  %v3329_v23 = vld [vmem:[%s4874_s19 + $0x1a8] sm:$0xf]  ;;  %v4461_v24 = vld [vmem:[%s4874_s19 + $0x1b4] sm:$0xf0]  ;;  %v3202_v27 = vor.u32 %v4429_v22, %v3201_v21 }
  0x63   : > { %1504 = vmatpush.bf16.msrb.mxu2 %v3278_v25  ;;  %v3582_v25 = vor.u32 %v4522_v15, %v3579_v17  ;;  %v3710_v26 = vor.u32 %v4554_v18, %v3707_v20  ;;  %v4518_v28 = vld [vmem:[%s4874_s19 + $0x384] sm:$0xf]  ;;  %v3330_v31 = vor.u32 %v4461_v24, %v3329_v23  ;;  %v3691_v32 = vld [vmem:[%s4874_s19 + $0x490] sm:$0xf0]  ;;  %v3185_v33 = vld [vmem:[%s4874_s19 + $0x88] sm:$0xf] }
  0x64   : > { %1517 = vmatpush.bf16.msrb.mxu3 %v3406_v29  ;;  %v3563_v29 = vld [vmem:[%s4874_s19 + $0x390] sm:$0xf0]  ;;  %v4550_v30 = vld [vmem:[%s4874_s19 + $0x484] sm:$0xf]  ;;  %v4425_v34 = vld [vmem:[%s4874_s19 + $0x94] sm:$0xf0] }
  0x65   : > { %1479 = vmatpush.bf16.msrb.mxu0 %v3642_v35  ;;  %v3313_v35 = vld [vmem:[%s4874_s19 + $0x188] sm:$0xf]  ;;  %v4457_v36 = vld [vmem:[%s4874_s19 + $0x194] sm:$0xf0]  ;;  %v3566_v37 = vor.u32 %v4518_v28, %v3563_v29  ;;  %v4514_v40 = vld [vmem:[%s4874_s19 + $0x364] sm:$0xf] }
  0x66   : > { %1492 = vmatpush.bf16.msrb.mxu1 %v3134_v38  ;;  %v3694_v38 = vor.u32 %v4550_v30, %v3691_v32  ;;  %v3547_v41 = vld [vmem:[%s4874_s19 + $0x370] sm:$0xf0]  ;;  %v4546_v42 = vld [vmem:[%s4874_s19 + $0x464] sm:$0xf]  ;;  %v3169_v45 = vld [vmem:[%s4874_s19 + $0x68] sm:$0xf] }
  0x67   : > { %1505 = vmatpush.bf16.msrb.mxu2 %v3262_v39  ;;  %v3186_v39 = vor.u32 %v4425_v34, %v3185_v33  ;;  %v3675_v44 = vld [vmem:[%s4874_s19 + $0x470] sm:$0xf0]  ;;  %v4421_v46 = vld [vmem:[%s4874_s19 + $0x74] sm:$0xf0]  ;;  %v3297_v47 = vld [vmem:[%s4874_s19 + $0x168] sm:$0xf]  ;;  %v3550_v49 = vor.u32 %v4514_v40, %v3547_v41 }
  0x68   : > { %1518 = vmatpush.bf16.msrb.mxu3 %v3390_v43  ;;  %v3314_v43 = vor.u32 %v4457_v36, %v3313_v35  ;;  %v4453_v48 = vld [vmem:[%s4874_s19 + $0x174] sm:$0xf0]  ;;  %v3170_v51 = vor.u32 %v4421_v46, %v3169_v45  ;;  %v4510_v52 = vld [vmem:[%s4874_s19 + $0x344] sm:$0xf]  ;;  %v3531_v53 = vld [vmem:[%s4874_s19 + $0x350] sm:$0xf0] }
  0x69   : > { %1480 = vmatpush.bf16.msrb.mxu0 %v3626_v50  ;;  %v3678_v50 = vor.u32 %v4546_v42, %v3675_v44  ;;  %v3659_v56 = vld [vmem:[%s4874_s19 + $0x450] sm:$0xf0]  ;;  %v3153_v57 = vld [vmem:[%s4874_s19 + $0x48] sm:$0xf]  ;;  %v4506_v0 = vld [vmem:[%s4874_s19 + $0x324] sm:$0xf] }
  0x6a   : > { %1493 = vmatpush.bf16.msrb.mxu1 %v3118_v54  ;;  %v4542_v54 = vld [vmem:[%s4874_s19 + $0x444] sm:$0xf]  ;;  %v3643_v5 = vld [vmem:[%s4874_s19 + $0x430] sm:$0xf0]  ;;  %v3137_v6 = vld [vmem:[%s4874_s19 + $0x28] sm:$0xf] }
  0x6b   : > { %1506 = vmatpush.bf16.msrb.mxu2 %v3246_v55  ;;  %v3298_v55 = vor.u32 %v4453_v48, %v3297_v47  ;;  %v3662_v62 = vor.u32 %v4542_v54, %v3659_v56  ;;  %v4538_v3 = vld [vmem:[%s4874_s19 + $0x424] sm:$0xf]  ;;  %v4413_v7 = vld [vmem:[%s4874_s19 + $0x34] sm:$0xf0]  ;;  %v3499_v17 = vld [vmem:[%s4874_s19 + $0x310] sm:$0xf0] }
  0x6c   : > { %1519 = vmatpush.bf16.msrb.mxu3 %v3374_v58  ;;  %1481 = vmatmul.bf16.vlgmr.msrb.gmra.mxu0 %v5065_v8  ;;  %v4417_v58 = vld [vmem:[%s4874_s19 + $0x54] sm:$0xf0]  ;;  %v4502_v15 = vld [vmem:[%s4874_s19 + $0x304] sm:$0xf]  ;;  %v3646_v18 = vor.u32 %v4538_v3, %v3643_v5  ;;  %v3627_v21 = vld [vmem:[%s4874_s19 + $0x410] sm:$0xf0] }
  0x6d   : > { %1525 = vmatpush.bf16.msra.mxu0 %v3614_v59  ;;  %1494 = vmatmul.bf16.vlgmr.msrb.gmra.mxu1 %v5014_v9  ;;  %v3281_v59 = vld [vmem:[%s4874_s19 + $0x148] sm:$0xf]  ;;  %v3154_v63 = vor.u32 %v4417_v58, %v3153_v57  ;;  %v4534_v20 = vld [vmem:[%s4874_s19 + $0x404] sm:$0xf]  ;;  %v4409_v24 = vld [vmem:[%s4874_s19 + $0x14] sm:$0xf0]  ;;  %v3502_v30 = vor.u32 %v4502_v15, %v3499_v17 }
  0x6e   : > { %1538 = vmatpush.bf16.msra.mxu1 %v3742_v60  ;;  %1507 = vmatmul.bf16.vlgmr.msrb.gmra.mxu2 %v5022_v16  ;;  %v4449_v60 = vld [vmem:[%s4874_s19 + $0x154] sm:$0xf0]  ;;  %v3121_v22 = vld [vmem:[%s4874_s19 + $0x8] sm:$0xf]  ;;  %v3630_v34 = vor.u32 %v4534_v20, %v3627_v21  ;;  %v4435_v36 = vld [vmem:[%s4874_s19 + $0xec] sm:$0xf] }
  0x6f   : > { %1551 = vmatpush.bf16.msra.mxu2 %v3234_v61  ;;  %1520 = vmatmul.bf16.vlgmr.msrb.gmra.mxu3 %v5016_v10  ;;  %v3534_v61 = vor.u32 %v4510_v52, %v3531_v53  ;;  %v3282_v4 = vor.u32 %v4449_v60, %v3281_v59  ;;  %v4501_v28 = vld [vmem:[%s4874_s19 + $0x2f4] sm:$0xf0]  ;;  %v3617_v29 = vld [vmem:[%s4874_s19 + $0x3e8] sm:$0xf]  ;;  %v3122_v35 = vor.u32 %v4409_v24, %v3121_v22  ;;  %v3187_v15 = vld [vmem:[%s4874_s19 + $0x98] sm:$0xf0] }
  0x70   : > { %1564 = vmatpush.bf16.msra.mxu3 %v3362_v2  ;;  %v3515_v2 = vld [vmem:[%s4874_s19 + $0x330] sm:$0xf0]  ;;  %v3745_v32 = vld [vmem:[%s4874_s19 + $0x4e8] sm:$0xf]  ;;  %v4565_v33 = vld [vmem:[%s4874_s19 + $0x4f4] sm:$0xf0] }
  0x71   : > { %1526 = vmatpush.bf16.msra.mxu0 %v3598_v12  ;;  %v3265_v12 = vld [vmem:[%s4874_s19 + $0x128] sm:$0xf]  ;;  %v3746_v41 = vor.u32 %v4565_v33, %v3745_v32  ;;  %v4529_v46 = vld [vmem:[%s4874_s19 + $0x3d4] sm:$0xf0] }
  0x72   : > { %1539 = vmatpush.bf16.msra.mxu1 %v3726_v13  ;;  %v4445_v13 = vld [vmem:[%s4874_s19 + $0x134] sm:$0xf0]  ;;  %v3473_v42 = vld [vmem:[%s4874_s19 + $0x2c8] sm:$0xf] }
  0x73   : > { %1552 = vmatpush.bf16.msra.mxu2 %v3218_v14  ;;  %v3518_v14 = vor.u32 %v4506_v0, %v3515_v2  ;;  %v3266_v23 = vor.u32 %v4445_v13, %v3265_v12  ;;  %v3601_v44 = vld [vmem:[%s4874_s19 + $0x3c8] sm:$0xf]  ;;  %v4561_v48 = vld [vmem:[%s4874_s19 + $0x4d4] sm:$0xf0] }
  0x74   : > { %1565 = vmatpush.bf16.msra.mxu3 %v3346_v19  ;;  %v3138_v19 = vor.u32 %v4413_v7, %v3137_v6  ;;  %v3729_v47 = vld [vmem:[%s4874_s19 + $0x4c8] sm:$0xf]  ;;  %v3602_v52 = vor.u32 %v4529_v46, %v3601_v44  ;;  %v4525_v58 = vld [vmem:[%s4874_s19 + $0x3b4] sm:$0xf0] }
  0x75   : > { %1527 = vmatpush.bf16.msra.mxu0 %v3582_v25  ;;  %v3249_v25 = vld [vmem:[%s4874_s19 + $0x108] sm:$0xf]  ;;  %v3730_v53 = vor.u32 %v4561_v48, %v3729_v47  ;;  %v4557_v60 = vld [vmem:[%s4874_s19 + $0x4b4] sm:$0xf0] }
  0x76   : > { %1540 = vmatpush.bf16.msra.mxu1 %v3710_v26  ;;  %v4441_v26 = vld [vmem:[%s4874_s19 + $0x114] sm:$0xf0]  ;;  %v3457_v54 = vld [vmem:[%s4874_s19 + $0x2a8] sm:$0xf] }
  0x77   : > { %1553 = vmatpush.bf16.msra.mxu2 %v3202_v27  ;;  %v3489_v27 = vld [vmem:[%s4874_s19 + $0x2e8] sm:$0xf]  ;;  %v4521_v7 = vld [vmem:[%s4874_s19 + $0x394] sm:$0xf0] }
  0x78   : > { %1566 = vmatpush.bf16.msra.mxu3 %v3330_v31  ;;  %v4533_v31 = vld [vmem:[%s4874_s19 + $0x3f4] sm:$0xf0]  ;;  %v3585_v56 = vld [vmem:[%s4874_s19 + $0x3a8] sm:$0xf] }
  0x79   : > { %1528 = vmatpush.bf16.msra.mxu0 %v3566_v37  ;;  %v3235_v37 = vld [vmem:[%s4874_s19 + $0xf8] sm:$0xf0]  ;;  %v3618_v40 = vor.u32 %v4533_v31, %v3617_v29  ;;  %v3713_v59 = vld [vmem:[%s4874_s19 + $0x4a8] sm:$0xf]  ;;  %v3586_v0 = vor.u32 %v4525_v58, %v3585_v56  ;;  %v4553_v13 = vld [vmem:[%s4874_s19 + $0x494] sm:$0xf0] }
  0x7a   : > { %1541 = vmatpush.bf16.msra.mxu1 %v3694_v38  ;;  %v3250_v38 = vor.u32 %v4441_v26, %v3249_v25  ;;  %v3238_v45 = vor.u32 %v4435_v36, %v3235_v37  ;;  %v3714_v2 = vor.u32 %v4557_v60, %v3713_v59  ;;  %v3441_v3 = vld [vmem:[%s4874_s19 + $0x288] sm:$0xf]  ;;  %v4485_v21 = vld [vmem:[%s4874_s19 + $0x274] sm:$0xf0] }
  0x7b   : > { %1554 = vmatpush.bf16.msra.mxu2 %v3186_v39  ;;  %v3490_v39 = vor.u32 %v4501_v28, %v3489_v27  ;;  %v3569_v5 = vld [vmem:[%s4874_s19 + $0x388] sm:$0xf]  ;;  %v4517_v24 = vld [vmem:[%s4874_s19 + $0x374] sm:$0xf0]  ;;  %v4419_v27 = vld [vmem:[%s4874_s19 + $0x6c] sm:$0xf] }
  0x7c   : > { %1567 = vmatpush.bf16.msra.mxu3 %v3314_v43  ;;  %v4497_v43 = vld [vmem:[%s4874_s19 + $0x2d4] sm:$0xf0]  ;;  %v3697_v12 = vld [vmem:[%s4874_s19 + $0x488] sm:$0xf]  ;;  %v3171_v28 = vld [vmem:[%s4874_s19 + $0x78] sm:$0xf0] }
  0x7d   : > { %1529 = vmatpush.bf16.msra.mxu0 %v3550_v49  ;;  %v4431_v49 = vld [vmem:[%s4874_s19 + $0xcc] sm:$0xf]  ;;  %v3425_v20 = vld [vmem:[%s4874_s19 + $0x268] sm:$0xf]  ;;  %v4549_v26 = vld [vmem:[%s4874_s19 + $0x474] sm:$0xf0] }
  0x7e   : > { %1542 = vmatpush.bf16.msra.mxu1 %v3678_v50  ;;  %v3219_v50 = vld [vmem:[%s4874_s19 + $0xd8] sm:$0xf0]  ;;  %v3553_v22 = vld [vmem:[%s4874_s19 + $0x368] sm:$0xf]  ;;  %v3426_v29 = vor.u32 %v4485_v21, %v3425_v20  ;;  %v4481_v33 = vld [vmem:[%s4874_s19 + $0x254] sm:$0xf0] }
  0x7f   : > { %1555 = vmatpush.bf16.msra.mxu2 %v3170_v51  ;;  %v3474_v51 = vor.u32 %v4497_v43, %v3473_v42  ;;  %v3222_v57 = vor.u32 %v4431_v49, %v3219_v50  ;;  %v3681_v25 = vld [vmem:[%s4874_s19 + $0x468] sm:$0xf]  ;;  %v4513_v36 = vld [vmem:[%s4874_s19 + $0x354] sm:$0xf0] }
  0x80   : > { %1568 = vmatpush.bf16.msra.mxu3 %v3298_v55  ;;  %v4493_v55 = vld [vmem:[%s4874_s19 + $0x2b4] sm:$0xf0]  ;;  %v3682_v31 = vor.u32 %v4549_v26, %v3681_v25  ;;  %v3409_v32 = vld [vmem:[%s4874_s19 + $0x248] sm:$0xf]  ;;  %v3475_v26 = vld [vmem:[%s4874_s19 + $0x2d8] sm:$0xf0] }
  0x81   : > { %1530 = vmatpush.bf16.msra.mxu0 %v3534_v61  ;;  %v4427_v61 = vld [vmem:[%s4874_s19 + $0xac] sm:$0xf]  ;;  %v3665_v37 = vld [vmem:[%s4874_s19 + $0x448] sm:$0xf]  ;;  %v4509_v48 = vld [vmem:[%s4874_s19 + $0x334] sm:$0xf0] }
  0x82   : > { %1543 = vmatpush.bf16.msra.mxu1 %v3662_v62  ;;  %v3203_v62 = vld [vmem:[%s4874_s19 + $0xb8] sm:$0xf0]  ;;  %v3393_v44 = vld [vmem:[%s4874_s19 + $0x228] sm:$0xf]  ;;  %v4541_v50 = vld [vmem:[%s4874_s19 + $0x434] sm:$0xf0] }
  0x83   : > { %1556 = vmatpush.bf16.msra.mxu2 %v3154_v63  ;;  %v3458_v63 = vor.u32 %v4493_v55, %v3457_v54  ;;  %v3206_v6 = vor.u32 %v4427_v61, %v3203_v62  ;;  %v3521_v46 = vld [vmem:[%s4874_s19 + $0x328] sm:$0xf]  ;;  %v4473_v55 = vld [vmem:[%s4874_s19 + $0x214] sm:$0xf0] }
  0x84   : > { %1569 = vmatpush.bf16.msra.mxu3 %v3282_v4  ;;  %v4489_v4 = vld [vmem:[%s4874_s19 + $0x294] sm:$0xf0]  ;;  %v3649_v49 = vld [vmem:[%s4874_s19 + $0x428] sm:$0xf]  ;;  %v3522_v56 = vor.u32 %v4509_v48, %v3521_v46  ;;  %v4455_v46 = vld [vmem:[%s4874_s19 + $0x18c] sm:$0xf] }
  0x85   : > { %1531 = vmatpush.bf16.msra.mxu0 %v3518_v14  ;;  %v4423_v14 = vld [vmem:[%s4874_s19 + $0x8c] sm:$0xf]  ;;  %v3442_v17 = vor.u32 %v4489_v4, %v3441_v3  ;;  %v3377_v54 = vld [vmem:[%s4874_s19 + $0x208] sm:$0xf]  ;;  %v4505_v59 = vld [vmem:[%s4874_s19 + $0x314] sm:$0xf0] }
  0x86   : > { %1544 = vmatpush.bf16.msra.mxu1 %v3646_v18  ;;  %v3570_v18 = vor.u32 %v4521_v7, %v3569_v5  ;;  %v3505_v58 = vld [vmem:[%s4874_s19 + $0x308] sm:$0xf]  ;;  %v4537_v62 = vld [vmem:[%s4874_s19 + $0x414] sm:$0xf0]  ;;  %v3363_v3 = vld [vmem:[%s4874_s19 + $0x1f8] sm:$0xf0]  ;;  %v3378_v5 = vor.u32 %v4473_v55, %v3377_v54 }
  0x87   : > { %1557 = vmatpush.bf16.msra.mxu2 %v3138_v19  ;;  %v3698_v19 = vor.u32 %v4553_v13, %v3697_v12  ;;  %v3633_v60 = vld [vmem:[%s4874_s19 + $0x408] sm:$0xf]  ;;  %v4499_v4 = vld [vmem:[%s4874_s19 + $0x2ec] sm:$0xf]  ;;  %v3619_v12 = vld [vmem:[%s4874_s19 + $0x3f8] sm:$0xf0]  ;;  %v3506_v13 = vor.u32 %v4505_v59, %v3505_v58 }
  0x88   : > { %1570 = vmatpush.bf16.msra.mxu3 %v3266_v23  ;;  %v3190_v23 = vor.u32 %v4423_v14, %v3187_v15  ;;  %v4531_v7 = vld [vmem:[%s4874_s19 + $0x3ec] sm:$0xf]  ;;  %v3634_v14 = vor.u32 %v4537_v62, %v3633_v60  ;;  %v3299_v58 = vld [vmem:[%s4874_s19 + $0x178] sm:$0xf0] }
  0x89   : > { %1532 = vmatpush.bf16.msra.mxu0 %v3502_v30  ;;  %v3554_v30 = vor.u32 %v4517_v24, %v3553_v22  ;;  %v4563_v15 = vld [vmem:[%s4874_s19 + $0x4ec] sm:$0xf]  ;;  %v3622_v21 = vor.u32 %v4531_v7, %v3619_v12  ;;  %v3283_v7 = vld [vmem:[%s4874_s19 + $0x158] sm:$0xf0] }
  0x8a   : > { %1545 = vmatpush.bf16.msra.mxu1 %v3630_v34  ;;  %v3537_v34 = vld [vmem:[%s4874_s19 + $0x348] sm:$0xf]  ;;  %v4463_v22 = vld [vmem:[%s4874_s19 + $0x1cc] sm:$0xf] }
  0x8b   : > { %1558 = vmatpush.bf16.msra.mxu2 %v3122_v35  ;;  %v3174_v35 = vor.u32 %v4419_v27, %v3171_v28  ;;  %v3538_v42 = vor.u32 %v4513_v36, %v3537_v34  ;;  %v4495_v24 = vld [vmem:[%s4874_s19 + $0x2cc] sm:$0xf]  ;;  %v3603_v28 = vld [vmem:[%s4874_s19 + $0x3d8] sm:$0xf0] }
  0x8c   : > { %1571 = vmatpush.bf16.msra.mxu3 %v3250_v38  ;;  %1533 = vmatmul.bf16.vlgmr.msra.gmra.mxu0 %v5018_v11  ;;  %v4545_v38 = vld [vmem:[%s4874_s19 + $0x454] sm:$0xf0]  ;;  %v4527_v27 = vld [vmem:[%s4874_s19 + $0x3cc] sm:$0xf] }
  0x8d   : > { %1577 = vmatpush.bf16.msrb.mxu0 %v3490_v39  ;;  %1546 = vmatmul.bf16.vlgmr.msra.gmra.mxu1 %v5065_v8  ;;  %v4415_v39 = vld [vmem:[%s4874_s19 + $0x4c] sm:$0xf]  ;;  %v3666_v43 = vor.u32 %v4545_v38, %v3665_v37  ;;  %v3459_v38 = vld [vmem:[%s4874_s19 + $0x2b8] sm:$0xf0] }
  0x8e   : > { %1590 = vmatpush.bf16.msrb.mxu1 %v3618_v40  ;;  %1559 = vmatmul.bf16.vlgmr.msra.gmra.mxu2 %v5014_v9  ;;  %v3155_v40 = vld [vmem:[%s4874_s19 + $0x58] sm:$0xf0]  ;;  %v4459_v34 = vld [vmem:[%s4874_s19 + $0x1ac] sm:$0xf] }
  0x8f   : > { %1603 = vmatpush.bf16.msrb.mxu2 %v3746_v41  ;;  %1572 = vmatmul.bf16.vlgmr.msra.gmra.mxu3 %v5022_v16  ;;  %v3410_v41 = vor.u32 %v4481_v33, %v3409_v32  ;;  %v3158_v47 = vor.u32 %v4415_v39, %v3155_v40  ;;  %v3478_v32 = vor.u32 %v4495_v24, %v3475_v26  ;;  %v4491_v36 = vld [vmem:[%s4874_s19 + $0x2ac] sm:$0xf]  ;;  %v3587_v40 = vld [vmem:[%s4874_s19 + $0x3b8] sm:$0xf0] }
  0x90   : > { %1616 = vmatpush.bf16.msrb.mxu3 %v3238_v45  ;;  %v4477_v45 = vld [vmem:[%s4874_s19 + $0x234] sm:$0xf0]  ;;  %v3606_v33 = vor.u32 %v4527_v27, %v3603_v28  ;;  %v4523_v39 = vld [vmem:[%s4874_s19 + $0x3ac] sm:$0xf]  ;;  %v3267_v24 = vld [vmem:[%s4874_s19 + $0x138] sm:$0xf0] }
  0x91   : > { %1578 = vmatpush.bf16.msrb.mxu0 %v3474_v51  ;;  %v4411_v51 = vld [vmem:[%s4874_s19 + $0x2c] sm:$0xf]  ;;  %v3395_v27 = vld [vmem:[%s4874_s19 + $0x238] sm:$0xf0] }
  0x92   : > { %1591 = vmatpush.bf16.msrb.mxu1 %v3602_v52  ;;  %v3139_v52 = vld [vmem:[%s4874_s19 + $0x38] sm:$0xf0]  ;;  %v4487_v48 = vld [vmem:[%s4874_s19 + $0x28c] sm:$0xf] }
  0x93   : > { %1604 = vmatpush.bf16.msrb.mxu2 %v3730_v53  ;;  %v3394_v53 = vor.u32 %v4477_v45, %v3393_v44  ;;  %v3142_v61 = vor.u32 %v4411_v51, %v3139_v52  ;;  %v3462_v44 = vor.u32 %v4491_v36, %v3459_v38  ;;  %v3590_v45 = vor.u32 %v4523_v39, %v3587_v40  ;;  %v4519_v51 = vld [vmem:[%s4874_s19 + $0x38c] sm:$0xf]  ;;  %v3571_v52 = vld [vmem:[%s4874_s19 + $0x398] sm:$0xf0] }
  0x94   : > { %1617 = vmatpush.bf16.msrb.mxu3 %v3222_v57  ;;  %v3650_v57 = vor.u32 %v4541_v50, %v3649_v49  ;;  %v3443_v50 = vld [vmem:[%s4874_s19 + $0x298] sm:$0xf0]  ;;  %v4483_v59 = vld [vmem:[%s4874_s19 + $0x26c] sm:$0xf] }
  0x95   : > { %1579 = vmatpush.bf16.msrb.mxu0 %v3458_v63  ;;  %v4407_v63 = vld [vmem:[%s4874_s19 + $0xc] sm:$0xf]  ;;  %v3446_v55 = vor.u32 %v4487_v48, %v3443_v50  ;;  %v3251_v36 = vld [vmem:[%s4874_s19 + $0x118] sm:$0xf0] }
  0x96   : > { %1592 = vmatpush.bf16.msrb.mxu1 %v3586_v0  ;;  %v3123_v0 = vld [vmem:[%s4874_s19 + $0x18] sm:$0xf0]  ;;  %v4515_v62 = vld [vmem:[%s4874_s19 + $0x36c] sm:$0xf] }
  0x97   : > { %1605 = vmatpush.bf16.msrb.mxu2 %v3714_v2  ;;  %v4467_v2 = vld [vmem:[%s4874_s19 + $0x1ec] sm:$0xf]  ;;  %v3379_v39 = vld [vmem:[%s4874_s19 + $0x218] sm:$0xf0] }
  0x98   : > { %1618 = vmatpush.bf16.msrb.mxu3 %v3206_v6  ;;  %v3491_v6 = vld [vmem:[%s4874_s19 + $0x2f8] sm:$0xf0]  ;;  %v4479_v12 = vld [vmem:[%s4874_s19 + $0x24c] sm:$0xf] }
  0x99   : > { %1580 = vmatpush.bf16.msrb.mxu0 %v3442_v17  ;;  %v3747_v17 = vld [vmem:[%s4874_s19 + $0x4f8] sm:$0xf0]  ;;  %v3494_v20 = vor.u32 %v4499_v4, %v3491_v6  ;;  %v4447_v6 = vld [vmem:[%s4874_s19 + $0x14c] sm:$0xf] }
  0x9a   : > { %1593 = vmatpush.bf16.msrb.mxu1 %v3570_v18  ;;  %v3126_v18 = vor.u32 %v4407_v63, %v3123_v0  ;;  %v3750_v25 = vor.u32 %v4563_v15, %v3747_v17  ;;  %v3555_v63 = vld [vmem:[%s4874_s19 + $0x378] sm:$0xf0]  ;;  %v4547_v0 = vld [vmem:[%s4874_s19 + $0x46c] sm:$0xf] }
  0x9b   : > { %1606 = vmatpush.bf16.msrb.mxu2 %v3698_v19  ;;  %v3366_v19 = vor.u32 %v4467_v2, %v3363_v3  ;;  %v3683_v2 = vld [vmem:[%s4874_s19 + $0x478] sm:$0xf0]  ;;  %v4511_v15 = vld [vmem:[%s4874_s19 + $0x34c] sm:$0xf] }
  0x9c   : > { %1619 = vmatpush.bf16.msrb.mxu3 %v3190_v23  ;;  %v3347_v23 = vld [vmem:[%s4874_s19 + $0x1d8] sm:$0xf0]  ;;  %v4507_v28 = vld [vmem:[%s4874_s19 + $0x32c] sm:$0xf] }
  0x9d   : > { %1581 = vmatpush.bf16.msrb.mxu0 %v3426_v29  ;;  %v4559_v29 = vld [vmem:[%s4874_s19 + $0x4cc] sm:$0xf]  ;;  %v3539_v17 = vld [vmem:[%s4874_s19 + $0x358] sm:$0xf0] }
  0x9e   : > { %1594 = vmatpush.bf16.msrb.mxu1 %v3554_v30  ;;  %v3731_v30 = vld [vmem:[%s4874_s19 + $0x4d8] sm:$0xf0]  ;;  %v4503_v40 = vld [vmem:[%s4874_s19 + $0x30c] sm:$0xf] }
  0x9f   : > { %1607 = vmatpush.bf16.msrb.mxu2 %v3682_v31  ;;  %v3350_v31 = vor.u32 %v4463_v22, %v3347_v23  ;;  %v3734_v37 = vor.u32 %v4559_v29, %v3731_v30  ;;  %v3542_v22 = vor.u32 %v4511_v15, %v3539_v17  ;;  %v4443_v23 = vld [vmem:[%s4874_s19 + $0x12c] sm:$0xf]  ;;  %v3523_v29 = vld [vmem:[%s4874_s19 + $0x338] sm:$0xf0] }
  0xa0   : > { %1620 = vmatpush.bf16.msrb.mxu3 %v3174_v35  ;;  %v3331_v35 = vld [vmem:[%s4874_s19 + $0x1b8] sm:$0xf0]  ;;  %v4539_v30 = vld [vmem:[%s4874_s19 + $0x42c] sm:$0xf] }
  0xa1   : > { %1582 = vmatpush.bf16.msrb.mxu0 %v3410_v41  ;;  %v4555_v41 = vld [vmem:[%s4874_s19 + $0x4ac] sm:$0xf] }
  0xa2   : > { %1595 = vmatpush.bf16.msrb.mxu1 %v3538_v42  ;;  %v3715_v42 = vld [vmem:[%s4874_s19 + $0x4b8] sm:$0xf0] }
  0xa3   : > { %1608 = vmatpush.bf16.msrb.mxu2 %v3666_v43  ;;  %v3334_v43 = vor.u32 %v4459_v34, %v3331_v35  ;;  %v3718_v49 = vor.u32 %v4555_v41, %v3715_v42  ;;  %v3526_v34 = vor.u32 %v4507_v28, %v3523_v29  ;;  %v4439_v35 = vld [vmem:[%s4874_s19 + $0x10c] sm:$0xf]  ;;  %v3507_v41 = vld [vmem:[%s4874_s19 + $0x318] sm:$0xf0] }
  0xa4   : > { %1621 = vmatpush.bf16.msrb.mxu3 %v3158_v47  ;;  %v3315_v47 = vld [vmem:[%s4874_s19 + $0x198] sm:$0xf0]  ;;  %v4535_v42 = vld [vmem:[%s4874_s19 + $0x40c] sm:$0xf] }
  0xa5   : > { %1583 = vmatpush.bf16.msrb.mxu0 %v3394_v53  ;;  %v4551_v53 = vld [vmem:[%s4874_s19 + $0x48c] sm:$0xf]  ;;  %v3318_v54 = vor.u32 %v4455_v46, %v3315_v47  ;;  %v3510_v46 = vor.u32 %v4503_v40, %v3507_v41 }
  0xa6   : > { %1596 = vmatpush.bf16.msrb.mxu1 %v3522_v56  ;;  %v3574_v56 = vor.u32 %v4519_v51, %v3571_v52 }
  0xa7   : > { %1609 = vmatpush.bf16.msrb.mxu2 %v3650_v57  ;;  %v4451_v57 = vld [vmem:[%s4874_s19 + $0x16c] sm:$0xf] }
  0xa8   : > { %1622 = vmatpush.bf16.msrb.mxu3 %v3142_v61  ;;  %v3427_v61 = vld [vmem:[%s4874_s19 + $0x278] sm:$0xf0]  ;;  %v3302_v3 = vor.u32 %v4451_v57, %v3299_v58 }
  0xa9   : > { %1584 = vmatpush.bf16.msrb.mxu0 %v3378_v5  ;;  %v3430_v4 = vor.u32 %v4483_v59, %v3427_v61  ;;  %v3558_v5 = vor.u32 %v4515_v62, %v3555_v63 }
  0xaa   : > { %1597 = vmatpush.bf16.msrb.mxu1 %v3506_v13  ;;  %v3686_v13 = vor.u32 %v4547_v0, %v3683_v2 }
  0xab   : > { %1610 = vmatpush.bf16.msrb.mxu2 %v3634_v14  ;;  %v3411_v14 = vld [vmem:[%s4874_s19 + $0x258] sm:$0xf0] }
  0xac   : > { %1623 = vmatpush.bf16.msrb.mxu3 %v3126_v18  ;;  %1585 = vmatmul.bf16.vlgmr.msrb.gmra.mxu0 %v5016_v10  ;;  %v4543_v18 = vld [vmem:[%s4874_s19 + $0x44c] sm:$0xf] }
  0xad   : > { %1629 = vmatpush.bf16.msra.mxu0 %v3366_v19  ;;  %1598 = vmatmul.bf16.vlgmr.msrb.gmra.mxu1 %v5018_v11  ;;  %v3667_v19 = vld [vmem:[%s4874_s19 + $0x458] sm:$0xf0] }
  0xae   : > { %1642 = vmatpush.bf16.msra.mxu1 %v3494_v20  ;;  %1611 = vmatmul.bf16.vlgmr.msrb.gmra.mxu2 %v5065_v8  ;;  %v3286_v20 = vor.u32 %v4447_v6, %v3283_v7  ;;  %v3670_v26 = vor.u32 %v4543_v18, %v3667_v19 }
  0xaf   : > { %1655 = vmatpush.bf16.msra.mxu2 %v3622_v21  ;;  %1624 = vmatmul.bf16.vlgmr.msrb.gmra.mxu3 %v5014_v9  ;;  %v3699_v9 = vld [vmem:[%s4874_s19 + $0x498] sm:$0xf0]  ;;  %v3414_v21 = vor.u32 %v4479_v12, %v3411_v14 }
  0xb0   : > { %1668 = vmatpush.bf16.msra.mxu3 %v3750_v25  ;;  %v3702_v60 = vor.u32 %v4551_v53, %v3699_v9  ;;  %v4475_v25 = vld [vmem:[%s4874_s19 + $0x22c] sm:$0xf] }
  0xb1   : > { %1630 = vmatpush.bf16.msra.mxu0 %v3350_v31  ;;  %v3651_v31 = vld [vmem:[%s4874_s19 + $0x438] sm:$0xf0] }
  0xb2   : > { %1643 = vmatpush.bf16.msra.mxu1 %v3478_v32  ;;  %v3270_v32 = vor.u32 %v4443_v23, %v3267_v24  ;;  %v3654_v38 = vor.u32 %v4539_v30, %v3651_v31 }
  0xb3   : > { %1656 = vmatpush.bf16.msra.mxu2 %v3606_v33  ;;  %v3398_v33 = vor.u32 %v4475_v25, %v3395_v27 }
  0xb4   : > { %1669 = vmatpush.bf16.msra.mxu3 %v3734_v37  ;;  %v4471_v37 = vld [vmem:[%s4874_s19 + $0x20c] sm:$0xf] }
  0xb5   : > { %1631 = vmatpush.bf16.msra.mxu0 %v3334_v43  ;;  %v3635_v43 = vld [vmem:[%s4874_s19 + $0x418] sm:$0xf0] }
  0xb6   : > { %1644 = vmatpush.bf16.msra.mxu1 %v3462_v44  ;;  %v3254_v44 = vor.u32 %v4439_v35, %v3251_v36  ;;  %v3638_v47 = vor.u32 %v4535_v42, %v3635_v43  ;;  %v447_v43 = vld [vmem:[#allocation2] sm:$0xff] }
  0xb7   : > { %1657 = vmatpush.bf16.msra.mxu2 %v3590_v45  ;;  %v3382_v45 = vor.u32 %v4471_v37, %v3379_v39 }
  0xb8   : > { %1670 = vmatpush.bf16.msra.mxu3 %v3718_v49 }
  0xb9   : > { %1632 = vmatpush.bf16.msra.mxu0 %v3318_v54 }
  0xba   : > { %1645 = vmatpush.bf16.msra.mxu1 %v3446_v55 }
  0xbb   : > { %1658 = vmatpush.bf16.msra.mxu2 %v3574_v56 }
  0xbc   : > { %1671 = vmatpush.bf16.msra.mxu3 %v3702_v60 }
  0xbd   : > { %1633 = vmatpush.bf16.msra.mxu0 %v3302_v3 }
  0xbe   : > { %1646 = vmatpush.bf16.msra.mxu1 %v3430_v4 }
  0xbf   : > { %1659 = vmatpush.bf16.msra.mxu2 %v3558_v5 }
  0xc0   : > { %1672 = vmatpush.bf16.msra.mxu3 %v3686_v13 }
  0xc1   : > { %1634 = vmatpush.bf16.msra.mxu0 %v3286_v20 }
  0xc2   : > { %1647 = vmatpush.bf16.msra.mxu1 %v3414_v21 }
  0xc3   : > { %1660 = vmatpush.bf16.msra.mxu2 %v3542_v22 }
  0xc4   : > { %1673 = vmatpush.bf16.msra.mxu3 %v3670_v26 }
  0xc5   : > { %1635 = vmatpush.bf16.msra.mxu0 %v3270_v32 }
  0xc6   : > { %1648 = vmatpush.bf16.msra.mxu1 %v3398_v33 }
  0xc7   : > { %1661 = vmatpush.bf16.msra.mxu2 %v3526_v34 }
  0xc8   : > { %1674 = vmatpush.bf16.msra.mxu3 %v3654_v38 }
  0xc9   : > { %1636 = vmatpush.bf16.msra.mxu0 %v3254_v44 }
  0xca   : > { %1649 = vmatpush.bf16.msra.mxu1 %v3382_v45 }
  0xcb   : > { %1662 = vmatpush.bf16.msra.mxu2 %v3510_v46 }
  0xcc   : > { %1675 = vmatpush.bf16.msra.mxu3 %v3638_v47  ;;  %1637 = vmatmul.bf16.vlgmr.msra.gmra.mxu0 %v5022_v16 }
  0xcd   : > { %1650 = vmatmul.bf16.vlgmr.msra.gmra.mxu1 %v5016_v10 }
  0xce   : > { %1663 = vmatmul.bf16.vlgmr.msra.gmra.mxu2 %v5018_v11 }
  0xcf   : > { %1676 = vmatmul.bf16.vlgmr.msra.gmra.mxu3 %v5065_v8 }
  0xd3   : > { %v1430_v48 = vpop.f32.mrf.mxu0 }
  0xd6   : > { %v1443_v49 = vpop.f32.mrf.mxu1 }
  0xd7   : > { %v1444_v50 = vadd.f32 %v1443_v49, %v1430_v48 }
  0xda   : > { %v1469_v52 = vpop.f32.mrf.mxu3 }
  0xdb   : > { %v1456_v51 = vpop.f32.mrf.mxu2  ;;  %v1432_v9 = vpop.f32.mrf.mxu0 }
  0xdc   : > { %v1457_v53 = vadd.f32 %v1456_v51, %v1444_v50 }
  0xde   : > { %v1470_v54 = vadd.f32 %v1469_v52, %v1457_v53  ;;  %v1445_v55 = vpop.f32.mrf.mxu1 }
  0xe2   : > { %v1471_v57 = vpop.f32.mrf.mxu3 }
  0xe3   : > { %v1458_v56 = vpop.f32.mrf.mxu2 }
  0xe9   : > { %v1482_v58 = vpop.f32.mrf.mxu0 }
  0xea   : > { %v1483_v59 = vadd.f32 %v1482_v58, %v1470_v54  ;;  %v1495_v16 = vpop.f32.mrf.mxu1 }
  0xf1   : > { %v1508_v60 = vpop.f32.mrf.mxu2  ;;  %v1484_v10 = vpop.f32.mrf.mxu0 }
  0xf2   : > { %v1509_v61 = vadd.f32 %v1508_v60, %v1495_v16  ;;  %v1521_v11 = vpop.f32.mrf.mxu3  ;;  %v1497_v62 = vpop.f32.mrf.mxu1 }
  0xf4   : > { %v1522_v8 = vadd.f32 %v1521_v11, %v1509_v61 }
  0xf9   : > { %v1510_v63 = vpop.f32.mrf.mxu2 }
  0xfa   : > { %v1523_v0 = vpop.f32.mrf.mxu3 }
 0x109   : > { %v1534_v2 = vpop.f32.mrf.mxu0 }
 0x10a   : > { %v1535_v3 = vadd.f32 %v1534_v2, %v1522_v8  ;;  %v1547_v4 = vpop.f32.mrf.mxu1 }
 0x10c   : > { %v1548_v5 = vadd.f32 %v1547_v4, %v1535_v3 }
 0x10e   : > { %v1685_v6 = vrot.slane %v1548_v5, 6 }
 0x110   : > { %v1689_v7 = vsel %vm1688_vm7, %v1483_v59, %v1685_v6 }
 0x111   : > { %v1560_v12 = vpop.f32.mrf.mxu2  ;;  %v1536_v13 = vpop.f32.mrf.mxu0 }
 0x112   : > { %v1573_v14 = vpop.f32.mrf.mxu3  ;;  %v1549_v15 = vpop.f32.mrf.mxu1 }
 0x113   : > { %v1574_v27 = vadd.f32 %v1573_v14, %v1560_v12 }
 0x119   : > { %v1562_v17 = vpop.f32.mrf.mxu2 }
 0x11a   : > { %v1575_v18 = vpop.f32.mrf.mxu3 }
 0x129   : > { %v1586_v19 = vpop.f32.mrf.mxu0 }
 0x12a   : > { %v1599_v20 = vpop.f32.mrf.mxu1  ;;  %v1587_v28 = vadd.f32 %v1586_v19, %v1574_v27 }
 0x12c   : > { %v1600_v32 = vadd.f32 %v1599_v20, %v1587_v28 }
 0x131   : > { %v1612_v21 = vpop.f32.mrf.mxu2  ;;  %v1588_v23 = vpop.f32.mrf.mxu0 }
 0x132   : > { %v1625_v22 = vpop.f32.mrf.mxu3  ;;  %v1601_v24 = vpop.f32.mrf.mxu1  ;;  %v1613_v35 = vadd.f32 %v1612_v21, %v1600_v32 }
 0x134   : > { %v1686_v41 = vrot.slane %v1613_v35, 4 }
 0x139   : > { %v1614_v25 = vpop.f32.mrf.mxu2 }
 0x13a   : > { %v1627_v26 = vpop.f32.mrf.mxu3 }
 0x149   : > { %v1638_v29 = vpop.f32.mrf.mxu0 }
 0x14a   : > { %v1651_v30 = vpop.f32.mrf.mxu1  ;;  %v1639_v31 = vadd.f32 %v1638_v29, %v1625_v22 }
 0x14c   : > { %v1652_v33 = vadd.f32 %v1651_v30, %v1639_v31 }
 0x151   : > { %v1664_v34 = vpop.f32.mrf.mxu2  ;;  %v1640_v38 = vpop.f32.mrf.mxu0 }
 0x152   : > { %v1665_v36 = vadd.f32 %v1664_v34, %v1652_v33  ;;  %v1677_v37 = vpop.f32.mrf.mxu3  ;;  %v1653_v39 = vpop.f32.mrf.mxu1 }
 0x154   : > { %v1678_v40 = vadd.f32 %v1677_v37, %v1665_v36 }
 0x156   : > { %v1687_v42 = vrot.slane %v1678_v40, 2 }
 0x158   : > { %v1691_v44 = vsel %vm1690_vm8, %v1686_v41, %v1687_v42  ;;  %1700 = sbr.rel (%p3751_p7) target bundleno = 762 (0x2fa), region = 56 }
 0x159   : > { %v1693_v45 = vsel %vm1692_vm9, %v1689_v7, %v1691_v44  ;;  %v1666_v46 = vpop.f32.mrf.mxu2 }
 0x15a   : > { %v1695_v47 = vadd.f32 %v1693_v45, %v447_v43  ;;  %v1679_v48 = vpop.f32.mrf.mxu3 }
 0x15c   : > { %1696 = vst [vmem:[#allocation2] sm:$0xff] %v1695_v47 }
 0x15d   : > { %v3866_v49 = vld [vmem:[%s6178_s2 + $0xe0] sm:$0xf]  ;;  %v4596_v50 = vld [vmem:[%s6178_s2 + $0xec] sm:$0xf0] }
 0x15e   : > { %v3994_v51 = vld [vmem:[%s6178_s2 + $0x1e0] sm:$0xf]  ;;  %v3867_v52 = vor.u32 %v4596_v50, %v3866_v49  ;;  %v4628_v53 = vld [vmem:[%s6178_s2 + $0x1ec] sm:$0xf0] }
 0x15f   : > { %v4122_v9 = vld [vmem:[%s6178_s2 + $0x2e0] sm:$0xf]  ;;  %v4660_v54 = vld [vmem:[%s6178_s2 + $0x2ec] sm:$0xf0]  ;;  %v3995_v55 = vor.u32 %v4628_v53, %v3994_v51 }
 0x160   : > { %v4123_v56 = vor.u32 %v4660_v54, %v4122_v9  ;;  %v4250_v57 = vld [vmem:[%s6178_s2 + $0x3e0] sm:$0xf]  ;;  %v4692_v58 = vld [vmem:[%s6178_s2 + $0x3ec] sm:$0xf0]  ;;  %2509 = vmatpush.bf16.msra.mxu0 %v3867_v52 }
 0x161   : > { %v3850_v59 = vld [vmem:[%s6178_s2 + $0xc0] sm:$0xf]  ;;  %v4251_v16 = vor.u32 %v4692_v58, %v4250_v57  ;;  %v4592_v60 = vld [vmem:[%s6178_s2 + $0xcc] sm:$0xf0]  ;;  %2522 = vmatpush.bf16.msra.mxu1 %v3995_v55 }
 0x162   : > { %v3978_v10 = vld [vmem:[%s6178_s2 + $0x1c0] sm:$0xf]  ;;  %v4624_v61 = vld [vmem:[%s6178_s2 + $0x1cc] sm:$0xf0]  ;;  %2535 = vmatpush.bf16.msra.mxu2 %v4123_v56  ;;  %v3851_v11 = vor.u32 %v4592_v60, %v3850_v59 }
 0x163   : > { %v3979_v62 = vor.u32 %v4624_v61, %v3978_v10  ;;  %v4106_v8 = vld [vmem:[%s6178_s2 + $0x2c0] sm:$0xf]  ;;  %v4656_v63 = vld [vmem:[%s6178_s2 + $0x2cc] sm:$0xf0]  ;;  %2548 = vmatpush.bf16.msra.mxu3 %v4251_v16 }
 0x164   : > { %v4234_v0 = vld [vmem:[%s6178_s2 + $0x3c0] sm:$0xf]  ;;  %v4107_v2 = vor.u32 %v4656_v63, %v4106_v8  ;;  %v4688_v3 = vld [vmem:[%s6178_s2 + $0x3cc] sm:$0xf0]  ;;  %2510 = vmatpush.bf16.msra.mxu0 %v3851_v11 }
 0x165   : > { %v3834_v4 = vld [vmem:[%s6178_s2 + $0xa0] sm:$0xf]  ;;  %v4588_v5 = vld [vmem:[%s6178_s2 + $0xac] sm:$0xf0]  ;;  %v4235_v6 = vor.u32 %v4688_v3, %v4234_v0  ;;  %2523 = vmatpush.bf16.msra.mxu1 %v3979_v62 }
 0x166   : > { %v3962_v7 = vld [vmem:[%s6178_s2 + $0x1a0] sm:$0xf]  ;;  %v4620_v12 = vld [vmem:[%s6178_s2 + $0x1ac] sm:$0xf0]  ;;  %v3835_v14 = vor.u32 %v4588_v5, %v3834_v4  ;;  %2536 = vmatpush.bf16.msra.mxu2 %v4107_v2 }
 0x167   : > { %v4090_v13 = vld [vmem:[%s6178_s2 + $0x2a0] sm:$0xf]  ;;  %v4652_v15 = vld [vmem:[%s6178_s2 + $0x2ac] sm:$0xf0]  ;;  %v3963_v19 = vor.u32 %v4620_v12, %v3962_v7  ;;  %2549 = vmatpush.bf16.msra.mxu3 %v4235_v6 }
 0x168   : > { %v4218_v17 = vld [vmem:[%s6178_s2 + $0x3a0] sm:$0xf]  ;;  %v4684_v18 = vld [vmem:[%s6178_s2 + $0x3ac] sm:$0xf0]  ;;  %v4091_v20 = vor.u32 %v4652_v15, %v4090_v13  ;;  %2511 = vmatpush.bf16.msra.mxu0 %v3835_v14  ;;  %v4594_v14 = vld [vmem:[%s6178_s2 + $0xe4] sm:$0xf] }
 0x169   : > { %v3818_v21 = vld [vmem:[%s6178_s2 + $0x80] sm:$0xf]  ;;  %v4584_v22 = vld [vmem:[%s6178_s2 + $0x8c] sm:$0xf0]  ;;  %v4219_v24 = vor.u32 %v4684_v18, %v4218_v17  ;;  %2524 = vmatpush.bf16.msra.mxu1 %v3963_v19  ;;  %v3868_v15 = vld [vmem:[%s6178_s2 + $0xf0] sm:$0xf0] }
 0x16a   : > { %v3946_v23 = vld [vmem:[%s6178_s2 + $0x180] sm:$0xf]  ;;  %v4616_v25 = vld [vmem:[%s6178_s2 + $0x18c] sm:$0xf0]  ;;  %v3819_v30 = vor.u32 %v4584_v22, %v3818_v21  ;;  %2537 = vmatpush.bf16.msra.mxu2 %v4091_v20  ;;  %v4626_v17 = vld [vmem:[%s6178_s2 + $0x1e4] sm:$0xf] }
 0x16b   : > { %v4074_v26 = vld [vmem:[%s6178_s2 + $0x280] sm:$0xf]  ;;  %v4648_v27 = vld [vmem:[%s6178_s2 + $0x28c] sm:$0xf0]  ;;  %v3947_v31 = vor.u32 %v4616_v25, %v3946_v23  ;;  %2550 = vmatpush.bf16.msra.mxu3 %v4219_v24  ;;  %v3996_v19 = vld [vmem:[%s6178_s2 + $0x1f0] sm:$0xf0] }
 0x16c   : > { %v4202_v28 = vld [vmem:[%s6178_s2 + $0x380] sm:$0xf]  ;;  %v4680_v29 = vld [vmem:[%s6178_s2 + $0x38c] sm:$0xf0]  ;;  %v4075_v32 = vor.u32 %v4648_v27, %v4074_v26  ;;  %2512 = vmatpush.bf16.msra.mxu0 %v3819_v30  ;;  %v4658_v20 = vld [vmem:[%s6178_s2 + $0x2e4] sm:$0xf]  ;;  %v3871_v27 = vor.u32 %v4594_v14, %v3868_v15  ;;  %v3999_v30 = vor.u32 %v4626_v17, %v3996_v19 }
 0x16d   : > { %v3802_v33 = vld [vmem:[%s6178_s2 + $0x60] sm:$0xf]  ;;  %v4580_v34 = vld [vmem:[%s6178_s2 + $0x6c] sm:$0xf0]  ;;  %v4203_v36 = vor.u32 %v4680_v29, %v4202_v28  ;;  %2525 = vmatpush.bf16.msra.mxu1 %v3947_v31  ;;  %v4124_v21 = vld [vmem:[%s6178_s2 + $0x2f0] sm:$0xf0] }
 0x16e   : > { %v3930_v35 = vld [vmem:[%s6178_s2 + $0x160] sm:$0xf]  ;;  %v4612_v37 = vld [vmem:[%s6178_s2 + $0x16c] sm:$0xf0]  ;;  %v3803_v42 = vor.u32 %v4580_v34, %v3802_v33  ;;  %2538 = vmatpush.bf16.msra.mxu2 %v4075_v32  ;;  %v4690_v24 = vld [vmem:[%s6178_s2 + $0x3e4] sm:$0xf]  ;;  %v4127_v31 = vor.u32 %v4658_v20, %v4124_v21 }
 0x16f   : > { %v4058_v38 = vld [vmem:[%s6178_s2 + $0x260] sm:$0xf]  ;;  %v4644_v39 = vld [vmem:[%s6178_s2 + $0x26c] sm:$0xf0]  ;;  %v3931_v43 = vor.u32 %v4612_v37, %v3930_v35  ;;  %2551 = vmatpush.bf16.msra.mxu3 %v4203_v36  ;;  %v4252_v25 = vld [vmem:[%s6178_s2 + $0x3f0] sm:$0xf0] }
 0x170   : > { %v4186_v40 = vld [vmem:[%s6178_s2 + $0x360] sm:$0xf]  ;;  %v4676_v41 = vld [vmem:[%s6178_s2 + $0x36c] sm:$0xf0]  ;;  %v4059_v44 = vor.u32 %v4644_v39, %v4058_v38  ;;  %2513 = vmatpush.bf16.msra.mxu0 %v3803_v42  ;;  %v4590_v28 = vld [vmem:[%s6178_s2 + $0xc4] sm:$0xf]  ;;  %v4255_v34 = vor.u32 %v4690_v24, %v4252_v25 }
 0x171   : > { %v3786_v45 = vld [vmem:[%s6178_s2 + $0x40] sm:$0xf]  ;;  %v4576_v46 = vld [vmem:[%s6178_s2 + $0x4c] sm:$0xf0]  ;;  %v4187_v48 = vor.u32 %v4676_v41, %v4186_v40  ;;  %2526 = vmatpush.bf16.msra.mxu1 %v3931_v43  ;;  %v3852_v29 = vld [vmem:[%s6178_s2 + $0xd0] sm:$0xf0] }
 0x172   : > { %v3914_v47 = vld [vmem:[%s6178_s2 + $0x140] sm:$0xf]  ;;  %v4608_v49 = vld [vmem:[%s6178_s2 + $0x14c] sm:$0xf0]  ;;  %v3787_v9 = vor.u32 %v4576_v46, %v3786_v45  ;;  %2539 = vmatpush.bf16.msra.mxu2 %v4059_v44  ;;  %v4622_v32 = vld [vmem:[%s6178_s2 + $0x1c4] sm:$0xf]  ;;  %v3855_v38 = vor.u32 %v4590_v28, %v3852_v29 }
 0x173   : > { %v4042_v50 = vld [vmem:[%s6178_s2 + $0x240] sm:$0xf]  ;;  %v4640_v51 = vld [vmem:[%s6178_s2 + $0x24c] sm:$0xf0]  ;;  %v3915_v54 = vor.u32 %v4608_v49, %v3914_v47  ;;  %2552 = vmatpush.bf16.msra.mxu3 %v4187_v48  ;;  %v3980_v33 = vld [vmem:[%s6178_s2 + $0x1d0] sm:$0xf0] }
 0x174   : > { %v4170_v52 = vld [vmem:[%s6178_s2 + $0x340] sm:$0xf]  ;;  %v4672_v53 = vld [vmem:[%s6178_s2 + $0x34c] sm:$0xf0]  ;;  %v4043_v55 = vor.u32 %v4640_v51, %v4042_v50  ;;  %2514 = vmatpush.bf16.msra.mxu0 %v3787_v9  ;;  %v4654_v35 = vld [vmem:[%s6178_s2 + $0x2c4] sm:$0xf]  ;;  %v3983_v47 = vor.u32 %v4622_v32, %v3980_v33 }
 0x175   : > { %v3770_v56 = vld [vmem:[%s6178_s2 + $0x20] sm:$0xf]  ;;  %v4572_v57 = vld [vmem:[%s6178_s2 + $0x2c] sm:$0xf0]  ;;  %v4171_v59 = vor.u32 %v4672_v53, %v4170_v52  ;;  %2527 = vmatpush.bf16.msra.mxu1 %v3915_v54  ;;  %v4108_v36 = vld [vmem:[%s6178_s2 + $0x2d0] sm:$0xf0] }
 0x176   : > { %v3898_v58 = vld [vmem:[%s6178_s2 + $0x120] sm:$0xf]  ;;  %v4604_v16 = vld [vmem:[%s6178_s2 + $0x12c] sm:$0xf0]  ;;  %v3771_v62 = vor.u32 %v4572_v57, %v3770_v56  ;;  %2540 = vmatpush.bf16.msra.mxu2 %v4043_v55  ;;  %v4686_v37 = vld [vmem:[%s6178_s2 + $0x3c4] sm:$0xf]  ;;  %v4111_v48 = vor.u32 %v4654_v35, %v4108_v36 }
 0x177   : > { %v4026_v60 = vld [vmem:[%s6178_s2 + $0x220] sm:$0xf]  ;;  %v4636_v10 = vld [vmem:[%s6178_s2 + $0x22c] sm:$0xf0]  ;;  %v3899_v0 = vor.u32 %v4604_v16, %v3898_v58  ;;  %2553 = vmatpush.bf16.msra.mxu3 %v4171_v59  ;;  %v4236_v39 = vld [vmem:[%s6178_s2 + $0x3d0] sm:$0xf0] }
 0x178   : > { %v4154_v61 = vld [vmem:[%s6178_s2 + $0x320] sm:$0xf]  ;;  %v4668_v11 = vld [vmem:[%s6178_s2 + $0x32c] sm:$0xf0]  ;;  %v4027_v2 = vor.u32 %v4636_v10, %v4026_v60  ;;  %2515 = vmatpush.bf16.msra.mxu0 %v3771_v62  ;;  %v4586_v40 = vld [vmem:[%s6178_s2 + $0xa4] sm:$0xf]  ;;  %v4239_v52 = vor.u32 %v4686_v37, %v4236_v39 }
 0x179   : > { %v3754_v8 = vld [vmem:[%s6178_s2] sm:$0xf]  ;;  %v4568_v63 = vld [vmem:[%s6178_s2 + $0xc] sm:$0xf0]  ;;  %v4155_v6 = vor.u32 %v4668_v11, %v4154_v61  ;;  %2528 = vmatpush.bf16.msra.mxu1 %v3899_v0  ;;  %v3836_v42 = vld [vmem:[%s6178_s2 + $0xb0] sm:$0xf0] }
 0x17a   : > { %v3882_v3 = vld [vmem:[%s6178_s2 + $0x100] sm:$0xf]  ;;  %v4600_v4 = vld [vmem:[%s6178_s2 + $0x10c] sm:$0xf0]  ;;  %v3755_v18 = vor.u32 %v4568_v63, %v3754_v8  ;;  %2541 = vmatpush.bf16.msra.mxu2 %v4027_v2  ;;  %v4618_v49 = vld [vmem:[%s6178_s2 + $0x1a4] sm:$0xf]  ;;  %v3839_v59 = vor.u32 %v4586_v40, %v3836_v42 }
 0x17b   : > { %v4010_v5 = vld [vmem:[%s6178_s2 + $0x200] sm:$0xf]  ;;  %v4632_v7 = vld [vmem:[%s6178_s2 + $0x20c] sm:$0xf0]  ;;  %v3883_v22 = vor.u32 %v4600_v4, %v3882_v3  ;;  %2554 = vmatpush.bf16.msra.mxu3 %v4155_v6  ;;  %v3964_v50 = vld [vmem:[%s6178_s2 + $0x1b0] sm:$0xf0] }
 0x17c   : > { %v4138_v12 = vld [vmem:[%s6178_s2 + $0x300] sm:$0xf]  ;;  %v4664_v13 = vld [vmem:[%s6178_s2 + $0x30c] sm:$0xf0]  ;;  %v4011_v23 = vor.u32 %v4632_v7, %v4010_v5  ;;  %2516 = vmatpush.bf16.msra.mxu0 %v3755_v18  ;;  %v4650_v51 = vld [vmem:[%s6178_s2 + $0x2a4] sm:$0xf]  ;;  %v3967_v10 = vor.u32 %v4618_v49, %v3964_v50 }
 0x17d   : > { %v4139_v26 = vor.u32 %v4664_v13, %v4138_v12  ;;  %2529 = vmatpush.bf16.msra.mxu1 %v3883_v22  ;;  %v1702_v41 = vld [vmem:[%s6177_s1] sm:$0xf]  ;;  %v4092_v53 = vld [vmem:[%s6178_s2 + $0x2b0] sm:$0xf0]  ;;  %v4682_v56 = vld [vmem:[%s6178_s2 + $0x3a4] sm:$0xf] }
 0x17e   : > { %2542 = vmatpush.bf16.msra.mxu2 %v4011_v23  ;;  %v1704_v43 = vperm.slane %v1702_v41, 0  ;;  %v1705_v44 = vperm.slane %v1702_v41, 1  ;;  %v1706_v45 = vperm.slane %v1702_v41, 2  ;;  %v1707_v46 = vperm.slane %v1702_v41, 3  ;;  %v4220_v57 = vld [vmem:[%s6178_s2 + $0x3b0] sm:$0xf0] }
 0x17f   : > { %2555 = vmatpush.bf16.msra.mxu3 %v4139_v26  ;;  %v1701_v58 = vld [vmem:[#allocation2] sm:$0xff]  ;;  %v4095_v61 = vor.u32 %v4650_v51, %v4092_v53  ;;  %v4582_v11 = vld [vmem:[%s6178_s2 + $0x84] sm:$0xf]  ;;  %v3820_v62 = vld [vmem:[%s6178_s2 + $0x90] sm:$0xf0]  ;;  %v4223_v0 = vor.u32 %v4682_v56, %v4220_v57 }
 0x180   : > { %2561 = vmatpush.bf16.msrb.mxu0 %v3871_v27  ;;  %v1708_v9 = vrot.slane %v1705_v44, 6  ;;  %v1709_v54 = vrot.slane %v1706_v45, 4  ;;  %v1710_v55 = vrot.slane %v1707_v46, 2  ;;  %v4614_v8 = vld [vmem:[%s6178_s2 + $0x184] sm:$0xf]  ;;  %v3823_v12 = vor.u32 %v4582_v11, %v3820_v62 }
 0x181   : > { %2574 = vmatpush.bf16.msrb.mxu1 %v3999_v30  ;;  %v3948_v2 = vld [vmem:[%s6178_s2 + $0x190] sm:$0xf0]  ;;  %v4646_v3 = vld [vmem:[%s6178_s2 + $0x284] sm:$0xf] }
 0x182   : > { %2587 = vmatpush.bf16.msrb.mxu2 %v4127_v31  ;;  %v1711_v16 = vsel %vm1688_vm7, %v1704_v43, %v1708_v9  ;;  %v1712_v60 = vsel %vm1690_vm8, %v1709_v54, %v1710_v55  ;;  %v4076_v4 = vld [vmem:[%s6178_s2 + $0x290] sm:$0xf0]  ;;  %v4678_v6 = vld [vmem:[%s6178_s2 + $0x384] sm:$0xf]  ;;  %v3951_v15 = vor.u32 %v4614_v8, %v3948_v2  ;;  %v3874_v2 = vld [vmem:[%s6178_s2 + $0xe8] sm:$0xf] }
 0x183   : > { %2600 = vmatpush.bf16.msrb.mxu3 %v4255_v34  ;;  %v1713_v63 = vsel %vm1692_vm9, %v1711_v16, %v1712_v60  ;;  %v4204_v7 = vld [vmem:[%s6178_s2 + $0x390] sm:$0xf0]  ;;  %v4578_v14 = vld [vmem:[%s6178_s2 + $0x64] sm:$0xf]  ;;  %v4079_v17 = vor.u32 %v4646_v3, %v4076_v4  ;;  %v4597_v3 = vld [vmem:[%s6178_s2 + $0xf4] sm:$0xf0] }
 0x184   : > { %2562 = vmatpush.bf16.msrb.mxu0 %v3855_v38  ;;  %v1715_v5 = vadd.f32 %v1713_v63, %v1701_v58  ;;  %v3804_v18 = vld [vmem:[%s6178_s2 + $0x70] sm:$0xf0]  ;;  %v4610_v19 = vld [vmem:[%s6178_s2 + $0x164] sm:$0xf]  ;;  %v4207_v21 = vor.u32 %v4678_v6, %v4204_v7  ;;  %v4002_v4 = vld [vmem:[%s6178_s2 + $0x1e8] sm:$0xf] }
 0x185   : > { %2575 = vmatpush.bf16.msrb.mxu1 %v3983_v47  ;;  %v3932_v20 = vld [vmem:[%s6178_s2 + $0x170] sm:$0xf0]  ;;  %v4642_v22 = vld [vmem:[%s6178_s2 + $0x264] sm:$0xf]  ;;  %v3807_v26 = vor.u32 %v4578_v14, %v3804_v18  ;;  %v4130_v6 = vld [vmem:[%s6178_s2 + $0x2e8] sm:$0xf] }
 0x186   : > { %2588 = vmatpush.bf16.msrb.mxu2 %v4111_v48  ;;  %v1716_v13 = vmax.f32 %v1715_v5, 0.0  ;;  %v4060_v23 = vld [vmem:[%s6178_s2 + $0x270] sm:$0xf0]  ;;  %v4674_v24 = vld [vmem:[%s6178_s2 + $0x364] sm:$0xf]  ;;  %v3935_v27 = vor.u32 %v4610_v19, %v3932_v20  ;;  %v3875_v19 = vor.u32 %v4597_v3, %v3874_v2 }
 0x187   : > { %2601 = vmatpush.bf16.msrb.mxu3 %v4239_v52  ;;  %v4188_v25 = vld [vmem:[%s6178_s2 + $0x370] sm:$0xf0]  ;;  %v4063_v28 = vor.u32 %v4642_v22, %v4060_v23  ;;  %v4574_v30 = vld [vmem:[%s6178_s2 + $0x44] sm:$0xf]  ;;  %v4629_v5 = vld [vmem:[%s6178_s2 + $0x1f4] sm:$0xf0] }
 0x188   : > { %2563 = vmatpush.bf16.msrb.mxu0 %v3839_v59  ;;  %1718 = vst [vmem:[#allocation1] ss:$4 sm:$0xff] %v1716_v13  ;;  %v4191_v29 = vor.u32 %v4674_v24, %v4188_v25  ;;  %v3788_v31 = vld [vmem:[%s6178_s2 + $0x50] sm:$0xf0]  ;;  %v4606_v32 = vld [vmem:[%s6178_s2 + $0x144] sm:$0xf]  ;;  %v4003_v20 = vor.u32 %v4629_v5, %v4002_v4 }
 0x189   : > { %2576 = vmatpush.bf16.msrb.mxu1 %v3967_v10  ;;  %v3916_v33 = vld [vmem:[%s6178_s2 + $0x150] sm:$0xf0]  ;;  %v4638_v34 = vld [vmem:[%s6178_s2 + $0x244] sm:$0xf]  ;;  %v3791_v46 = vor.u32 %v4574_v30, %v3788_v31  ;;  %v4661_v13 = vld [vmem:[%s6178_s2 + $0x2f4] sm:$0xf0] }
 0x18a   : > { %2589 = vmatpush.bf16.msrb.mxu2 %v4095_v61  ;;  %v4044_v35 = vld [vmem:[%s6178_s2 + $0x250] sm:$0xf0]  ;;  %v4670_v36 = vld [vmem:[%s6178_s2 + $0x344] sm:$0xf]  ;;  %v3919_v47 = vor.u32 %v4606_v32, %v3916_v33  ;;  %v4258_v14 = vld [vmem:[%s6178_s2 + $0x3e8] sm:$0xf] }
 0x18b   : > { %2602 = vmatpush.bf16.msrb.mxu3 %v4223_v0  ;;  %v4172_v37 = vld [vmem:[%s6178_s2 + $0x350] sm:$0xf0]  ;;  %v4570_v40 = vld [vmem:[%s6178_s2 + $0x24] sm:$0xf]  ;;  %v4047_v50 = vor.u32 %v4638_v34, %v4044_v35  ;;  %v3858_v23 = vld [vmem:[%s6178_s2 + $0xc8] sm:$0xf] }
 0x18c   : > { %2564 = vmatpush.bf16.msrb.mxu0 %v3823_v12  ;;  %v3772_v41 = vld [vmem:[%s6178_s2 + $0x30] sm:$0xf0]  ;;  %v4175_v51 = vor.u32 %v4670_v36, %v4172_v37  ;;  %v4602_v52 = vld [vmem:[%s6178_s2 + $0x124] sm:$0xf]  ;;  %v4593_v24 = vld [vmem:[%s6178_s2 + $0xd4] sm:$0xf0] }
 0x18d   : > { %2577 = vmatpush.bf16.msrb.mxu1 %v3951_v15  ;;  %v3900_v53 = vld [vmem:[%s6178_s2 + $0x130] sm:$0xf0]  ;;  %v4634_v9 = vld [vmem:[%s6178_s2 + $0x224] sm:$0xf]  ;;  %v3775_v58 = vor.u32 %v4570_v40, %v3772_v41  ;;  %v4693_v15 = vld [vmem:[%s6178_s2 + $0x3f4] sm:$0xf0]  ;;  %v3859_v31 = vor.u32 %v4593_v24, %v3858_v23 }
 0x18e   : > { %2590 = vmatpush.bf16.msrb.mxu2 %v4079_v17  ;;  %v4028_v54 = vld [vmem:[%s6178_s2 + $0x230] sm:$0xf0]  ;;  %v4666_v55 = vld [vmem:[%s6178_s2 + $0x324] sm:$0xf]  ;;  %v3903_v59 = vor.u32 %v4602_v52, %v3900_v53  ;;  %v4259_v22 = vor.u32 %v4693_v15, %v4258_v14  ;;  %v3986_v25 = vld [vmem:[%s6178_s2 + $0x1c8] sm:$0xf] }
 0x18f   : > { %2603 = vmatpush.bf16.msrb.mxu3 %v4207_v21  ;;  %v1721_v38 = vld.sshfl [vmem:[#allocation1 + $0x10] sm:$0xff pattern:$0x73625140]  ;;  %v1719_v39 = vld.sshfl [vmem:[#allocation1] sm:$0xff pattern:$0x73625140]  ;;  %v4031_v61 = vor.u32 %v4634_v9, %v4028_v54  ;;  %v4131_v21 = vor.u32 %v4661_v13, %v4130_v6 }
 0x190   : > { %2565 = vmatpush.bf16.msrb.mxu0 %v3807_v26  ;;  %v5611_v42 = vpack.c.bf16 %v1721_v38, %v1721_v38  ;;  %v5613_v43 = vpack.c.bf16 %v1719_v39, %v1719_v39  ;;  %v1722_v44 = vld.sshfl [vmem:[#allocation1 + $0x18] sm:$0xff pattern:$0x73625140]  ;;  %v1720_v45 = vld.sshfl [vmem:[#allocation1 + $0x8] sm:$0xff pattern:$0x73625140] }
 0x191   : > { %2578 = vmatpush.bf16.msrb.mxu1 %v3935_v27  ;;  %v5615_v48 = vpack.c.bf16 %v1722_v44, %v1722_v44  ;;  %v5617_v49 = vpack.c.bf16 %v1720_v45, %v1720_v45  ;;  %v4156_v56 = vld [vmem:[%s6178_s2 + $0x330] sm:$0xf0]  ;;  %v4566_v57 = vld [vmem:[%s6178_s2 + $0x4] sm:$0xf]  ;;  %v4625_v26 = vld [vmem:[%s6178_s2 + $0x1d4] sm:$0xf0] }
 0x192   : > { %2591 = vmatpush.bf16.msrb.mxu2 %v4063_v28  ;;  %2517 = vmatmul.bf16.vlgmr.msra.gmra.mxu0 %v5613_v43  ;;  %v3756_v16 = vld [vmem:[%s6178_s2 + $0x10] sm:$0xf0]  ;;  %v4598_v60 = vld [vmem:[%s6178_s2 + $0x104] sm:$0xf]  ;;  %v4159_v11 = vor.u32 %v4666_v55, %v4156_v56  ;;  %v4114_v27 = vld [vmem:[%s6178_s2 + $0x2c8] sm:$0xf]  ;;  %v3987_v32 = vor.u32 %v4625_v26, %v3986_v25 }
 0x193   : > { %2604 = vmatpush.bf16.msrb.mxu3 %v4191_v29  ;;  %2543 = vmatmul.bf16.vlgmr.msra.gmra.mxu2 %v5611_v42  ;;  %v3884_v10 = vld [vmem:[%s6178_s2 + $0x110] sm:$0xf0]  ;;  %v4630_v62 = vld [vmem:[%s6178_s2 + $0x204] sm:$0xf]  ;;  %v3759_v7 = vor.u32 %v4566_v57, %v3756_v16  ;;  %v4657_v28 = vld [vmem:[%s6178_s2 + $0x2d4] sm:$0xf0] }
 0x194   : > { %2556 = vmatmul.bf16.vlgmr.msra.gmra.mxu3 %v5615_v48  ;;  %2530 = vmatmul.bf16.vlgmr.msra.gmra.mxu1 %v5617_v49  ;;  %v4012_v8 = vld [vmem:[%s6178_s2 + $0x210] sm:$0xf0]  ;;  %v4662_v63 = vld [vmem:[%s6178_s2 + $0x304] sm:$0xf]  ;;  %v3887_v12 = vor.u32 %v4598_v60, %v3884_v10  ;;  %v4242_v29 = vld [vmem:[%s6178_s2 + $0x3c8] sm:$0xf]  ;;  %v4115_v33 = vor.u32 %v4657_v28, %v4114_v27 }
 0x195   : > { %2566 = vmatpush.bf16.msrb.mxu0 %v3791_v46  ;;  %2579 = vmatpush.bf16.msrb.mxu1 %v3919_v47  ;;  %v4140_v0 = vld [vmem:[%s6178_s2 + $0x310] sm:$0xf0]  ;;  %v4015_v17 = vor.u32 %v4630_v62, %v4012_v8  ;;  %v4689_v30 = vld [vmem:[%s6178_s2 + $0x3d4] sm:$0xf0]  ;;  %v3842_v34 = vld [vmem:[%s6178_s2 + $0xa8] sm:$0xf] }
 0x196   : > { %2592 = vmatpush.bf16.msrb.mxu2 %v4047_v50  ;;  %v4143_v18 = vor.u32 %v4662_v63, %v4140_v0  ;;  %v4589_v35 = vld [vmem:[%s6178_s2 + $0xb4] sm:$0xf0]  ;;  %v3970_v36 = vld [vmem:[%s6178_s2 + $0x1a8] sm:$0xf]  ;;  %v4243_v37 = vor.u32 %v4689_v30, %v4242_v29 }
 0x197   : > { %2605 = vmatpush.bf16.msrb.mxu3 %v4175_v51  ;;  %v4621_v38 = vld [vmem:[%s6178_s2 + $0x1b4] sm:$0xf0]  ;;  %v4098_v39 = vld [vmem:[%s6178_s2 + $0x2a8] sm:$0xf]  ;;  %v3843_v45 = vor.u32 %v4589_v35, %v3842_v34 }
 0x198   : > { %v4653_v40 = vld [vmem:[%s6178_s2 + $0x2b4] sm:$0xf0]  ;;  %v4226_v41 = vld [vmem:[%s6178_s2 + $0x3a8] sm:$0xf]  ;;  %v3971_v46 = vor.u32 %v4621_v38, %v3970_v36 }
 0x199   : > { %2567 = vmatpush.bf16.msrb.mxu0 %v3775_v58  ;;  %2580 = vmatpush.bf16.msrb.mxu1 %v3903_v59  ;;  %v4685_v44 = vld [vmem:[%s6178_s2 + $0x3b4] sm:$0xf0]  ;;  %v4099_v47 = vor.u32 %v4653_v40, %v4098_v39  ;;  %v3826_v50 = vld [vmem:[%s6178_s2 + $0x88] sm:$0xf] }
 0x19a   : > { %2593 = vmatpush.bf16.msrb.mxu2 %v4031_v61  ;;  %v4585_v51 = vld [vmem:[%s6178_s2 + $0x94] sm:$0xf0]  ;;  %v3954_v52 = vld [vmem:[%s6178_s2 + $0x188] sm:$0xf]  ;;  %v4227_v53 = vor.u32 %v4685_v44, %v4226_v41 }
 0x19b   : > { %2606 = vmatpush.bf16.msrb.mxu3 %v4159_v11  ;;  %v4617_v9 = vld [vmem:[%s6178_s2 + $0x194] sm:$0xf0]  ;;  %v4082_v54 = vld [vmem:[%s6178_s2 + $0x288] sm:$0xf]  ;;  %v3827_v58 = vor.u32 %v4585_v51, %v3826_v50  ;;  %v4627_v50 = vld [vmem:[%s6178_s2 + $0x1ec] sm:$0xf] }
 0x19c   : > { %v4649_v55 = vld [vmem:[%s6178_s2 + $0x294] sm:$0xf0]  ;;  %v4210_v56 = vld [vmem:[%s6178_s2 + $0x388] sm:$0xf]  ;;  %v3955_v59 = vor.u32 %v4617_v9, %v3954_v52  ;;  %v4004_v52 = vld [vmem:[%s6178_s2 + $0x1f8] sm:$0xf0] }
 0x19d   : > { %2568 = vmatpush.bf16.msrb.mxu0 %v3759_v7  ;;  %2581 = vmatpush.bf16.msrb.mxu1 %v3887_v12  ;;  %v4681_v57 = vld [vmem:[%s6178_s2 + $0x394] sm:$0xf0]  ;;  %v4083_v16 = vor.u32 %v4649_v55, %v4082_v54  ;;  %v3810_v60 = vld [vmem:[%s6178_s2 + $0x68] sm:$0xf]  ;;  %v4132_v9 = vld [vmem:[%s6178_s2 + $0x2f8] sm:$0xf0] }
 0x19e   : > { %2594 = vmatpush.bf16.msrb.mxu2 %v4015_v17  ;;  %v4581_v10 = vld [vmem:[%s6178_s2 + $0x74] sm:$0xf0]  ;;  %v3938_v61 = vld [vmem:[%s6178_s2 + $0x168] sm:$0xf]  ;;  %v4211_v11 = vor.u32 %v4681_v57, %v4210_v56  ;;  %v4691_v56 = vld [vmem:[%s6178_s2 + $0x3ec] sm:$0xf] }
 0x19f   : > { %2607 = vmatpush.bf16.msrb.mxu3 %v4143_v18  ;;  %v4613_v62 = vld [vmem:[%s6178_s2 + $0x174] sm:$0xf0]  ;;  %v4066_v8 = vld [vmem:[%s6178_s2 + $0x268] sm:$0xf]  ;;  %v3811_v3 = vor.u32 %v4581_v10, %v3810_v60  ;;  %v4260_v57 = vld [vmem:[%s6178_s2 + $0x3f8] sm:$0xf0] }
 0x1a0   : > { %v4645_v63 = vld [vmem:[%s6178_s2 + $0x274] sm:$0xf0]  ;;  %v4194_v0 = vld [vmem:[%s6178_s2 + $0x368] sm:$0xf]  ;;  %v3939_v4 = vor.u32 %v4613_v62, %v3938_v61  ;;  %v4591_v10 = vld [vmem:[%s6178_s2 + $0xcc] sm:$0xf]  ;;  %v4263_v62 = vor.u32 %v4691_v56, %v4260_v57 }
 0x1a1   : > { %2613 = vmatpush.bf16.msra.mxu0 %v3875_v19  ;;  %2626 = vmatpush.bf16.msra.mxu1 %v4003_v20  ;;  %v4677_v2 = vld [vmem:[%s6178_s2 + $0x374] sm:$0xf0]  ;;  %v4067_v5 = vor.u32 %v4645_v63, %v4066_v8  ;;  %v3794_v6 = vld [vmem:[%s6178_s2 + $0x48] sm:$0xf]  ;;  %v3860_v61 = vld [vmem:[%s6178_s2 + $0xd8] sm:$0xf0] }
 0x1a2   : > { %2639 = vmatpush.bf16.msra.mxu2 %v4131_v21  ;;  %2569 = vmatmul.bf16.vlgmr.msrb.gmra.mxu0 %v5613_v43  ;;  %v4577_v7 = vld [vmem:[%s6178_s2 + $0x54] sm:$0xf0]  ;;  %v3922_v12 = vld [vmem:[%s6178_s2 + $0x148] sm:$0xf]  ;;  %v4195_v13 = vor.u32 %v4677_v2, %v4194_v0  ;;  %v3988_v8 = vld [vmem:[%s6178_s2 + $0x1d8] sm:$0xf0] }
 0x1a3   : > { %2652 = vmatpush.bf16.msra.mxu3 %v4259_v22  ;;  %2595 = vmatmul.bf16.vlgmr.msrb.gmra.mxu2 %v5611_v42  ;;  %v4609_v14 = vld [vmem:[%s6178_s2 + $0x154] sm:$0xf0]  ;;  %v4050_v15 = vld [vmem:[%s6178_s2 + $0x248] sm:$0xf]  ;;  %v3795_v20 = vor.u32 %v4577_v7, %v3794_v6  ;;  %v4655_v63 = vld [vmem:[%s6178_s2 + $0x2cc] sm:$0xf] }
 0x1a4   : > { %2608 = vmatmul.bf16.vlgmr.msrb.gmra.mxu3 %v5615_v48  ;;  %2582 = vmatmul.bf16.vlgmr.msrb.gmra.mxu1 %v5617_v49  ;;  %v4641_v17 = vld [vmem:[%s6178_s2 + $0x254] sm:$0xf0]  ;;  %v4178_v18 = vld [vmem:[%s6178_s2 + $0x348] sm:$0xf]  ;;  %v3923_v21 = vor.u32 %v4609_v14, %v3922_v12  ;;  %v4116_v0 = vld [vmem:[%s6178_s2 + $0x2d8] sm:$0xf0] }
 0x1a5   : > { %2614 = vmatpush.bf16.msra.mxu0 %v3859_v31  ;;  %2627 = vmatpush.bf16.msra.mxu1 %v3987_v32  ;;  %v4673_v19 = vld [vmem:[%s6178_s2 + $0x354] sm:$0xf0]  ;;  %v4051_v22 = vor.u32 %v4641_v17, %v4050_v15  ;;  %v3778_v23 = vld [vmem:[%s6178_s2 + $0x28] sm:$0xf]  ;;  %v4687_v2 = vld [vmem:[%s6178_s2 + $0x3cc] sm:$0xf]  ;;  %v4119_v6 = vor.u32 %v4655_v63, %v4116_v0 }
 0x1a6   : > { %2640 = vmatpush.bf16.msra.mxu2 %v4115_v33  ;;  %v4573_v24 = vld [vmem:[%s6178_s2 + $0x34] sm:$0xf0]  ;;  %v3906_v25 = vld [vmem:[%s6178_s2 + $0x128] sm:$0xf]  ;;  %v4179_v26 = vor.u32 %v4673_v19, %v4178_v18  ;;  %v4587_v7 = vld [vmem:[%s6178_s2 + $0xac] sm:$0xf] }
 0x1a7   : > { %2653 = vmatpush.bf16.msra.mxu3 %v4243_v37  ;;  %v4605_v27 = vld [vmem:[%s6178_s2 + $0x134] sm:$0xf0]  ;;  %v4034_v28 = vld [vmem:[%s6178_s2 + $0x228] sm:$0xf]  ;;  %v3779_v32 = vor.u32 %v4573_v24, %v3778_v23  ;;  %v3844_v12 = vld [vmem:[%s6178_s2 + $0xb8] sm:$0xf0] }
 0x1a8   : > { %v4637_v29 = vld [vmem:[%s6178_s2 + $0x234] sm:$0xf0]  ;;  %v4162_v30 = vld [vmem:[%s6178_s2 + $0x328] sm:$0xf]  ;;  %v3907_v35 = vor.u32 %v4605_v27, %v3906_v25  ;;  %v3972_v15 = vld [vmem:[%s6178_s2 + $0x1b8] sm:$0xf0] }
 0x1a9   : > { %2615 = vmatpush.bf16.msra.mxu0 %v3843_v45  ;;  %2628 = vmatpush.bf16.msra.mxu1 %v3971_v46  ;;  %v4669_v31 = vld [vmem:[%s6178_s2 + $0x334] sm:$0xf0]  ;;  %v3762_v33 = vld [vmem:[%s6178_s2 + $0x8] sm:$0xf]  ;;  %v4035_v36 = vor.u32 %v4637_v29, %v4034_v28  ;;  %v4595_v46 = vld [vmem:[%s6178_s2 + $0xec] sm:$0xf] }
 0x1aa   : > { %2641 = vmatpush.bf16.msra.mxu2 %v4099_v47  ;;  %v4569_v34 = vld [vmem:[%s6178_s2 + $0x14] sm:$0xf0]  ;;  %v3890_v37 = vld [vmem:[%s6178_s2 + $0x108] sm:$0xf]  ;;  %v4163_v40 = vor.u32 %v4669_v31, %v4162_v30  ;;  %v3876_v47 = vld [vmem:[%s6178_s2 + $0xf8] sm:$0xf0] }
 0x1ab   : > { %2654 = vmatpush.bf16.msra.mxu3 %v4227_v53  ;;  %v4601_v38 = vld [vmem:[%s6178_s2 + $0x114] sm:$0xf0]  ;;  %v4018_v39 = vld [vmem:[%s6178_s2 + $0x208] sm:$0xf]  ;;  %v3763_v51 = vor.u32 %v4569_v34, %v3762_v33  ;;  %v4659_v53 = vld [vmem:[%s6178_s2 + $0x2ec] sm:$0xf] }
 0x1ac   : > { %v4633_v41 = vld [vmem:[%s6178_s2 + $0x214] sm:$0xf0]  ;;  %v4146_v44 = vld [vmem:[%s6178_s2 + $0x308] sm:$0xf]  ;;  %v3891_v54 = vor.u32 %v4601_v38, %v3890_v37  ;;  %v4135_v60 = vor.u32 %v4659_v53, %v4132_v9  ;;  %v4651_v17 = vld [vmem:[%s6178_s2 + $0x2ac] sm:$0xf] }
 0x1ad   : > { %2616 = vmatpush.bf16.msra.mxu0 %v3827_v58  ;;  %2629 = vmatpush.bf16.msra.mxu1 %v3955_v59  ;;  %v4665_v45 = vld [vmem:[%s6178_s2 + $0x314] sm:$0xf0]  ;;  %v4019_v55 = vor.u32 %v4633_v41, %v4018_v39  ;;  %v3879_v59 = vor.u32 %v4595_v46, %v3876_v47  ;;  %v4100_v18 = vld [vmem:[%s6178_s2 + $0x2b8] sm:$0xf0]  ;;  %v4683_v19 = vld [vmem:[%s6178_s2 + $0x3ac] sm:$0xf] }
 0x1ae   : > { %2642 = vmatpush.bf16.msra.mxu2 %v4083_v16  ;;  %v4147_v58 = vor.u32 %v4665_v45, %v4146_v44  ;;  %v4007_v16 = vor.u32 %v4627_v50, %v4004_v52  ;;  %v4103_v23 = vor.u32 %v4651_v17, %v4100_v18  ;;  %v4583_v24 = vld [vmem:[%s6178_s2 + $0x8c] sm:$0xf]  ;;  %v3828_v25 = vld [vmem:[%s6178_s2 + $0x98] sm:$0xf0] }
 0x1af   : > { %2655 = vmatpush.bf16.msra.mxu3 %v4211_v11  ;;  %v4623_v11 = vld [vmem:[%s6178_s2 + $0x1cc] sm:$0xf]  ;;  %v3956_v28 = vld [vmem:[%s6178_s2 + $0x198] sm:$0xf0]  ;;  %v3831_v33 = vor.u32 %v4583_v24, %v3828_v25 }
 0x1b0   : > { %v4647_v29 = vld [vmem:[%s6178_s2 + $0x28c] sm:$0xf]  ;;  %v4084_v30 = vld [vmem:[%s6178_s2 + $0x298] sm:$0xf0] }
 0x1b1   : > { %2617 = vmatpush.bf16.msra.mxu0 %v3811_v3  ;;  %2630 = vmatpush.bf16.msra.mxu1 %v3939_v4  ;;  %v4244_v3 = vld [vmem:[%s6178_s2 + $0x3d8] sm:$0xf0]  ;;  %v3863_v4 = vor.u32 %v4591_v10, %v3860_v61  ;;  %v4679_v31 = vld [vmem:[%s6178_s2 + $0x38c] sm:$0xf] }
 0x1b2   : > { %2643 = vmatpush.bf16.msra.mxu2 %v4067_v5  ;;  %v3991_v5 = vor.u32 %v4623_v11, %v3988_v8  ;;  %v4247_v14 = vor.u32 %v4687_v2, %v4244_v3  ;;  %v3812_v37 = vld [vmem:[%s6178_s2 + $0x78] sm:$0xf0]  ;;  %v4611_v38 = vld [vmem:[%s6178_s2 + $0x16c] sm:$0xf] }
 0x1b3   : > { %2656 = vmatpush.bf16.msra.mxu3 %v4195_v13  ;;  %v4619_v13 = vld [vmem:[%s6178_s2 + $0x1ac] sm:$0xf]  ;;  %v4068_v44 = vld [vmem:[%s6178_s2 + $0x278] sm:$0xf0] }
 0x1b4   : > { %v4643_v41 = vld [vmem:[%s6178_s2 + $0x26c] sm:$0xf]  ;;  %v4196_v46 = vld [vmem:[%s6178_s2 + $0x378] sm:$0xf0] }
 0x1b5   : > { %2618 = vmatpush.bf16.msra.mxu0 %v3795_v20  ;;  %2631 = vmatpush.bf16.msra.mxu1 %v3923_v21  ;;  %v4228_v20 = vld [vmem:[%s6178_s2 + $0x3b8] sm:$0xf0]  ;;  %v3847_v21 = vor.u32 %v4587_v7, %v3844_v12  ;;  %v4675_v45 = vld [vmem:[%s6178_s2 + $0x36c] sm:$0xf] }
 0x1b6   : > { %2644 = vmatpush.bf16.msra.mxu2 %v4051_v22  ;;  %v3975_v22 = vor.u32 %v4619_v13, %v3972_v15  ;;  %v4231_v27 = vor.u32 %v4683_v19, %v4228_v20  ;;  %v4575_v52 = vld [vmem:[%s6178_s2 + $0x4c] sm:$0xf]  ;;  %v3796_v53 = vld [vmem:[%s6178_s2 + $0x58] sm:$0xf0] }
 0x1b7   : > { %2657 = vmatpush.bf16.msra.mxu3 %v4179_v26  ;;  %v4615_v26 = vld [vmem:[%s6178_s2 + $0x18c] sm:$0xf]  ;;  %v4052_v57 = vld [vmem:[%s6178_s2 + $0x258] sm:$0xf0] }
 0x1b8   : > { %v3959_v34 = vor.u32 %v4615_v26, %v3956_v28  ;;  %v4607_v9 = vld [vmem:[%s6178_s2 + $0x14c] sm:$0xf]  ;;  %v3780_v11 = vld [vmem:[%s6178_s2 + $0x38] sm:$0xf0]  ;;  %v4700_v28 = vld [vmem:[%s6180_s4 + $0x30] sm:$0xff] }
 0x1b9   : > { %2619 = vmatpush.bf16.msra.mxu0 %v3779_v32  ;;  %2632 = vmatpush.bf16.msra.mxu1 %v3907_v35  ;;  %v4212_v32 = vld [vmem:[%s6178_s2 + $0x398] sm:$0xf0]  ;;  %v4087_v35 = vor.u32 %v4647_v29, %v4084_v30  ;;  %v4639_v56 = vld [vmem:[%s6178_s2 + $0x24c] sm:$0xf]  ;;  %v4698_v30 = vld [vmem:[%s6180_s4 + $0x20] sm:$0xff] }
 0x1ba   : > { %2645 = vmatpush.bf16.msra.mxu2 %v4035_v36  ;;  %v4579_v36 = vld [vmem:[%s6178_s2 + $0x6c] sm:$0xf]  ;;  %v4215_v39 = vor.u32 %v4679_v31, %v4212_v32  ;;  %v4055_v10 = vor.u32 %v4639_v56, %v4052_v57  ;;  %v3908_v63 = vld [vmem:[%s6178_s2 + $0x138] sm:$0xf0]  ;;  %v4706_v31 = vld [vmem:[%s6180_s4 + $0x60] sm:$0xff] }
 0x1bb   : > { %2658 = vmatpush.bf16.msra.mxu3 %v4163_v40  ;;  %v3940_v40 = vld [vmem:[%s6178_s2 + $0x178] sm:$0xf0]  ;;  %v3815_v47 = vor.u32 %v4579_v36, %v3812_v37  ;;  %v4571_v61 = vld [vmem:[%s6178_s2 + $0x2c] sm:$0xf]  ;;  %v6109_v37 = vld [vmem:[%s6179_s3] sm:$0xf] }
 0x1bc   : > { %v3943_v50 = vor.u32 %v4611_v38, %v3940_v40  ;;  %v4635_v0 = vld [vmem:[%s6178_s2 + $0x22c] sm:$0xf]  ;;  %v4036_v2 = vld [vmem:[%s6178_s2 + $0x238] sm:$0xf0]  ;;  %v4702_v38 = vld [vmem:[%s6180_s4 + $0x40] sm:$0xff] }
 0x1bd   : > { %2620 = vmatpush.bf16.msra.mxu0 %v3763_v51  ;;  %2633 = vmatpush.bf16.msra.mxu1 %v3891_v54  ;;  %v4071_v51 = vor.u32 %v4643_v41, %v4068_v44  ;;  %v4199_v54 = vor.u32 %v4675_v45, %v4196_v46  ;;  %v4667_v3 = vld [vmem:[%s6178_s2 + $0x32c] sm:$0xf]  ;;  %v4039_v7 = vor.u32 %v4635_v0, %v4036_v2  ;;  %v3764_v13 = vld [vmem:[%s6178_s2 + $0x18] sm:$0xf0]  ;;  %v4716_v41 = vld [vmem:[%s6180_s4 + $0xb0] sm:$0xff] }
 0x1be   : > { %2646 = vmatpush.bf16.msra.mxu2 %v4019_v55  ;;  %v3924_v55 = vld [vmem:[%s6178_s2 + $0x158] sm:$0xf0]  ;;  %v4567_v12 = vld [vmem:[%s6178_s2 + $0xc] sm:$0xf] }
 0x1bf   : > { %2659 = vmatpush.bf16.msra.mxu3 %v4147_v58  ;;  %v4671_v58 = vld [vmem:[%s6178_s2 + $0x34c] sm:$0xf]  ;;  %v3892_v17 = vld [vmem:[%s6178_s2 + $0x118] sm:$0xf0] }
 0x1c0   : > { %2621 = vmatmul.bf16.vlgmr.msra.gmra.mxu0 %v5613_v43  ;;  %2634 = vmatmul.bf16.vlgmr.msra.gmra.mxu1 %v5617_v49  ;;  %v4631_v18 = vld [vmem:[%s6178_s2 + $0x20c] sm:$0xf]  ;;  %v4020_v19 = vld [vmem:[%s6178_s2 + $0x218] sm:$0xf0] }
 0x1c1   : > { %2665 = vmatpush.bf16.msrb.mxu0 %v3879_v59  ;;  %2678 = vmatpush.bf16.msrb.mxu1 %v4007_v16  ;;  %v4180_v59 = vld [vmem:[%s6178_s2 + $0x358] sm:$0xf0]  ;;  %v3799_v16 = vor.u32 %v4575_v52, %v3796_v53  ;;  %v4663_v20 = vld [vmem:[%s6178_s2 + $0x30c] sm:$0xf]  ;;  %v4023_v24 = vor.u32 %v4631_v18, %v4020_v19 }
 0x1c2   : > { %2691 = vmatpush.bf16.msrb.mxu2 %v4135_v60  ;;  %2660 = vmatmul.bf16.vlgmr.msra.gmra.mxu3 %v5615_v48  ;;  %v3927_v60 = vor.u32 %v4607_v9, %v3924_v55  ;;  %v4183_v8 = vor.u32 %v4671_v58, %v4180_v59  ;;  %v4701_v26 = vld [vmem:[%s6180_s4 + $0x38] sm:$0xff]  ;;  %v4699_v29 = vld [vmem:[%s6180_s4 + $0x28] sm:$0xff]  ;;  %v4714_v9 = vld [vmem:[%s6180_s4 + $0xa0] sm:$0xff] }
 0x1c3   : > { %2704 = vmatpush.bf16.msrb.mxu3 %v4263_v62  ;;  %2647 = vmatmul.bf16.vlgmr.msra.gmra.mxu2 %v5611_v42  ;;  %v4603_v62 = vld [vmem:[%s6178_s2 + $0x12c] sm:$0xf]  ;;  %v4717_v40 = vld [vmem:[%s6180_s4 + $0xb8] sm:$0xff] }
 0x1c4   : > { %v4695_v32 = vld [vmem:[%s6180_s4 + $0x8] sm:$0xff]  ;;  %v4713_v58 = vld [vmem:[%s6180_s4 + $0x98] sm:$0xff] }
 0x1c5   : > { %2666 = vmatpush.bf16.msrb.mxu0 %v3863_v4  ;;  %2679 = vmatpush.bf16.msrb.mxu1 %v3991_v5  ;;  %v4164_v4 = vld [vmem:[%s6178_s2 + $0x338] sm:$0xf0]  ;;  %v3783_v5 = vor.u32 %v4571_v61, %v3780_v11  ;;  %v4703_v36 = vld [vmem:[%s6180_s4 + $0x48] sm:$0xff] }
 0x1c6   : > { %2692 = vmatpush.bf16.msrb.mxu2 %v4119_v6  ;;  %v3911_v6 = vor.u32 %v4603_v62, %v3908_v63  ;;  %v4167_v15 = vor.u32 %v4667_v3, %v4164_v4  ;;  %v4712_v62 = vld [vmem:[%s6180_s4 + $0x90] sm:$0xff]  ;;  %v4711_v0 = vld [vmem:[%s6180_s4 + $0x88] sm:$0xff] }
 0x1c7   : > { %2705 = vmatpush.bf16.msrb.mxu3 %v4247_v14  ;;  %v4599_v14 = vld [vmem:[%s6178_s2 + $0x10c] sm:$0xf] }
 0x1c9   : > { %2667 = vmatpush.bf16.msrb.mxu0 %v3847_v21  ;;  %2680 = vmatpush.bf16.msrb.mxu1 %v3975_v22  ;;  %v4148_v21 = vld [vmem:[%s6178_s2 + $0x318] sm:$0xf0]  ;;  %v3767_v22 = vor.u32 %v4567_v12, %v3764_v13 }
 0x1ca   : > { %2693 = vmatpush.bf16.msrb.mxu2 %v4103_v23  ;;  %v3895_v23 = vor.u32 %v4599_v14, %v3892_v17  ;;  %v4151_v25 = vor.u32 %v4663_v20, %v4148_v21  ;;  %v4725_v12 = vld [vmem:[%s6180_s4 + $0xf8] sm:$0xff]  ;;  %v4723_v20 = vld [vmem:[%s6180_s4 + $0xe8] sm:$0xff]  ;;  %v4722_v21 = vld [vmem:[%s6180_s4 + $0xe0] sm:$0xff] }
 0x1cb   : > { %2706 = vmatpush.bf16.msrb.mxu3 %v4231_v27  ;;  %v4709_v27 = vld [vmem:[%s6180_s4 + $0x78] sm:$0xff] }
 0x1cd   : > { %2668 = vmatpush.bf16.msrb.mxu0 %v3831_v33  ;;  %2681 = vmatpush.bf16.msrb.mxu1 %v3959_v34  ;;  %v4705_v33 = vld [vmem:[%s6180_s4 + $0x58] sm:$0xff]  ;;  %v4694_v34 = vld [vmem:[%s6180_s4] sm:$0xff] }
 0x1ce   : > { %2694 = vmatpush.bf16.msrb.mxu2 %v4087_v35  ;;  %v4704_v35 = vld [vmem:[%s6180_s4 + $0x50] sm:$0xff] }
 0x1cf   : > { %2707 = vmatpush.bf16.msrb.mxu3 %v4215_v39  ;;  %v1861_v39 = vperm.slane %v6109_v37, 0 }
 0x1d1   : > { %2669 = vmatpush.bf16.msrb.mxu0 %v3815_v47  ;;  %2682 = vmatpush.bf16.msrb.mxu1 %v3943_v50  ;;  %v4715_v50 = vld [vmem:[%s6180_s4 + $0xa8] sm:$0xff] }
 0x1d2   : > { %2695 = vmatpush.bf16.msrb.mxu2 %v4071_v51 }
 0x1d3   : > { %2708 = vmatpush.bf16.msrb.mxu3 %v4199_v54 }
 0x1d5   : > { %2670 = vmatpush.bf16.msrb.mxu0 %v3799_v16  ;;  %2683 = vmatpush.bf16.msrb.mxu1 %v3927_v60  ;;  %v1862_v16 = vperm.slane %v6109_v37, 1 }
 0x1d6   : > { %2696 = vmatpush.bf16.msrb.mxu2 %v4055_v10 }
 0x1d7   : > { %2709 = vmatpush.bf16.msrb.mxu3 %v4183_v8 }
 0x1d9   : > { %2671 = vmatpush.bf16.msrb.mxu0 %v3783_v5  ;;  %2684 = vmatpush.bf16.msrb.mxu1 %v3911_v6 }
 0x1da   : > { %2697 = vmatpush.bf16.msrb.mxu2 %v4039_v7  ;;  %v4710_v7 = vld [vmem:[%s6180_s4 + $0x80] sm:$0xff] }
 0x1db   : > { %2710 = vmatpush.bf16.msrb.mxu3 %v4167_v15  ;;  %v4724_v15 = vld [vmem:[%s6180_s4 + $0xf0] sm:$0xff] }
 0x1dd   : > { %2672 = vmatpush.bf16.msrb.mxu0 %v3767_v22  ;;  %2685 = vmatpush.bf16.msrb.mxu1 %v3895_v23  ;;  %v4721_v22 = vld [vmem:[%s6180_s4 + $0xd8] sm:$0xff]  ;;  %v1863_v23 = vperm.slane %v6109_v37, 2 }
 0x1de   : > { %2698 = vmatpush.bf16.msrb.mxu2 %v4023_v24  ;;  %v4720_v24 = vld [vmem:[%s6180_s4 + $0xd0] sm:$0xff] }
 0x1df   : > { %2711 = vmatpush.bf16.msrb.mxu3 %v4151_v25 }
 0x1e0   : > { %2673 = vmatmul.bf16.vlgmr.msrb.gmra.mxu0 %v5613_v43  ;;  %2686 = vmatmul.bf16.vlgmr.msrb.gmra.mxu1 %v5617_v49  ;;  %v4708_v43 = vld [vmem:[%s6180_s4 + $0x70] sm:$0xff] }
 0x1e1   : > { %2985 = vmatpush.bf16.msra.mxu0 %v4701_v26  ;;  %2998 = vmatpush.bf16.msra.mxu1 %v4709_v27  ;;  %v4696_v49 = vld [vmem:[%s6180_s4 + $0x10] sm:$0xff] }
 0x1e2   : > { %2699 = vmatmul.bf16.vlgmr.msrb.gmra.mxu2 %v5611_v42  ;;  %2712 = vmatmul.bf16.vlgmr.msrb.gmra.mxu3 %v5615_v48  ;;  %v4697_v42 = vld [vmem:[%s6180_s4 + $0x18] sm:$0xff]  ;;  %v4707_v48 = vld [vmem:[%s6180_s4 + $0x68] sm:$0xff] }
 0x1e3   : > { %3011 = vmatpush.bf16.msra.mxu2 %v4717_v40  ;;  %3024 = vmatpush.bf16.msra.mxu3 %v4725_v12 }
 0x1e5   : > { %2986 = vmatpush.bf16.msra.mxu0 %v4700_v28  ;;  %2999 = vmatpush.bf16.msra.mxu1 %v4708_v43 }
 0x1e7   : > { %3012 = vmatpush.bf16.msra.mxu2 %v4716_v41  ;;  %3025 = vmatpush.bf16.msra.mxu3 %v4724_v15 }
 0x1e9   : > { %2987 = vmatpush.bf16.msra.mxu0 %v4699_v29  ;;  %3000 = vmatpush.bf16.msra.mxu1 %v4707_v48  ;;  %v4719_v29 = vld [vmem:[%s6180_s4 + $0xc8] sm:$0xff] }
 0x1eb   : > { %3013 = vmatpush.bf16.msra.mxu2 %v4715_v50  ;;  %3026 = vmatpush.bf16.msra.mxu3 %v4723_v20 }
 0x1ed   : > { %2988 = vmatpush.bf16.msra.mxu0 %v4698_v30  ;;  %3001 = vmatpush.bf16.msra.mxu1 %v4706_v31  ;;  %v4718_v31 = vld [vmem:[%s6180_s4 + $0xc0] sm:$0xff] }
 0x1ef   : > { %3014 = vmatpush.bf16.msra.mxu2 %v4714_v9  ;;  %3027 = vmatpush.bf16.msra.mxu3 %v4722_v21 }
 0x1f1   : > { %2989 = vmatpush.bf16.msra.mxu0 %v4697_v42  ;;  %3002 = vmatpush.bf16.msra.mxu1 %v4705_v33 }
 0x1f3   : > { %3015 = vmatpush.bf16.msra.mxu2 %v4713_v58  ;;  %3028 = vmatpush.bf16.msra.mxu3 %v4721_v22 }
 0x1f5   : > { %2990 = vmatpush.bf16.msra.mxu0 %v4696_v49  ;;  %3003 = vmatpush.bf16.msra.mxu1 %v4704_v35 }
 0x1f7   : > { %3016 = vmatpush.bf16.msra.mxu2 %v4712_v62  ;;  %3029 = vmatpush.bf16.msra.mxu3 %v4720_v24 }
 0x1f9   : > { %2991 = vmatpush.bf16.msra.mxu0 %v4695_v32  ;;  %3004 = vmatpush.bf16.msra.mxu1 %v4703_v36 }
 0x1fb   : > { %3017 = vmatpush.bf16.msra.mxu2 %v4711_v0  ;;  %3030 = vmatpush.bf16.msra.mxu3 %v4719_v29 }
 0x1fd   : > { %2992 = vmatpush.bf16.msra.mxu0 %v4694_v34  ;;  %3005 = vmatpush.bf16.msra.mxu1 %v4702_v38  ;;  %v1864_v38 = vperm.slane %v6109_v37, 3 }
 0x1ff   : > { %3018 = vmatpush.bf16.msra.mxu2 %v4710_v7  ;;  %3031 = vmatpush.bf16.msra.mxu3 %v4718_v31 }
 0x20f   : > { %v2518_v44 = vpop.f32.mrf.mxu0 }
 0x210   : > { %v2519_v45 = vadd.f32 %v2518_v44, %v1861_v39 }
 0x211   : > { %v2531_v46 = vpop.f32.mrf.mxu1 }
 0x212   : > { %v2532_v47 = vadd.f32 %v2531_v46, %v2519_v45 }
 0x216   : > { %v2544_v51 = vpop.f32.mrf.mxu2 }
 0x217   : > { %v2545_v52 = vadd.f32 %v2544_v51, %v2532_v47  ;;  %v2557_v53 = vpop.f32.mrf.mxu3  ;;  %v2520_v54 = vpop.f32.mrf.mxu0 }
 0x219   : > { %v2558_v55 = vadd.f32 %v2557_v53, %v2545_v52  ;;  %v2533_v56 = vpop.f32.mrf.mxu1 }
 0x21b   : > { %v2717_v57 = vmax.f32 %v2558_v55, 0.0 }
 0x21d   : > { %v2721_v59 = vpack.c.bf16 %v2717_v57, %v2717_v57 }
 0x21e   : > { %v2546_v60 = vpop.f32.mrf.mxu2 }
 0x21f   : > { %v2559_v10 = vpop.f32.mrf.mxu3  ;;  %2993 = vmatmul.bf16.vlgmr.msra.gmra.mxu0 %v2721_v59  ;;  %v2570_v61 = vpop.f32.mrf.mxu0  ;;  %v4746_v60 = vld [vmem:[%s6181_s5] ss:$0 sm:$0xff] }
 0x220   : > { %v2571_v11 = vadd.f32 %v2570_v61, %v1862_v16 }
 0x221   : > { %v2583_v8 = vpop.f32.mrf.mxu1 }
 0x222   : > { %v2584_v63 = vadd.f32 %v2583_v8, %v2571_v11 }
 0x226   : > { %v2596_v2 = vpop.f32.mrf.mxu2 }
 0x227   : > { %v2597_v3 = vadd.f32 %v2596_v2, %v2584_v63  ;;  %v2609_v4 = vpop.f32.mrf.mxu3  ;;  %v2572_v5 = vpop.f32.mrf.mxu0 }
 0x229   : > { %v2610_v6 = vadd.f32 %v2609_v4, %v2597_v3  ;;  %v2585_v14 = vpop.f32.mrf.mxu1 }
 0x22b   : > { %v2718_v13 = vmax.f32 %v2610_v6, 0.0 }
 0x22d   : > { %v2722_v17 = vpack.c.bf16 %v2718_v13, %v2718_v13 }
 0x22e   : > { %v2598_v18 = vpop.f32.mrf.mxu2 }
 0x22f   : > { %3006 = vmatmul.bf16.vlgmr.msra.gmra.mxu1 %v2722_v17  ;;  %v2611_v19 = vpop.f32.mrf.mxu3 }
 0x23d   : > { %v2622_v25 = vpop.f32.mrf.mxu0  ;;  %v2635_v27 = vpop.f32.mrf.mxu1 }
 0x23e   : > { %v2623_v26 = vadd.f32 %v2622_v25, %v1863_v23 }
 0x240   : > { %v2636_v28 = vadd.f32 %v2635_v27, %v2623_v26 }
 0x245   : > { %v2661_v42 = vpop.f32.mrf.mxu3  ;;  %v2624_v49 = vpop.f32.mrf.mxu0 }
 0x246   : > { %v2648_v30 = vpop.f32.mrf.mxu2  ;;  %v2637_v32 = vpop.f32.mrf.mxu1 }
 0x247   : > { %v2649_v43 = vadd.f32 %v2648_v30, %v2636_v28 }
 0x249   : > { %v2662_v48 = vadd.f32 %v2661_v42, %v2649_v43 }
 0x24b   : > { %v2719_v33 = vmax.f32 %v2662_v48, 0.0 }
 0x24d   : > { %v2723_v34 = vpack.c.bf16 %v2719_v33, %v2719_v33  ;;  %v2663_v36 = vpop.f32.mrf.mxu3 }
 0x24e   : > { %v2650_v35 = vpop.f32.mrf.mxu2 }
 0x24f   : > { %3019 = vmatmul.bf16.vlgmr.msra.gmra.mxu2 %v2723_v34 }
 0x25d   : > { %v2674_v39 = vpop.f32.mrf.mxu0  ;;  %v2687_v41 = vpop.f32.mrf.mxu1 }
 0x25e   : > { %v2675_v40 = vadd.f32 %v2674_v39, %v1864_v38 }
 0x260   : > { %v2688_v44 = vadd.f32 %v2687_v41, %v2675_v40 }
 0x265   : > { %v2700_v45 = vpop.f32.mrf.mxu2  ;;  %v2713_v47 = vpop.f32.mrf.mxu3 }
 0x266   : > { %v2701_v46 = vadd.f32 %v2700_v45, %v2688_v44  ;;  %v2676_v50 = vpop.f32.mrf.mxu0  ;;  %v2689_v51 = vpop.f32.mrf.mxu1 }
 0x268   : > { %v2714_v52 = vadd.f32 %v2713_v47, %v2701_v46 }
 0x26a   : > { %v2720_v53 = vmax.f32 %v2714_v52, 0.0 }
 0x26c   : > { %v2724_v9 = vpack.c.bf16 %v2720_v53, %v2720_v53 }
 0x26d   : > { %v2702_v54 = vpop.f32.mrf.mxu2  ;;  %v2715_v55 = vpop.f32.mrf.mxu3 }
 0x26e   : > { %3032 = vmatmul.bf16.vlgmr.msra.gmra.mxu3 %v2724_v9 }
 0x29c   : > { %v2994_v56 = vpop.f32.mrf.mxu0 }
 0x29d   : > { %v2995_v10 = vadd.f32 %v4746_v60, %v2994_v56 }
 0x2a4   : > { %v2996_v57 = vpop.f32.mrf.mxu0 }
 0x2ac   : > { %v3007_v58 = vpop.f32.mrf.mxu1 }
 0x2ad   : > { %v3008_v61 = vadd.f32 %v3007_v58, %v2995_v10 }
 0x2b4   : > { %v3009_v59 = vpop.f32.mrf.mxu1 }
 0x2d2   : > { %v3020_v37 = vpop.f32.mrf.mxu2 }
 0x2d3   : > { %v3021_v11 = vadd.f32 %v3020_v37, %v3008_v61 }
 0x2da   : > { %v3022_v16 = vpop.f32.mrf.mxu2 }
 0x2f1   : > { %v3033_v62 = vpop.f32.mrf.mxu3 }
 0x2f2   : > { %v3034_v8 = vadd.f32 %v3033_v62, %v3021_v11 }
 0x2f4   : > { %3037 = vst [vmem:[#allocation8] sm:$0x3] %v3034_v8 }
 0x2f9   : > { %v3035_v63 = vpop.f32.mrf.mxu3 }
 0x2fa PF: > { %p4734_p8 = scmp.eq.s32.totalorder %s4845_s30, 4  ;;  %s4788_s23 = smov [#allocation8]  }
 0x2fb   : > { %s3044_s24 = sshll.u32 %s4788_s23, 4  ;;  %s3046_s27 = sshll.u32 %s6184_s8, 4  ;;  %s3045_s24 = int_to_ptr.vmem [resolvable:$true] %s3044_s24  ;;  %s3047_s27 = int_to_ptr.hbm [resolvable:$true] %s3046_s27 }
 0x2fc   : > { %4731 = dma.vmem_to_hbm [thread:$0]  (%p4734_p8), %s3045_s24, 32, %s3047_s27, [#allocation9]  }
 0x2fd   : > { %4780 = dma.done.wait (%p4734_p8), [#allocation9], 32  }
 0x2fe   : > { %4782 = vsyncadd (%p4734_p8), [#allocation9], 4294967264 }
 0x2ff PF: > { %s24_s29 = sadd.s32 1, %s4785_s29  }
 0x300   : > { %p21_p9 = scmp.ge.s32.totalorder %s24_s29, 7  }
 0x302   :  { %23 = sbr.rel (!%p21_p9) target bundleno = 4 (0x4), region = 94 }
 0x307   :  { %3060 = vsyncpa [#allocation9], 1 }
 0x308   :  { %3062 = vsyncpa [#allocation9 + $0x1], 1 }

</bundles_post_ra>
